<compile_context>
chip_gen: v7x
topology: tpu7x:2x2x1
jax: 0.10.0
libtpu: 0.0.40
codegen_flags: <defaults>
</compile_context>

<pallas_src>
import jax
import jax.numpy as jnp
import numpy as np
from jax import lax
from jax.experimental import pallas as pl
from jax.experimental.pallas import tpu as pltpu

INPUT_CH = 42
OUTPUT_CH1 = 6
OUTPUT_CH2 = 6
K1_SIZE = 3                            # dilation 2
K2_SIZE = 2                            # stride 2
SEQ_LEN = 40                           # conv1 -> 36, conv2 -> 18, flatten -> 108
L1 = SEQ_LEN - 2 * (K1_SIZE - 1)       # 36
L2 = (L1 - K2_SIZE) // 2 + 1           # 18
FLAT_IN = INPUT_CH * SEQ_LEN           # 1680  (row-major NCL flatten: c*40 + t)
H1_DIM = OUTPUT_CH1 * L1               # 216   (index s*6 + c)
H2_DIM = OUTPUT_CH2 * L2               # 108   (index s*6 + c)
FC1_OUT = 22
MAX_BATCH_BLOCK = 1024                 # f32 x block: 6.9 MB, x2 buffers = 13.8 MB
VMEM_LIMIT_BYTES = 48 * 1024 * 1024    # < 64 MiB v7x physical; >> actual ~21 MB use


def _round_up(a, m):
    return -(-a // m) * m


def vadnet_kernel(x_ref, w1_ref, b1_ref, w2_ref, b2_ref,
                  wf1_ref, bf1_ref, wf2_ref, bf2_ref, out_ref):
    # x_ref: (TB, 1680) f32 (raw NCL flatten c*40+t). Cast to bf16 on-chip so
    # the HBM read stays 4B/elt with no extra wrapper pass, but the conv1
    # matmul runs on the single-pass bf16 MXU path.
    x = x_ref[...].astype(jnp.bfloat16)

    # conv1 + ReLU as a single (TB, 1680) @ (1680, 216) matmul; the dilation-2
    # taps are scattered into the right rows of w1; bias tiled per position.
    h1 = jnp.dot(x, w1_ref[...], preferred_element_type=jnp.float32)
    h1 = jnp.maximum(h1 + b1_ref[...], 0.0)                      # (TB, 216) f32

    # conv2 (k=2, stride=2) + ReLU as a single bf16 matmul against the
    # kron-structured (216, 108) weight.
    h2 = jnp.dot(h1.astype(jnp.bfloat16), w2_ref[...],
                 preferred_element_type=jnp.float32)
    h2 = jnp.maximum(h2 + b2_ref[...], 0.0)                      # (TB, 108) f32

    # fc1 + ReLU: torch's channel-major flatten is folded into wf1's row order,
    # so this is one lane-dense (TB, 108) @ (108, 22) bf16 matmul.
    z1 = jnp.dot(h2.astype(jnp.bfloat16), wf1_ref[...],
                 preferred_element_type=jnp.float32)
    z1 = jnp.maximum(z1 + bf1_ref[...], 0.0)                     # (TB, 22) f32

    # fc2: (1, 22) x (TB, 22)^T -> (1, TB), i.e. the output row is produced
    # lane-dense directly (no (TB,1) column store). Tiny matmul, kept f32.
    z2 = jnp.einsum("ok,bk->ob", wf2_ref[...], z1,
                    preferred_element_type=jnp.float32) + bf2_ref[...]

    # Numerically safe sigmoid (clip the logit, then exp on the EUP).
    z2 = jnp.clip(z2, -30.0, 30.0)
    prob = 1.0 / (1.0 + jnp.exp(-z2))                            # (1, TB) f32
    out_ref[...] = prob[None]                                    # (1, 1, TB)


def _fold_weights(params):
    """Fold conv taps / flatten order into dense matmul weights (tiny, done in
    plain JAX in the wrapper)."""
    w1, b1 = params["w1"], params["b1"]        # (6, 42, 3), (6,)
    w2, b2 = params["w2"], params["b2"]        # (6, 6, 2), (6,)
    wf1, bf1 = params["wf1"], params["bf1"]    # (22, 108), (22,)
    wf2, bf2 = params["wf2"], params["bf2"]    # (1, 22), (1,)

    # conv1: h1[b, s*6+o] = sum_{i,t} x[b, i*40+t] * W1[i*40+t, s*6+o]
    #        with W1[i*40 + (s+2k), s*6+o] = w1[o, i, k].
    t = np.arange(SEQ_LEN)
    s1 = np.arange(L1)
    k1 = np.arange(K1_SIZE)
    sel1 = (t[:, None, None] == s1[None, :, None] + 2 * k1[None, None, :])
    w1_big = jnp.einsum("tsk,oik->itso", sel1.astype(np.float32), w1)
    w1_big = w1_big.reshape(FLAT_IN, H1_DIM).astype(jnp.bfloat16)
    b1_big = jnp.tile(b1, L1).reshape(1, H1_DIM).astype(jnp.float32)

    # conv2: h2[b, s*6+o] = sum_{i,kk} h1[b, (2s+kk)*6+i] * w2[o, i, kk]
    p = np.arange(L1)
    s2 = np.arange(L2)
    k2 = np.arange(K2_SIZE)
    sel2 = (p[:, None, None] == 2 * s2[None, :, None] + k2[None, None, :])
    w2_big = jnp.einsum("psk,oik->piso", sel2.astype(np.float32), w2)
    w2_big = w2_big.reshape(H1_DIM, H2_DIM).astype(jnp.bfloat16)
    b2_big = jnp.tile(b2, L2).reshape(1, H2_DIM).astype(jnp.float32)

    # fc1: torch flatten index is c*18+s; our h2 index is s*6+c -> reorder rows.
    wf1_r = wf1.reshape(FC1_OUT, OUTPUT_CH2, L2).transpose(2, 1, 0)
    wf1_r = wf1_r.reshape(H2_DIM, FC1_OUT).astype(jnp.bfloat16)
    bf1_r = bf1.reshape(1, FC1_OUT).astype(jnp.float32)

    wf2_r = wf2.reshape(1, FC1_OUT).astype(jnp.float32)
    bf2_r = bf2.reshape(1, 1).astype(jnp.float32)
    return w1_big, b1_big, w2_big, b2_big, wf1_r, bf1_r, wf2_r, bf2_r


def vadnet_forward(x, params):
    B = x.shape[0]
    assert x.shape[1:] == (INPUT_CH, SEQ_LEN), x.shape

    # Free, no-copy view: contiguous NCL row-major flatten (c*40 + t).
    # Stays f32 in HBM; the bf16 cast happens inside the kernel.
    x_flat = x.reshape(B, FLAT_IN)

    # Batch block: multiple of 256, capped at MAX_BATCH_BLOCK, and <= ~B/2 so
    # the grid has >= 2 steps (pipelining overlap + v7x two-TensorCore shard)
    # whenever the batch is big enough. No explicit padding: the last grid
    # step's input block is ragged and Pallas handles it (rows independent).
    tb = min(MAX_BATCH_BLOCK, _round_up(-(-B // 2), 256))
    grid = pl.cdiv(B, tb)

    (w1_big, b1_big, w2_big, b2_big,
     wf1_r, bf1_r, wf2_r, bf2_r) = _fold_weights(params)

    const = lambda i: (0, 0)
    out = pl.pallas_call(
        vadnet_kernel,
        # Lane-dense output: one (1, tb) probability row per grid step.
        out_shape=jax.ShapeDtypeStruct((grid, 1, tb), jnp.float32),
        grid=(grid,),
        in_specs=[
            pl.BlockSpec((tb, FLAT_IN), lambda i: (i, 0)),     # x batch block (f32)
            pl.BlockSpec((FLAT_IN, H1_DIM), const),            # conv1 folded W (bf16)
            pl.BlockSpec((1, H1_DIM), const),                  # conv1 bias (tiled)
            pl.BlockSpec((H1_DIM, H2_DIM), const),             # conv2 folded W (bf16)
            pl.BlockSpec((1, H2_DIM), const),                  # conv2 bias (tiled)
            pl.BlockSpec((H2_DIM, FC1_OUT), const),            # fc1 W (reordered, bf16)
            pl.BlockSpec((1, FC1_OUT), const),                 # fc1 bias
            pl.BlockSpec((1, FC1_OUT), const),                 # fc2 W (row)
            pl.BlockSpec((1, 1), const),                       # fc2 bias
        ],
        out_specs=pl.BlockSpec((1, 1, tb), lambda i: (i, 0, 0)),
        compiler_params=pltpu.CompilerParams(
            dimension_semantics=("parallel",),
            vmem_limit_bytes=VMEM_LIMIT_BYTES),
    )(x_flat, w1_big, b1_big, w2_big, b2_big, wf1_r, bf1_r, wf2_r, bf2_r)

    # Tiny reshape of the (grid, 1, tb) row-major result back to (B, 1);
    # rows >= B (ragged last block) hold garbage and are sliced off here.
    return out.reshape(grid * tb, 1)[:B]


def init_params(key):
    ks = jax.random.split(key, 8)
    n = lambda k, shape, s: jax.random.normal(k, shape, jnp.float32) * s
    return {
        "w1": n(ks[0], (OUTPUT_CH1, INPUT_CH, K1_SIZE), 0.1),
        "b1": n(ks[1], (OUTPUT_CH1,), 0.1),
        "w2": n(ks[2], (OUTPUT_CH2, OUTPUT_CH1, K2_SIZE), 0.2),
        "b2": n(ks[3], (OUTPUT_CH2,), 0.1),
        "wf1": n(ks[4], (FC1_OUT, H2_DIM), 0.1),
        "bf1": n(ks[5], (FC1_OUT,), 0.1),
        "wf2": n(ks[6], (1, FC1_OUT), 0.2),
        "bf2": n(ks[7], (1,), 0.1),
    }


def reference_forward(x, p):
    # Plain-JAX f32 reference matching PyTorch Conv1d/Linear semantics exactly.
    dn = ("NCH", "OIH", "NCH")
    y = lax.conv_general_dilated(x, p["w1"], window_strides=(1,),
                                 padding="VALID", rhs_dilation=(2,),
                                 dimension_numbers=dn)
    y = jax.nn.relu(y + p["b1"][None, :, None])
    y = lax.conv_general_dilated(y, p["w2"], window_strides=(2,),
                                 padding="VALID", rhs_dilation=(1,),
                                 dimension_numbers=dn)
    y = jax.nn.relu(y + p["b2"][None, :, None])
    y = y.reshape(y.shape[0], -1)                 # (B, 108), channel-major flatten
    y = jax.nn.relu(y @ p["wf1"].T + p["bf1"])
    y = y @ p["wf2"].T + p["bf2"]
    return jax.nn.sigmoid(y)


if __name__ == "__main__":
    key = jax.random.PRNGKey(0)
    pkey, xkey = jax.random.split(key)
    params = init_params(pkey)
    fwd = jax.jit(vadnet_forward)

    # Small shape per spec (batch=2; channels=42 and length=40 are forced by
    # the module since fc1 expects 108 = 6 * 18 features).
    x_small = jax.random.normal(xkey, (2, INPUT_CH, SEQ_LEN), jnp.float32)
    out_small = jax.block_until_ready(fwd(x_small, params))
    assert out_small.shape == (2, 1), out_small.shape
    ref_small = reference_forward(x_small, params)
    err_small = float(jnp.max(jnp.abs(out_small - ref_small)))
    assert err_small < 2e-2, f"mismatch vs reference (B=2): {err_small}"

    # Larger batch exercises the multi-step grid with a ragged last block
    # (no wrapper-side padding) and the lane-dense per-step output rows.
    x_big = jax.random.normal(jax.random.PRNGKey(1),
                              (600, INPUT_CH, SEQ_LEN), jnp.float32)
    out_big = jax.block_until_ready(fwd(x_big, params))
    assert out_big.shape == (600, 1), out_big.shape
    ref_big = reference_forward(x_big, params)
    err_big = float(jnp.max(jnp.abs(out_big - ref_big)))
    assert err_big < 2e-2, f"mismatch vs reference (B=600): {err_big}"

    print("KERNEL_OK")
</pallas_src>

<mosaic_0001>
module attributes {stable_mosaic.version = 11 : i64} {
  func.func @vadnet_kernel(%arg0: i32, %arg1: memref<256x1680xf32, #tpu.memory_space<vmem>>, %arg2: memref<1680x216xbf16, #tpu.memory_space<vmem>>, %arg3: memref<1x216xf32, #tpu.memory_space<vmem>>, %arg4: memref<216x108xbf16, #tpu.memory_space<vmem>>, %arg5: memref<1x108xf32, #tpu.memory_space<vmem>>, %arg6: memref<108x22xbf16, #tpu.memory_space<vmem>>, %arg7: memref<1x22xf32, #tpu.memory_space<vmem>>, %arg8: memref<1x22xf32, #tpu.memory_space<vmem>>, %arg9: memref<1x1xf32, #tpu.memory_space<vmem>>, %arg10: memref<1x1x256xf32, #tpu.memory_space<vmem>>) attributes {dimension_semantics = [#tpu.dimension_semantics<parallel>], iteration_bounds = array<i64: 1>, scalar_prefetch = 0 : i64, scratch_operands = 0 : i64, tpu.core_type = #tpu.core_type<tc>, window_params = [{transform_indices = @transform_0, window_bounds = array<i64: 256, 1680>}, {pipeline_mode = #tpu.pipeline_mode<synchronous>, transform_indices = @transform_1, window_bounds = array<i64: 1680, 216>}, {pipeline_mode = #tpu.pipeline_mode<synchronous>, transform_indices = @transform_2, window_bounds = array<i64: 1, 216>}, {pipeline_mode = #tpu.pipeline_mode<synchronous>, transform_indices = @transform_3, window_bounds = array<i64: 216, 108>}, {pipeline_mode = #tpu.pipeline_mode<synchronous>, transform_indices = @transform_4, window_bounds = array<i64: 1, 108>}, {pipeline_mode = #tpu.pipeline_mode<synchronous>, transform_indices = @transform_5, window_bounds = array<i64: 108, 22>}, {pipeline_mode = #tpu.pipeline_mode<synchronous>, transform_indices = @transform_6, window_bounds = array<i64: 1, 22>}, {pipeline_mode = #tpu.pipeline_mode<synchronous>, transform_indices = @transform_7, window_bounds = array<i64: 1, 22>}, {pipeline_mode = #tpu.pipeline_mode<synchronous>, transform_indices = @transform_8, window_bounds = array<i64: 1, 1>}, {transform_indices = @transform_9, window_bounds = array<i64: 1, 1, 256>}]} {
    %c0 = arith.constant 0 : index
    %c0_0 = arith.constant 0 : index
    %0 = vector.load %arg1[%c0, %c0_0] : memref<256x1680xf32, #tpu.memory_space<vmem>>, vector<256x1680xf32>
    %1 = arith.truncf %0 : vector<256x1680xf32> to vector<256x1680xbf16>
    %c0_1 = arith.constant 0 : index
    %c0_2 = arith.constant 0 : index
    %2 = vector.load %arg2[%c0_1, %c0_2] : memref<1680x216xbf16, #tpu.memory_space<vmem>>, vector<1680x216xbf16>
    %cst = arith.constant dense<0.000000e+00> : vector<256x216xf32>
    %3 = tpu.matmul %1, %2, %cst {dimension_numbers = #tpu.dot_dimension_numbers<[1], [0], [0], [1], [0, 0, 1, 1], [], []>} : vector<256x1680xbf16>, vector<1680x216xbf16>, vector<256x216xf32> -> vector<256x216xf32>
    %c0_3 = arith.constant 0 : index
    %c0_4 = arith.constant 0 : index
    %4 = vector.load %arg3[%c0_3, %c0_4] : memref<1x216xf32, #tpu.memory_space<vmem>>, vector<1x216xf32>
    %5 = vector.broadcast %4 : vector<1x216xf32> to vector<256x216xf32>
    %6 = arith.addf %3, %5 : vector<256x216xf32>
    %cst_5 = arith.constant 0.000000e+00 : f32
    %7 = vector.broadcast %cst_5 : f32 to vector<256x216xf32>
    %8 = arith.maximumf %6, %7 : vector<256x216xf32>
    %9 = arith.truncf %8 : vector<256x216xf32> to vector<256x216xbf16>
    %c0_6 = arith.constant 0 : index
    %c0_7 = arith.constant 0 : index
    %10 = vector.load %arg4[%c0_6, %c0_7] : memref<216x108xbf16, #tpu.memory_space<vmem>>, vector<216x108xbf16>
    %cst_8 = arith.constant dense<0.000000e+00> : vector<256x108xf32>
    %11 = tpu.matmul %9, %10, %cst_8 {dimension_numbers = #tpu.dot_dimension_numbers<[1], [0], [0], [1], [0, 0, 1, 1], [], []>} : vector<256x216xbf16>, vector<216x108xbf16>, vector<256x108xf32> -> vector<256x108xf32>
    %c0_9 = arith.constant 0 : index
    %c0_10 = arith.constant 0 : index
    %12 = vector.load %arg5[%c0_9, %c0_10] : memref<1x108xf32, #tpu.memory_space<vmem>>, vector<1x108xf32>
    %13 = vector.broadcast %12 : vector<1x108xf32> to vector<256x108xf32>
    %14 = arith.addf %11, %13 : vector<256x108xf32>
    %cst_11 = arith.constant 0.000000e+00 : f32
    %15 = vector.broadcast %cst_11 : f32 to vector<256x108xf32>
    %16 = arith.maximumf %14, %15 : vector<256x108xf32>
    %17 = arith.truncf %16 : vector<256x108xf32> to vector<256x108xbf16>
    %c0_12 = arith.constant 0 : index
    %c0_13 = arith.constant 0 : index
    %18 = vector.load %arg6[%c0_12, %c0_13] : memref<108x22xbf16, #tpu.memory_space<vmem>>, vector<108x22xbf16>
    %cst_14 = arith.constant dense<0.000000e+00> : vector<256x22xf32>
    %19 = tpu.matmul %17, %18, %cst_14 {dimension_numbers = #tpu.dot_dimension_numbers<[1], [0], [0], [1], [0, 0, 1, 1], [], []>} : vector<256x108xbf16>, vector<108x22xbf16>, vector<256x22xf32> -> vector<256x22xf32>
    %c0_15 = arith.constant 0 : index
    %c0_16 = arith.constant 0 : index
    %20 = vector.load %arg7[%c0_15, %c0_16] : memref<1x22xf32, #tpu.memory_space<vmem>>, vector<1x22xf32>
    %21 = vector.broadcast %20 : vector<1x22xf32> to vector<256x22xf32>
    %22 = arith.addf %19, %21 : vector<256x22xf32>
    %cst_17 = arith.constant 0.000000e+00 : f32
    %23 = vector.broadcast %cst_17 : f32 to vector<256x22xf32>
    %24 = arith.maximumf %22, %23 : vector<256x22xf32>
    %c0_18 = arith.constant 0 : index
    %c0_19 = arith.constant 0 : index
    %25 = vector.load %arg8[%c0_18, %c0_19] : memref<1x22xf32, #tpu.memory_space<vmem>>, vector<1x22xf32>
    "tpu.trace_start"() <{level = 10 : i32, message = "ok,bk->ob"}> : () -> ()
    %cst_20 = arith.constant dense<0.000000e+00> : vector<1x256xf32>
    %26 = tpu.matmul %25, %24, %cst_20 {dimension_numbers = #tpu.dot_dimension_numbers<[1], [1], [0], [0], [0, 0, 1, 0], [], []>} : vector<1x22xf32>, vector<256x22xf32>, vector<1x256xf32> -> vector<1x256xf32>
    "tpu.trace_stop"() : () -> ()
    %c0_21 = arith.constant 0 : index
    %c0_22 = arith.constant 0 : index
    %27 = vector.load %arg9[%c0_21, %c0_22] : memref<1x1xf32, #tpu.memory_space<vmem>>, vector<1x1xf32>
    %28 = vector.broadcast %27 : vector<1x1xf32> to vector<1x256xf32>
    %29 = arith.addf %26, %28 : vector<1x256xf32>
    %cst_23 = arith.constant -3.000000e+01 : f32
    %cst_24 = arith.constant 3.000000e+01 : f32
    %30 = vector.broadcast %cst_23 : f32 to vector<1x256xf32>
    %31 = arith.maximumf %30, %29 : vector<1x256xf32>
    %32 = vector.broadcast %cst_24 : f32 to vector<1x256xf32>
    %33 = arith.minimumf %32, %31 : vector<1x256xf32>
    %cst_25 = arith.constant 0.000000e+00 : f32
    %34 = vector.broadcast %cst_25 : f32 to vector<1x256xf32>
    %35 = arith.subf %34, %33 : vector<1x256xf32>
    %36 = math.exp %35 : vector<1x256xf32>
    %cst_26 = arith.constant 1.000000e+00 : f32
    %37 = vector.broadcast %cst_26 : f32 to vector<1x256xf32>
    %38 = arith.addf %37, %36 : vector<1x256xf32>
    %cst_27 = arith.constant 1.000000e+00 : f32
    %39 = vector.broadcast %cst_27 : f32 to vector<1x256xf32>
    %40 = arith.divf %39, %38 : vector<1x256xf32>
    %41 = vector.shape_cast %40 : vector<1x256xf32> to vector<1x1x256xf32>
    %c0_28 = arith.constant 0 : index
    %c0_29 = arith.constant 0 : index
    %c0_30 = arith.constant 0 : index
    %42 = vector.load %arg10[%c0_28, %c0_29, %c0_30] : memref<1x1x256xf32, #tpu.memory_space<vmem>>, vector<1x1x256xf32>
    tpu.vector_store %arg10[%c0_28, %c0_29, %c0_30], %41 {strides = array<i32>} : memref<1x1x256xf32, #tpu.memory_space<vmem>>, vector<1x1x256xf32>,
    return
  }
  func.func @transform_0(%arg0: i32) -> (i32, i32) {
    %c0_i32 = arith.constant 0 : i32
    %c0_i32_0 = arith.constant 0 : i32
    return %arg0, %c0_i32 : i32, i32
  }
  func.func @transform_1(%arg0: i32) -> (i32, i32) {
    %c0_i32 = arith.constant 0 : i32
    %c0_i32_0 = arith.constant 0 : i32
    %c0_i32_1 = arith.constant 0 : i32
    return %c0_i32, %c0_i32_0 : i32, i32
  }
  func.func @transform_2(%arg0: i32) -> (i32, i32) {
    %c0_i32 = arith.constant 0 : i32
    %c0_i32_0 = arith.constant 0 : i32
    %c0_i32_1 = arith.constant 0 : i32
    return %c0_i32, %c0_i32_0 : i32, i32
  }
  func.func @transform_3(%arg0: i32) -> (i32, i32) {
    %c0_i32 = arith.constant 0 : i32
    %c0_i32_0 = arith.constant 0 : i32
    %c0_i32_1 = arith.constant 0 : i32
    return %c0_i32, %c0_i32_0 : i32, i32
  }
  func.func @transform_4(%arg0: i32) -> (i32, i32) {
    %c0_i32 = arith.constant 0 : i32
    %c0_i32_0 = arith.constant 0 : i32
    %c0_i32_1 = arith.constant 0 : i32
    return %c0_i32, %c0_i32_0 : i32, i32
  }
  func.func @transform_5(%arg0: i32) -> (i32, i32) {
    %c0_i32 = arith.constant 0 : i32
    %c0_i32_0 = arith.constant 0 : i32
    %c0_i32_1 = arith.constant 0 : i32
    return %c0_i32, %c0_i32_0 : i32, i32
  }
  func.func @transform_6(%arg0: i32) -> (i32, i32) {
    %c0_i32 = arith.constant 0 : i32
    %c0_i32_0 = arith.constant 0 : i32
    %c0_i32_1 = arith.constant 0 : i32
    return %c0_i32, %c0_i32_0 : i32, i32
  }
  func.func @transform_7(%arg0: i32) -> (i32, i32) {
    %c0_i32 = arith.constant 0 : i32
    %c0_i32_0 = arith.constant 0 : i32
    %c0_i32_1 = arith.constant 0 : i32
    return %c0_i32, %c0_i32_0 : i32, i32
  }
  func.func @transform_8(%arg0: i32) -> (i32, i32) {
    %c0_i32 = arith.constant 0 : i32
    %c0_i32_0 = arith.constant 0 : i32
    %c0_i32_1 = arith.constant 0 : i32
    return %c0_i32, %c0_i32_0 : i32, i32
  }
  func.func @transform_9(%arg0: i32) -> (i32, i32, i32) {
    %c0_i32 = arith.constant 0 : i32
    %c0_i32_0 = arith.constant 0 : i32
    %c0_i32_1 = arith.constant 0 : i32
    return %arg0, %c0_i32, %c0_i32_0 : i32, i32, i32
  }
}

</mosaic_0001>

<bundles_post_ra>
// kernel: tile.13
= control target key start
LH: loop header
LB: loop body
LE: loop exit
PB: predicated region body
PF: predicated region fallthrough
CT: control target
= control target key end

     0   :  { %s46_s0 = inlined_call_operand.vmem [shape: f32[6], index: 0, kind: input, shape index: {}]   ;;  %s47_s1 = inlined_call_operand.vmem [shape: f32[36,6], index: 1, kind: output, shape index: {}]  }
   0x1   :  { %v4_v0 = vld [vmem:[%s46_s0] ss:$0 sm:$0xff] }
   0x2   :  { %5 = vst [vmem:[%s47_s1] sm:$0xff] %v4_v0  ;;  %14 = vst [vmem:[%s47_s1 + $0x8] sm:$0xff] %v4_v0 }
   0x3   :  { %15 = vst [vmem:[%s47_s1 + $0x10] sm:$0xff] %v4_v0  ;;  %16 = vst [vmem:[%s47_s1 + $0x18] sm:$0xff] %v4_v0 }
   0x4   :  { %17 = vst [vmem:[%s47_s1 + $0x20] sm:$0xff] %v4_v0 }

// kernel: tile.14
= control target key start
LH: loop header
LB: loop body
LE: loop exit
PB: predicated region body
PF: predicated region fallthrough
CT: control target
= control target key end

     0   :  { %vm9_vm0 = vcmask 15360   ;;  %s319_s12 = smov 126   ;;  %s320_s13 = smov 114   ;;  %vm3_vm1 = vcmask 48128   ;;  %vm13_vm2 = vcmask 31744   ;;  %vm16_vm3 = vcmask 1048560   ;;  %s481_s0 = inlined_call_operand.vmem [shape: f32[36,6], index: 0, kind: input, shape index: {}]   ;;  %s482_s1 = inlined_call_operand.vmem [shape: f32[1,216], index: 1, kind: output, shape index: {}]  }
   0x1   :  { %v247_v0 = vld [vmem:[%s481_s0 + $0x15] sm:$0x1]   ;;  %v250_v3 = vld [vmem:[%s481_s0 + $0x13] sm:$0x1]   ;;  %v249_v4 = vld [vmem:[%s481_s0 + $0x14] sm:$0x1]  }
   0x2   :  { %v248_v1 = vld [vmem:[%s481_s0 + $0x15] sm:$0x1]   ;;  %26 = vrot.lane.b32.xlu1 %v250_v3, %s320_s13  ;;  %v251_v5 = vld [vmem:[%s481_s0 + $0x12] sm:$0x1]   ;;  %s321_s18 = smov 120   ;;  %s322_s19 = smov 108  }
   0x3   :  { %v10_v2 = vsel %vm9_vm0, %v248_v1, %v247_v0  ;;  %v252_v6 = vld [vmem:[%s481_s0 + $0x11] sm:$0x1]   ;;  %v253_v7 = vld [vmem:[%s481_s0 + $0x10] sm:$0x1]   ;;  %s323_s24 = smov 102   ;;  %s324_s25 = smov 96  }
   0x4   :  { %11 = vrot.lane.b32.xlu0 %v10_v2, %s319_s12  ;;  %v254_v8 = vld [vmem:[%s481_s0 + $0xf] sm:$0x1]   ;;  %v255_v9 = vld [vmem:[%s481_s0 + $0xe] sm:$0x1]   ;;  %s325_s30 = smov 90   ;;  %s326_s2 = smov 84  }
   0x5   :  { %v256_v10 = vld [vmem:[%s481_s0 + $0x23] sm:$0x1]   ;;  %v257_v11 = vld [vmem:[%s481_s0 + $0xd] sm:$0x1]   ;;  %s327_s7 = smov 82   ;;  %s328_s8 = smov 78  }
   0x6   :  { %32 = vrot.lane.b32.xlu1 %v251_v5, %s322_s19  ;;  %v2_v12 = vld [vmem:[%s481_s0] sm:$0x1]   ;;  %v258_v13 = vld [vmem:[%s481_s0 + $0x22] sm:$0x1]   ;;  %v259_v14 = vld [vmem:[%s481_s0 + $0xc] sm:$0x1]  }
   0x7   :  { %4 = vst.msk [vmem:[#allocation0] sm:$0x1] %vm3_vm1, %v2_v12   ;;  %s329_s15 = smov 76   ;;  %s330_s16 = smov 72   ;;  %v260_v15 = vld [vmem:[%s481_s0 + $0x21] sm:$0x1]  }
   0x8   :  { %20 = vrot.lane.b32.xlu0 %v249_v4, %s321_s18  ;;  %v261_v16 = vld [vmem:[%s481_s0 + $0xb] sm:$0x1]   ;;  %s331_s21 = smov 70   ;;  %s332_s22 = smov 66   ;;  %v262_v17 = vld [vmem:[%s481_s0 + $0x20] sm:$0x1]  }
   0x9   :  { %v263_v18 = vld [vmem:[%s481_s0 + $0xa] sm:$0x1]   ;;  %s333_s27 = smov 64   ;;  %s334_s28 = smov 60   ;;  %v264_v19 = vld [vmem:[%s481_s0 + $0x1f] sm:$0x1]  }
   0xa   :  { %44 = vrot.lane.b32.xlu1 %v253_v7, %s324_s25  ;;  %v265_v20 = vld [vmem:[%s481_s0 + $0x9] sm:$0x1]   ;;  %s335_s4 = smov 58   ;;  %s336_s5 = smov 54   ;;  %v266_v21 = vld [vmem:[%s481_s0 + $0x1e] sm:$0x1]  }
   0xb   :  { %v267_v22 = vld [vmem:[%s481_s0 + $0x8] sm:$0x1]   ;;  %s337_s10 = smov 52   ;;  %s338_s11 = smov 48   ;;  %v268_v23 = vld [vmem:[%s481_s0 + $0x1d] sm:$0x1]  }
   0xc   :  { %38 = vrot.lane.b32.xlu0 %v252_v6, %s323_s24  ;;  %v269_v24 = vld [vmem:[%s481_s0 + $0x7] sm:$0x1]   ;;  %s340_s17 = smov 42   ;;  %v270_v25 = vld [vmem:[%s481_s0 + $0x1c] sm:$0x1]   ;;  %s342_s23 = smov 36  }
   0xd   :  { %v271_v26 = vld [vmem:[%s481_s0 + $0x6] sm:$0x1]   ;;  %v272_v27 = vld [vmem:[%s481_s0 + $0x1b] sm:$0x1]   ;;  %v273_v28 = vld [vmem:[%s481_s0 + $0x5] sm:$0x1]  }
   0xe   :  { %56 = vrot.lane.b32.xlu1 %v255_v9, %s326_s2  ;;  %s344_s29 = smov 30   ;;  %v274_v29 = vld [vmem:[%s481_s0 + $0x1a] sm:$0x1]   ;;  %v275_v30 = vld [vmem:[%s481_s0 + $0x4] sm:$0x1]   ;;  %s346_s6 = smov 24  }
   0xf   :  { %v276_v31 = vld [vmem:[%s481_s0 + $0x19] sm:$0x1]   ;;  %v277_v32 = vld [vmem:[%s481_s0 + $0x3] sm:$0x1]   ;;  %s348_s12 = smov 18   ;;  %s350_s18 = smov 12  }
  0x10   :  { %50 = vrot.lane.b32.xlu0 %v254_v8, %s325_s30  ;;  %v278_v33 = vld [vmem:[%s481_s0 + $0x18] sm:$0x1]   ;;  %v279_v34 = vld [vmem:[%s481_s0 + $0x2] sm:$0x1]   ;;  %v280_v35 = vld [vmem:[%s481_s0 + $0x17] sm:$0x1]  }
  0x11   :  { %v281_v36 = vld [vmem:[%s481_s0 + $0x1] sm:$0x1]   ;;  %s352_s24 = smov 6   ;;  %v282_v37 = vld [vmem:[%s481_s0 + $0x16] sm:$0x1]   ;;  %s353_s0 = smov 4  }
  0x12   :  { %69 = vrot.lane.b32.xlu1 %v257_v11, %s328_s8  ;;  %vm22_vm4 = vcmask 1032128   ;;  %vm28_vm5 = vcmask 982928   ;;  %vm34_vm6 = vcmask 933728   ;;  %vm40_vm7 = vcmask 884528  }
  0x13   :  { %vm46_vm8 = vcmask 835328   ;;  %vm52_vm9 = vcmask 786128   ;;  %vm58_vm10 = vcmask 736928   ;;  %vm64_vm11 = vcmask 720528  }
  0x14   :  { %62 = vrot.lane.b32.xlu0 %v256_v10, %s327_s7  ;;  %vm71_vm12 = vcmask 687728   ;;  %vm77_vm13 = vcmask 671328   ;;  %vm84_vm14 = vcmask 638528   ;;  %vm90_vm15 = vcmask 622128  }
  0x15   :  { %vm97_vm0 = vcmask 589328   ;;  %vm103_vm1 = vcmask 572928  }
  0x16   :  { %82 = vrot.lane.b32.xlu1 %v259_v14, %s330_s16  ;;  %s339_s16 = smov 46  }
  0x18   :  { %75 = vrot.lane.b32.xlu0 %v258_v13, %s329_s15 }
  0x1a   :  { %95 = vrot.lane.b32.xlu1 %v261_v16, %s332_s22  ;;  %s341_s22 = smov 40  }
  0x1c   :  { %88 = vrot.lane.b32.xlu0 %v260_v15, %s331_s21 }
  0x1e   :  { %108 = vrot.lane.b32.xlu1 %v263_v18, %s334_s28  ;;  %s343_s28 = smov 34  }
  0x20   :  { %101 = vrot.lane.b32.xlu0 %v262_v17, %s333_s27 }
  0x22   :  { %121 = vrot.lane.b32.xlu1 %v265_v20, %s336_s5  ;;  %s345_s5 = smov 28  }
  0x24   :  { %114 = vrot.lane.b32.xlu0 %v264_v19, %s335_s4 }
  0x26   :  { %134 = vrot.lane.b32.xlu1 %v267_v22, %s338_s11  ;;  %s347_s11 = smov 22  }
  0x28   :  { %127 = vrot.lane.b32.xlu0 %v266_v21, %s337_s10 }
  0x2a   :  { %147 = vrot.lane.b32.xlu1 %v269_v24, %s340_s17  ;;  %s349_s17 = smov 16  }
  0x2c   :  { %140 = vrot.lane.b32.xlu0 %v268_v23, %s339_s16 }
  0x2e   :  { %160 = vrot.lane.b32.xlu1 %v271_v26, %s342_s23  ;;  %s351_s23 = smov 10  }
  0x30   :  { %153 = vrot.lane.b32.xlu0 %v270_v25, %s341_s22 }
  0x32   :  { %173 = vrot.lane.b32.xlu1 %v273_v28, %s344_s29 }
  0x34   :  { %166 = vrot.lane.b32.xlu0 %v272_v27, %s343_s28 }
  0x36   :  { %186 = vrot.lane.b32.xlu1 %v275_v30, %s346_s6 }
  0x38   :  { %179 = vrot.lane.b32.xlu0 %v274_v29, %s345_s5 }
  0x3a   :  { %199 = vrot.lane.b32.xlu1 %v277_v32, %s348_s12 }
  0x3c   :  { %192 = vrot.lane.b32.xlu0 %v276_v31, %s347_s11 }
  0x3e   :  { %212 = vrot.lane.b32.xlu1 %v279_v34, %s350_s18 }
  0x40   :  { %205 = vrot.lane.b32.xlu0 %v278_v33, %s349_s17 }
  0x42   :  { %225 = vrot.lane.b32.xlu1 %v281_v36, %s352_s24 }
  0x44   :  { %218 = vrot.lane.b32.xlu0 %v280_v35, %s351_s23 }
  0x48   :  { %231 = vrot.lane.b32.xlu0 %v282_v37, %s353_s0 }
  0x74   :  { %v27_v39 = vpop.permute.xlu1 %26  }
  0x76   :  { %v12_v38 = vpop.permute.xlu0 %11  }
  0x77   :  { %15 = vst.msk [vmem:[#allocation0 + $0x8] sm:$0x1] %vm13_vm2, %v12_v38   ;;  %vm110_vm2 = vcmask 540128  }
  0x78   :  { %17 = vst.msk [vmem:[#allocation0] sm:$0x1] %vm16_vm3, %v12_v38   ;;  %v33_v41 = vpop.permute.xlu1 %32   ;;  %vm116_vm3 = vcmask 523728  }
  0x7a   :  { %v21_v40 = vpop.permute.xlu0 %20  }
  0x7b   :  { %23 = vst.msk [vmem:[#allocation0] sm:$0x1] %vm22_vm4, %v21_v40   ;;  %vm123_vm4 = vcmask 490928  }
  0x7c   :  { %29 = vst.msk [vmem:[#allocation0] sm:$0x1] %vm28_vm5, %v27_v39   ;;  %v45_v43 = vpop.permute.xlu1 %44   ;;  %vm129_vm5 = vcmask 474528  }
  0x7d   :  { %35 = vst.msk [vmem:[#allocation0] sm:$0x1] %vm34_vm6, %v33_v41   ;;  %vm136_vm6 = vcmask 441728  }
  0x7e   :  { %v39_v42 = vpop.permute.xlu0 %38  }
  0x7f   :  { %41 = vst.msk [vmem:[#allocation0] sm:$0x1] %vm40_vm7, %v39_v42   ;;  %vm142_vm7 = vcmask 425328  }
  0x80   :  { %47 = vst.msk [vmem:[#allocation0] sm:$0x1] %vm46_vm8, %v45_v43   ;;  %v57_v45 = vpop.permute.xlu1 %56   ;;  %vm149_vm8 = vcmask 392528  }
  0x82   :  { %v51_v44 = vpop.permute.xlu0 %50  }
  0x83   :  { %53 = vst.msk [vmem:[#allocation0] sm:$0x1] %vm52_vm9, %v51_v44   ;;  %vm155_vm9 = vcmask 376128  }
  0x84   :  { %59 = vst.msk [vmem:[#allocation0] sm:$0x1] %vm58_vm10, %v57_v45   ;;  %v70_v47 = vpop.permute.xlu1 %69   ;;  %vm162_vm10 = vcmask 343328  }
  0x85   :  { %72 = vst.msk [vmem:[#allocation0] sm:$0x1] %vm71_vm12, %v70_v47   ;;  %vm175_vm12 = vcmask 294128  }
  0x86   :  { %v63_v46 = vpop.permute.xlu0 %62  }
  0x87   :  { %66 = vst.msk [vmem:[#allocation0 + $0x8] sm:$0x1] %vm64_vm11, %v63_v46   ;;  %vm168_vm11 = vcmask 326928  }
  0x88   :  { %v83_v49 = vpop.permute.xlu1 %82  }
  0x89   :  { %85 = vst.msk [vmem:[#allocation0] sm:$0x1] %vm84_vm14, %v83_v49   ;;  %vm188_vm14 = vcmask 244928  }
  0x8a   :  { %v76_v48 = vpop.permute.xlu0 %75  }
  0x8b   :  { %79 = vst.msk [vmem:[#allocation0 + $0x8] sm:$0x1] %vm77_vm13, %v76_v48   ;;  %vm181_vm13 = vcmask 277728  }
  0x8c   :  { %v96_v51 = vpop.permute.xlu1 %95  }
  0x8d   :  { %98 = vst.msk [vmem:[#allocation0] sm:$0x1] %vm97_vm0, %v96_v51   ;;  %vm201_vm0 = vcmask 195728  }
  0x8e   :  { %v89_v50 = vpop.permute.xlu0 %88  }
  0x8f   :  { %92 = vst.msk [vmem:[#allocation0 + $0x8] sm:$0x1] %vm90_vm15, %v89_v50   ;;  %vm194_vm15 = vcmask 228528  }
  0x90   :  { %v109_v53 = vpop.permute.xlu1 %108  }
  0x91   :  { %111 = vst.msk [vmem:[#allocation0] sm:$0x1] %vm110_vm2, %v109_v53   ;;  %vm214_vm2 = vcmask 146528  }
  0x92   :  { %v102_v52 = vpop.permute.xlu0 %101  }
  0x93   :  { %105 = vst.msk [vmem:[#allocation0 + $0x8] sm:$0x1] %vm103_vm1, %v102_v52   ;;  %vm207_vm1 = vcmask 179328  }
  0x94   :  { %v122_v55 = vpop.permute.xlu1 %121  }
  0x95   :  { %124 = vst.msk [vmem:[#allocation0] sm:$0x1] %vm123_vm4, %v122_v55   ;;  %vm227_vm4 = vcmask 97328  }
  0x96   :  { %v115_v54 = vpop.permute.xlu0 %114  }
  0x97   :  { %118 = vst.msk [vmem:[#allocation0 + $0x8] sm:$0x1] %vm116_vm3, %v115_v54   ;;  %vm220_vm3 = vcmask 130128  }
  0x98   :  { %v135_v57 = vpop.permute.xlu1 %134  }
  0x99   :  { %137 = vst.msk [vmem:[#allocation0] sm:$0x1] %vm136_vm6, %v135_v57  }
  0x9a   :  { %v128_v56 = vpop.permute.xlu0 %127  }
  0x9b   :  { %131 = vst.msk [vmem:[#allocation0 + $0x8] sm:$0x1] %vm129_vm5, %v128_v56   ;;  %vm233_vm5 = vcmask 80928  }
  0x9c   :  { %v148_v59 = vpop.permute.xlu1 %147  }
  0x9d   :  { %150 = vst.msk [vmem:[#allocation0] sm:$0x1] %vm149_vm8, %v148_v59  }
  0x9e   :  { %v141_v58 = vpop.permute.xlu0 %140  }
  0x9f   :  { %144 = vst.msk [vmem:[#allocation0 + $0x8] sm:$0x1] %vm142_vm7, %v141_v58  }
  0xa0   :  { %v161_v61 = vpop.permute.xlu1 %160  }
  0xa1   :  { %163 = vst.msk [vmem:[#allocation0] sm:$0x1] %vm162_vm10, %v161_v61  }
  0xa2   :  { %v154_v60 = vpop.permute.xlu0 %153  }
  0xa3   :  { %157 = vst.msk [vmem:[#allocation0 + $0x8] sm:$0x1] %vm155_vm9, %v154_v60  }
  0xa4   :  { %v174_v63 = vpop.permute.xlu1 %173  }
  0xa5   :  { %176 = vst.msk [vmem:[#allocation0] sm:$0x1] %vm175_vm12, %v174_v63  }
  0xa6   :  { %v167_v62 = vpop.permute.xlu0 %166  }
  0xa7   :  { %170 = vst.msk [vmem:[#allocation0 + $0x8] sm:$0x1] %vm168_vm11, %v167_v62  }
  0xa8   :  { %v187_v1 = vpop.permute.xlu1 %186  }
  0xa9   :  { %189 = vst.msk [vmem:[#allocation0] sm:$0x1] %vm188_vm14, %v187_v1  }
  0xaa   :  { %v180_v0 = vpop.permute.xlu0 %179  }
  0xab   :  { %183 = vst.msk [vmem:[#allocation0 + $0x8] sm:$0x1] %vm181_vm13, %v180_v0  }
  0xac   :  { %v200_v3 = vpop.permute.xlu1 %199  }
  0xad   :  { %202 = vst.msk [vmem:[#allocation0] sm:$0x1] %vm201_vm0, %v200_v3  }
  0xae   :  { %v193_v2 = vpop.permute.xlu0 %192  }
  0xaf   :  { %196 = vst.msk [vmem:[#allocation0 + $0x8] sm:$0x1] %vm194_vm15, %v193_v2  }
  0xb0   :  { %v213_v5 = vpop.permute.xlu1 %212  }
  0xb1   :  { %215 = vst.msk [vmem:[#allocation0] sm:$0x1] %vm214_vm2, %v213_v5  }
  0xb2   :  { %v206_v4 = vpop.permute.xlu0 %205  }
  0xb3   :  { %209 = vst.msk [vmem:[#allocation0 + $0x8] sm:$0x1] %vm207_vm1, %v206_v4  }
  0xb4   :  { %v226_v7 = vpop.permute.xlu1 %225  }
  0xb5   :  { %228 = vst.msk [vmem:[#allocation0] sm:$0x1] %vm227_vm4, %v226_v7  }
  0xb6   :  { %v219_v6 = vpop.permute.xlu0 %218  }
  0xb7   :  { %222 = vst.msk [vmem:[#allocation0 + $0x8] sm:$0x1] %vm220_vm3, %v219_v6  }
  0xba   :  { %v232_v8 = vpop.permute.xlu0 %231  }
  0xbb   :  { %235 = vst.msk [vmem:[#allocation0 + $0x8] sm:$0x1] %vm233_vm5, %v232_v8  }
  0xbc   :  { %v239_v9 = vld [vmem:[#allocation0] sm:$0x1] }
  0xbd   :  { %241 = vst [vmem:[%s482_s1] sm:$0x1] %v239_v9 }
  0xc2   :  { %v243_v10 = vld [vmem:[#allocation0 + $0x8] sm:$0x1] }
  0xc3   :  { %283 = vst [vmem:[%s482_s1 + $0x1] sm:$0x1] %v243_v10 }

// kernel: tile.18
= control target key start
LH: loop header
LB: loop body
LE: loop exit
PB: predicated region body
PF: predicated region fallthrough
CT: control target
= control target key end

     0   :  { %s34_s0 = inlined_call_operand.vmem [shape: f32[6], index: 0, kind: input, shape index: {}]   ;;  %s35_s1 = inlined_call_operand.vmem [shape: f32[18,6], index: 1, kind: output, shape index: {}]  }
   0x1   :  { %v4_v0 = vld [vmem:[%s34_s0] ss:$0 sm:$0xff] }
   0x2   :  { %5 = vst [vmem:[%s35_s1] sm:$0xff] %v4_v0  ;;  %10 = vst [vmem:[%s35_s1 + $0x8] sm:$0xff] %v4_v0 }
   0x3   :  { %11 = vst [vmem:[%s35_s1 + $0x10] sm:$0xff] %v4_v0 }

// kernel: tile.19
= control target key start
LH: loop header
LB: loop body
LE: loop exit
PB: predicated region body
PF: predicated region fallthrough
CT: control target
= control target key end

     0   :  { %s147_s10 = smov 102   ;;  %s148_s11 = smov 90   ;;  %vm3_vm0 = vcmask 48128   ;;  %vm9_vm1 = vcmask 884528   ;;  %vm15_vm2 = vcmask 835328   ;;  %vm21_vm3 = vcmask 786128   ;;  %s231_s0 = inlined_call_operand.vmem [shape: f32[18,6], index: 0, kind: input, shape index: {}]   ;;  %s232_s1 = inlined_call_operand.vmem [shape: f32[1,108], index: 1, kind: output, shape index: {}]  }
   0x1   :  { %v113_v0 = vld [vmem:[%s231_s0 + $0x11] sm:$0x1]   ;;  %v115_v1 = vld [vmem:[%s231_s0 + $0xf] sm:$0x1]   ;;  %v114_v2 = vld [vmem:[%s231_s0 + $0x10] sm:$0x1]  }
   0x2   :  { %7 = vrot.lane.b32.xlu0 %v113_v0, %s147_s10  ;;  %19 = vrot.lane.b32.xlu1 %v115_v1, %s148_s11  ;;  %v116_v3 = vld [vmem:[%s231_s0 + $0xe] sm:$0x1]   ;;  %s149_s16 = smov 96   ;;  %s150_s17 = smov 84   ;;  %v117_v4 = vld [vmem:[%s231_s0 + $0xd] sm:$0x1]  }
   0x3   :  { %v118_v5 = vld [vmem:[%s231_s0 + $0xc] sm:$0x1]   ;;  %v2_v6 = vld [vmem:[%s231_s0] sm:$0x1]   ;;  %s151_s24 = smov 78   ;;  %s152_s25 = smov 72  }
   0x4   :  { %v119_v7 = vld [vmem:[%s231_s0 + $0xb] sm:$0x1]   ;;  %v120_v8 = vld [vmem:[%s231_s0 + $0xa] sm:$0x1]   ;;  %4 = vst.msk [vmem:[#allocation0] sm:$0x1] %vm3_vm0, %v2_v6  }
   0x5   :  { %s153_s30 = smov 66   ;;  %s154_s2 = smov 60   ;;  %v121_v9 = vld [vmem:[%s231_s0 + $0x9] sm:$0x1]   ;;  %v122_v10 = vld [vmem:[%s231_s0 + $0x8] sm:$0x1]  }
   0x6   :  { %13 = vrot.lane.b32.xlu0 %v114_v2, %s149_s16  ;;  %25 = vrot.lane.b32.xlu1 %v116_v3, %s150_s17  ;;  %s155_s7 = smov 54   ;;  %s156_s8 = smov 48   ;;  %v123_v11 = vld [vmem:[%s231_s0 + $0x7] sm:$0x1]   ;;  %v124_v12 = vld [vmem:[%s231_s0 + $0x6] sm:$0x1]  }
   0x7   :  { %s157_s13 = smov 42   ;;  %s158_s14 = smov 36   ;;  %v125_v13 = vld [vmem:[%s231_s0 + $0x5] sm:$0x1]   ;;  %v126_v14 = vld [vmem:[%s231_s0 + $0x4] sm:$0x1]  }
   0x8   :  { %s159_s19 = smov 30   ;;  %s160_s20 = smov 24   ;;  %v127_v15 = vld [vmem:[%s231_s0 + $0x3] sm:$0x1]   ;;  %v128_v16 = vld [vmem:[%s231_s0 + $0x2] sm:$0x1]  }
   0x9   :  { %s162_s26 = smov 12   ;;  %v129_v17 = vld [vmem:[%s231_s0 + $0x1] sm:$0x1]   ;;  %s163_s0 = smov 6   ;;  %vm27_vm4 = vcmask 736928   ;;  %vm33_vm5 = vcmask 687728  }
   0xa   :  { %31 = vrot.lane.b32.xlu0 %v117_v4, %s151_s24  ;;  %37 = vrot.lane.b32.xlu1 %v118_v5, %s152_s25  ;;  %s161_s25 = smov 18   ;;  %vm39_vm6 = vcmask 638528   ;;  %vm45_vm7 = vcmask 589328   ;;  %vm51_vm8 = vcmask 540128   ;;  %vm57_vm9 = vcmask 490928  }
   0xb   :  { %vm63_vm10 = vcmask 441728   ;;  %vm69_vm11 = vcmask 392528   ;;  %vm75_vm12 = vcmask 343328   ;;  %vm81_vm13 = vcmask 294128  }
   0xc   :  { %vm87_vm14 = vcmask 244928   ;;  %vm93_vm15 = vcmask 195728   ;;  %vm99_vm0 = vcmask 146528  }
   0xe   :  { %43 = vrot.lane.b32.xlu0 %v119_v7, %s153_s30  ;;  %49 = vrot.lane.b32.xlu1 %v120_v8, %s154_s2 }
  0x12   :  { %55 = vrot.lane.b32.xlu0 %v121_v9, %s155_s7  ;;  %61 = vrot.lane.b32.xlu1 %v122_v10, %s156_s8 }
  0x16   :  { %67 = vrot.lane.b32.xlu0 %v123_v11, %s157_s13  ;;  %73 = vrot.lane.b32.xlu1 %v124_v12, %s158_s14 }
  0x1a   :  { %79 = vrot.lane.b32.xlu0 %v125_v13, %s159_s19  ;;  %85 = vrot.lane.b32.xlu1 %v126_v14, %s160_s20 }
  0x1e   :  { %91 = vrot.lane.b32.xlu0 %v127_v15, %s161_s25  ;;  %97 = vrot.lane.b32.xlu1 %v128_v16, %s162_s26 }
  0x22   :  { %103 = vrot.lane.b32.xlu0 %v129_v17, %s163_s0 }
  0x74   :  { %v8_v18 = vpop.permute.xlu0 %7   ;;  %v20_v19 = vpop.permute.xlu1 %19  }
  0x75   :  { %10 = vst.msk [vmem:[#allocation0] sm:$0x1] %vm9_vm1, %v8_v18   ;;  %vm105_vm1 = vcmask 97328  }
  0x78   :  { %v14_v20 = vpop.permute.xlu0 %13   ;;  %v26_v21 = vpop.permute.xlu1 %25  }
  0x79   :  { %16 = vst.msk [vmem:[#allocation0] sm:$0x1] %vm15_vm2, %v14_v20  }
  0x7a   :  { %22 = vst.msk [vmem:[#allocation0] sm:$0x1] %vm21_vm3, %v20_v19  }
  0x7b   :  { %28 = vst.msk [vmem:[#allocation0] sm:$0x1] %vm27_vm4, %v26_v21  }
  0x7c   :  { %v32_v22 = vpop.permute.xlu0 %31   ;;  %v38_v23 = vpop.permute.xlu1 %37  }
  0x7d   :  { %34 = vst.msk [vmem:[#allocation0] sm:$0x1] %vm33_vm5, %v32_v22  }
  0x7e   :  { %40 = vst.msk [vmem:[#allocation0] sm:$0x1] %vm39_vm6, %v38_v23  }
  0x80   :  { %v44_v24 = vpop.permute.xlu0 %43   ;;  %v50_v25 = vpop.permute.xlu1 %49  }
  0x81   :  { %46 = vst.msk [vmem:[#allocation0] sm:$0x1] %vm45_vm7, %v44_v24  }
  0x82   :  { %52 = vst.msk [vmem:[#allocation0] sm:$0x1] %vm51_vm8, %v50_v25  }
  0x84   :  { %v56_v26 = vpop.permute.xlu0 %55   ;;  %v62_v27 = vpop.permute.xlu1 %61  }
  0x85   :  { %58 = vst.msk [vmem:[#allocation0] sm:$0x1] %vm57_vm9, %v56_v26  }
  0x86   :  { %64 = vst.msk [vmem:[#allocation0] sm:$0x1] %vm63_vm10, %v62_v27  }
  0x88   :  { %v68_v28 = vpop.permute.xlu0 %67   ;;  %v74_v29 = vpop.permute.xlu1 %73  }
  0x89   :  { %70 = vst.msk [vmem:[#allocation0] sm:$0x1] %vm69_vm11, %v68_v28  }
  0x8a   :  { %76 = vst.msk [vmem:[#allocation0] sm:$0x1] %vm75_vm12, %v74_v29  }
  0x8c   :  { %v80_v30 = vpop.permute.xlu0 %79   ;;  %v86_v31 = vpop.permute.xlu1 %85  }
  0x8d   :  { %82 = vst.msk [vmem:[#allocation0] sm:$0x1] %vm81_vm13, %v80_v30  }
  0x8e   :  { %88 = vst.msk [vmem:[#allocation0] sm:$0x1] %vm87_vm14, %v86_v31  }
  0x90   :  { %v92_v32 = vpop.permute.xlu0 %91   ;;  %v98_v33 = vpop.permute.xlu1 %97  }
  0x91   :  { %94 = vst.msk [vmem:[#allocation0] sm:$0x1] %vm93_vm15, %v92_v32  }
  0x92   :  { %100 = vst.msk [vmem:[#allocation0] sm:$0x1] %vm99_vm0, %v98_v33  }
  0x94   :  { %v104_v34 = vpop.permute.xlu0 %103  }
  0x95   :  { %106 = vst.msk [vmem:[#allocation0] sm:$0x1] %vm105_vm1, %v104_v34  }
  0x9c   :  { %v110_v35 = vld [vmem:[#allocation0] sm:$0x1] }
  0x9d   :  { %112 = vst [vmem:[%s232_s1] sm:$0x1] %v110_v35 }

// kernel: vadnet_forward.1
= control target key start
LH: loop header
LB: loop body
LE: loop exit
PB: predicated region body
PF: predicated region fallthrough
CT: control target
= control target key end

     0   :  { %v11377_v19 = vmov 1983009808   ;;  %v15420_v21 = vlaneseq  ;;  %vm7035_vm0 = vcmask 130048   ;;  %vm8695_vm1 = vcmask 1043456   ;;  %s15410_s1 = inlined_call_operand.vmem [shape: bf16[1680,216], index: 1, kind: input, shape index: {}]   ;;  %s15411_s0 = inlined_call_operand.vmem [shape: f32[2,1680], index: 0, kind: input, shape index: {}]   ;;  %s15412_s3 = inlined_call_operand.vmem [shape: bf16[216,108], index: 3, kind: input, shape index: {}]   ;;  %s15413_s2 = inlined_call_operand.vmem [shape: f32[1,216], index: 2, kind: input, shape index: {}]   ;;  %s15414_s5 = inlined_call_operand.vmem [shape: bf16[108,22], index: 5, kind: input, shape index: {}]   ;;  %s15415_s4 = inlined_call_operand.vmem [shape: f32[1,108], index: 4, kind: input, shape index: {}]   ;;  %s15416_s6 = inlined_call_operand.vmem [shape: f32[1,22], index: 6, kind: input, shape index: {}]   ;;  %s15417_s7 = inlined_call_operand.vmem [shape: f32[1,22], index: 7, kind: input, shape index: {}]   ;;  %s15418_s8 = inlined_call_operand.<no memory space> [shape: f32[1,1], index: 8, kind: input, shape index: {}]   ;;  %s15419_s9 = inlined_call_operand.vmem [shape: f32[1,1,256], index: 9, kind: output, shape index: {}]  }
   0x1   :  { %v10393_v0 = vld [vmem:[%s15410_s1 + $0x204] ss:$8 sps:$4 sm:$0xff]   ;;  %v10395_v1 = vld [vmem:[%s15410_s1 + $0x200] ss:$8 sps:$4 sm:$0xff]   ;;  %v10396_v2 = vld [vmem:[%s15410_s1 + $0x214] ss:$8 sps:$4 sm:$0xff]   ;;  %v1064_v20 = vunpack.c.l.s4 %v11377_v19 }
   0x2   :  { %7470 = vmatprep.subr.bf16.mxu0 %v10393_v0  ;;  %v10398_v3 = vld [vmem:[%s15410_s1 + $0x210] ss:$8 sps:$4 sm:$0xff]   ;;  %v10399_v4 = vld [vmem:[%s15410_s1 + $0x224] ss:$8 sps:$4 sm:$0xff]   ;;  %v10401_v5 = vld [vmem:[%s15410_s1 + $0x220] ss:$8 sps:$4 sm:$0xff]  }
   0x3   :  { %7471 = vmatpush1.bf16.msra.mxu0 %v10395_v1  ;;  %v10402_v6 = vld [vmem:[%s15410_s1 + $0x234] ss:$8 sps:$4 sm:$0xff]   ;;  %v10404_v7 = vld [vmem:[%s15410_s1 + $0x230] ss:$8 sps:$4 sm:$0xff]   ;;  %v10405_v8 = vld [vmem:[%s15410_s1 + $0x244] ss:$8 sps:$4 sm:$0xff]   ;;  %v1065_v27 = vunpack.c.0.s8 %v1064_v20 }
   0x4   :  { %7472 = vmatprep.subr.bf16.mxu0 %v10396_v2  ;;  %v10407_v9 = vld [vmem:[%s15410_s1 + $0x240] ss:$8 sps:$4 sm:$0xff]   ;;  %v10426_v10 = vld [vmem:[%s15410_s1 + $0x4] ss:$8 sps:$4 sm:$0xff]   ;;  %v10408_v12 = vld [vmem:[%s15410_s1 + $0x254] ss:$8 sps:$4 sm:$0xff]  }
   0x5   :  { %v10428_v11 = vld [vmem:[%s15410_s1] ss:$8 sps:$4 sm:$0xff]   ;;  %7084 = vmatprep.subr.bf16.mxu1 %v10426_v10  ;;  %v10432_v13 = vld [vmem:[%s15410_s1 + $0x14] ss:$8 sps:$4 sm:$0xff]   ;;  %v10434_v14 = vld [vmem:[%s15410_s1 + $0x10] ss:$8 sps:$4 sm:$0xff]  }
   0x6   :  { %7085 = vmatpush1.bf16.msra.mxu1 %v10428_v11  ;;  %v10410_v15 = vld [vmem:[%s15410_s1 + $0x250] ss:$8 sps:$4 sm:$0xff]   ;;  %v10411_v16 = vld [vmem:[%s15410_s1 + $0x264] ss:$8 sps:$4 sm:$0xff]   ;;  %v10440_v18 = vld [vmem:[%s15410_s1 + $0x20] ss:$8 sps:$4 sm:$0xff]  }
   0x7   :  { %7473 = vmatpush1.bf16.msra.mxu0 %v10398_v3  ;;  %7086 = vmatprep.subr.bf16.mxu1 %v10432_v13  ;;  %v10438_v17 = vld [vmem:[%s15410_s1 + $0x24] ss:$8 sps:$4 sm:$0xff]   ;;  %v10413_v22 = vld [vmem:[%s15410_s1 + $0x260] ss:$8 sps:$4 sm:$0xff]   ;;  %v10444_v23 = vld [vmem:[%s15410_s1 + $0x34] ss:$8 sps:$4 sm:$0xff]  }
   0x8   :  { %7474 = vmatprep.subr.bf16.mxu0 %v10399_v4  ;;  %v10414_v24 = vld [vmem:[%s15410_s1 + $0x274] ss:$8 sps:$4 sm:$0xff]   ;;  %v10416_v25 = vld [vmem:[%s15410_s1 + $0x270] ss:$8 sps:$4 sm:$0xff]   ;;  %v11503_v28 = vshrl.u32 %v15420_v21, 7  ;;  %vm8646_vm2 = vcmask 719872  }
   0x9   :  { %v10446_v26 = vld [vmem:[%s15410_s1 + $0x30] ss:$8 sps:$4 sm:$0xff]   ;;  %v10417_v29 = vld [vmem:[%s15410_s1 + $0x284] ss:$8 sps:$4 sm:$0xff]   ;;  %v10452_v31 = vld [vmem:[%s15410_s1 + $0x40] ss:$8 sps:$4 sm:$0xff]  }
   0xa   :  { %7087 = vmatpush1.bf16.msra.mxu1 %v10434_v14  ;;  %15426 = vst [vmem:[#allocation3_spill] sm:$0xff] %v11503_v28  ;;  %v10450_v30 = vld [vmem:[%s15410_s1 + $0x44] ss:$8 sps:$4 sm:$0xff]   ;;  %v10419_v32 = vld [vmem:[%s15410_s1 + $0x280] ss:$8 sps:$4 sm:$0xff]   ;;  %v11521_v34 = vsub.s32 %v1065_v27, %v11503_v28  ;;  %vm9019_vm3 = vcmask 1045504  }
   0xb   :  { %7475 = vmatpush1.bf16.msra.mxu0 %v10401_v5  ;;  %7088 = vmatprep.subr.bf16.mxu1 %v10438_v17  ;;  %v10456_v33 = vld [vmem:[%s15410_s1 + $0x54] ss:$8 sps:$4 sm:$0xff]   ;;  %v10459_v36 = vld [vmem:[%s15411_s0 + $0x8] ss:$28 sps:$4 sm:$0xff]   ;;  %v10458_v39 = vld [vmem:[%s15410_s1 + $0x50] ss:$8 sps:$4 sm:$0xff]  }
   0xc   :  { %7476 = vmatprep.subr.bf16.mxu0 %v10402_v6  ;;  %v10420_v35 = vld [vmem:[%s15410_s1 + $0x294] ss:$8 sps:$4 sm:$0xff]   ;;  %v11539_v40 = vrot.slane %v10459_v36, %v11521_v34  ;;  %v10468_v42 = vld [vmem:[%s15411_s0 + $0xb0] ss:$28 sps:$4 sm:$0xff]   ;;  %v10425_v49 = vld [vmem:[%s15410_s1 + $0x2a0] ss:$8 sps:$4 sm:$0xff]  }
   0xd   :  { %v10462_v37 = vld [vmem:[%s15411_s0 + $0x40] ss:$28 sps:$4 sm:$0xff]   ;;  %v10465_v38 = vld [vmem:[%s15411_s0 + $0x78] ss:$28 sps:$4 sm:$0xff]   ;;  %v10423_v44 = vld [vmem:[%s15410_s1 + $0x2a4] ss:$8 sps:$4 sm:$0xff]   ;;  %v11559_v47 = vrot.slane %v10468_v42, %v11521_v34 }
   0xe   :  { %7089 = vmatpush1.bf16.msra.mxu1 %v10440_v18  ;;  %v11542_v41 = vrot.slane %v10462_v37, %v11521_v34  ;;  %v10422_v43 = vld [vmem:[%s15410_s1 + $0x290] ss:$8 sps:$4 sm:$0xff]   ;;  %v11554_v45 = vrot.slane %v10465_v38, %v11521_v34  ;;  %v10474_v48 = vld [vmem:[%s15410_s1 + $0x64] ss:$8 sps:$4 sm:$0xff]   ;;  %v10429_v50 = vld [vmem:[%s15410_s1 + $0x2b4] ss:$8 sps:$4 sm:$0xff]  }
   0xf   :  { %7477 = vmatpush1.bf16.msra.mxu0 %v10404_v7  ;;  %7090 = vmatprep.subr.bf16.mxu1 %v10444_v23  ;;  %v10476_v52 = vld [vmem:[%s15410_s1 + $0x60] ss:$8 sps:$4 sm:$0xff]   ;;  %v10477_v53 = vld [vmem:[%s15410_s1 + $0x74] ss:$8 sps:$4 sm:$0xff]   ;;  %v10479_v55 = vld [vmem:[%s15410_s1 + $0x70] ss:$8 sps:$4 sm:$0xff]  }
  0x10   :  { %7478 = vmatprep.subr.bf16.mxu0 %v10405_v8  ;;  %v1128_v46 = vcombine.high %v11539_v40, %v11542_v41  ;;  %v1254_v51 = vcombine.high %v11554_v45, %v11559_v47  ;;  %v10431_v56 = vld [vmem:[%s15410_s1 + $0x2b0] ss:$8 sps:$4 sm:$0xff]   ;;  %v10435_v57 = vld [vmem:[%s15410_s1 + $0x2c4] ss:$8 sps:$4 sm:$0xff]   ;;  %v10437_v59 = vld [vmem:[%s15410_s1 + $0x2c0] ss:$8 sps:$4 sm:$0xff]   ;;  %v1253_v17 = vcombine.low %v11554_v45, %v11559_v47 }
  0x11   :  { %v10491_v58 = vld [vmem:[%s15410_s1 + $0x84] ss:$8 sps:$4 sm:$0xff]   ;;  %v10441_v60 = vld [vmem:[%s15410_s1 + $0x2d4] ss:$8 sps:$4 sm:$0xff]   ;;  %v10493_v61 = vld [vmem:[%s15410_s1 + $0x80] ss:$8 sps:$4 sm:$0xff]  }
  0x12   :  { %7091 = vmatpush1.bf16.msra.mxu1 %v10446_v26  ;;  %v5544_v54 = vpack.c.bf16 %v1254_v51, %v1128_v46  ;;  %v10494_v62 = vld [vmem:[%s15410_s1 + $0x94] ss:$8 sps:$4 sm:$0xff]   ;;  %v10443_v63 = vld [vmem:[%s15410_s1 + $0x2d0] ss:$8 sps:$4 sm:$0xff]   ;;  %v10480_v0 = vld [vmem:[%s15411_s0 + $0xe8] ss:$28 sps:$4 sm:$0xff]  }
  0x13   :  { %7479 = vmatpush1.bf16.msra.mxu0 %v10407_v9  ;;  %7092 = vmatprep.subr.bf16.mxu1 %v10450_v30  ;;  %v10447_v1 = vld [vmem:[%s15410_s1 + $0x2e4] ss:$8 sps:$4 sm:$0xff]   ;;  %v10482_v2 = vld [vmem:[%s15411_s0 + $0x120] ss:$28 sps:$4 sm:$0xff]   ;;  %v10496_v3 = vld [vmem:[%s15410_s1 + $0x90] ss:$8 sps:$4 sm:$0xff]   ;;  %v1357_v9 = vrot.slane %v10480_v0, %v11521_v34 }
  0x14   :  { %7480 = vmatprep.subr.bf16.mxu0 %v10408_v12  ;;  %7502 = vmatprep.mubr.bf16.mxu0 %v5544_v54  ;;  %v10484_v4 = vld [vmem:[%s15411_s0 + $0x158] ss:$28 sps:$4 sm:$0xff]   ;;  %v10486_v5 = vld [vmem:[%s15411_s0 + $0x190] ss:$28 sps:$4 sm:$0xff]   ;;  %v10449_v7 = vld [vmem:[%s15410_s1 + $0x2e0] ss:$8 sps:$4 sm:$0xff]   ;;  %v1371_v12 = vrot.slane %v10482_v2, %v11521_v34 }
  0x15   :  { %v10508_v6 = vld [vmem:[%s15410_s1 + $0xa4] ss:$8 sps:$4 sm:$0xff]   ;;  %v10453_v8 = vld [vmem:[%s15410_s1 + $0x2f4] ss:$8 sps:$4 sm:$0xff]   ;;  %v10510_v10 = vld [vmem:[%s15410_s1 + $0xa0] ss:$8 sps:$4 sm:$0xff]   ;;  %v1483_v13 = vrot.slane %v10484_v4, %v11521_v34  ;;  %v1497_v14 = vrot.slane %v10486_v5, %v11521_v34 }
  0x16   :  { %7093 = vmatpush1.bf16.msra.mxu1 %v10452_v31  ;;  %v10511_v11 = vld [vmem:[%s15410_s1 + $0xb4] ss:$8 sps:$4 sm:$0xff]   ;;  %v10503_v20 = vld [vmem:[%s15411_s0 + $0x270] ss:$28 sps:$4 sm:$0xff]   ;;  %v10471_v30 = vld [vmem:[%s15410_s1 + $0x300] ss:$8 sps:$4 sm:$0xff]  }
  0x17   :  { %7481 = vmatpush1.bf16.msra.mxu0 %v10410_v15  ;;  %7094 = vmatprep.subr.bf16.mxu1 %v10456_v33  ;;  %v10497_v15 = vld [vmem:[%s15411_s0 + $0x1c8] ss:$28 sps:$4 sm:$0xff]   ;;  %v10499_v18 = vld [vmem:[%s15411_s0 + $0x200] ss:$28 sps:$4 sm:$0xff]   ;;  %v10501_v19 = vld [vmem:[%s15411_s0 + $0x238] ss:$28 sps:$4 sm:$0xff]   ;;  %v1506_v26 = vcombine.high %v1483_v13, %v1497_v14  ;;  %v1749_v36 = vrot.slane %v10503_v20, %v11521_v34 }
  0x18   :  { %7482 = vmatprep.subr.bf16.mxu0 %v10411_v16  ;;  %v1127_v16 = vcombine.low %v11539_v40, %v11542_v41  ;;  %v10455_v23 = vld [vmem:[%s15410_s1 + $0x2f0] ss:$8 sps:$4 sm:$0xff]   ;;  %v10525_v27 = vld [vmem:[%s15410_s1 + $0xc4] ss:$8 sps:$4 sm:$0xff]   ;;  %v10490_v31 = vld [vmem:[%s15410_s1 + $0x314] ss:$8 sps:$4 sm:$0xff]   ;;  %v1623_v33 = vrot.slane %v10499_v18, %v11521_v34  ;;  %v1379_v40 = vcombine.low %v1357_v9, %v1371_v12 }
  0x19   :  { %v10527_v37 = vld [vmem:[%s15410_s1 + $0xc0] ss:$8 sps:$4 sm:$0xff]   ;;  %v10528_v38 = vld [vmem:[%s15410_s1 + $0xd4] ss:$8 sps:$4 sm:$0xff]   ;;  %v10488_v41 = vld [vmem:[%s15410_s1 + $0x310] ss:$8 sps:$4 sm:$0xff]  }
  0x1a   :  { %7095 = vmatpush1.bf16.msra.mxu1 %v10458_v39  ;;  %v10514_v42 = vld [vmem:[%s15411_s0 + $0x2a8] ss:$28 sps:$4 sm:$0xff]   ;;  %v10516_v47 = vld [vmem:[%s15411_s0 + $0x2e0] ss:$28 sps:$4 sm:$0xff]   ;;  %v10535_v2 = vld [vmem:[%s15411_s0 + $0x3f8] ss:$28 sps:$4 sm:$0xff]  }
  0x1b   :  { %7483 = vmatpush1.bf16.msra.mxu0 %v10413_v22  ;;  %7096 = vmatprep.subr.bf16.mxu1 %v10474_v48  ;;  %v10513_v22 = vld [vmem:[%s15410_s1 + $0xb0] ss:$8 sps:$4 sm:$0xff]   ;;  %v10507_v46 = vld [vmem:[%s15410_s1 + $0x324] ss:$8 sps:$4 sm:$0xff]   ;;  %v10558_v18 = vld [vmem:[%s15410_s1 + $0x354] ss:$8 sps:$4 sm:$0xff]  }
  0x1c   :  { %7484 = vmatprep.subr.bf16.mxu0 %v10414_v24  ;;  %v10473_v24 = vld [vmem:[%s15410_s1 + $0x304] ss:$8 sps:$4 sm:$0xff]   ;;  %v10530_v48 = vld [vmem:[%s15410_s1 + $0xd0] ss:$8 sps:$4 sm:$0xff]   ;;  %vm8970_vm4 = vcmask 883712   ;;  %vm9227_vm5 = vcmask 179200  }
  0x1d   :  { %v10542_v51 = vld [vmem:[%s15410_s1 + $0xe4] ss:$8 sps:$4 sm:$0xff]   ;;  %v10547_v4 = vld [vmem:[%s15410_s1 + $0xf0] ss:$8 sps:$4 sm:$0xff]   ;;  %vm15345_vm6 = vmpackc.low %vm9227_vm5, %vm9227_vm5 }
  0x1e   :  { %7097 = vmatpush1.bf16.msra.mxu1 %v10476_v52  ;;  %v10505_v52 = vld [vmem:[%s15410_s1 + $0x320] ss:$8 sps:$4 sm:$0xff]   ;;  %v10565_v20 = vld [vmem:[%s15411_s0 + $0x70] ss:$28 sps:$4 sm:$0xff]  }
  0x1f   :  { %7485 = vmatpush1.bf16.msra.mxu0 %v10416_v25  ;;  %7098 = vmatprep.subr.bf16.mxu1 %v10477_v53  ;;  %v1380_v25 = vcombine.high %v1357_v9, %v1371_v12  ;;  %v11757_v12 = vrot.slane %v10535_v2, %v11521_v34 }
  0x20   :  { %7486 = vmatprep.subr.bf16.mxu0 %v10417_v29  ;;  %v5543_v29 = vpack.c.bf16 %v1253_v17, %v1127_v16  ;;  %v10539_v16 = vld [vmem:[%s15410_s1 + $0x340] ss:$8 sps:$4 sm:$0xff]   ;;  %v10562_v17 = vld [vmem:[%s15411_s0 + $0x38] ss:$28 sps:$4 sm:$0xff]  }
  0x21   :  { %v5558_v39 = vpack.c.bf16 %v1506_v26, %v1380_v25  ;;  %v10548_v25 = vld [vmem:[%s15411_s0 + $0x468] ss:$28 sps:$4 sm:$0xff]   ;;  %v10550_v26 = vld [vmem:[%s15411_s0 + $0x4a0] ss:$28 sps:$4 sm:$0xff]  }
  0x22   :  { %7099 = vmatpush1.bf16.msra.mxu1 %v10479_v55  ;;  %v11714_v55 = vrot.slane %v10514_v42, %v11521_v34 }
  0x23   :  { %7487 = vmatpush1.bf16.msra.mxu0 %v10419_v32  ;;  %7100 = vmatprep.subr.bf16.mxu1 %v10491_v58  ;;  %v1609_v32 = vrot.slane %v10497_v15, %v11521_v34  ;;  %v10545_v58 = vld [vmem:[%s15410_s1 + $0xf4] ss:$8 sps:$4 sm:$0xff]  }
  0x24   :  { %7488 = vmatprep.subr.bf16.mxu0 %v10420_v35  ;;  %v1735_v35 = vrot.slane %v10501_v19, %v11521_v34 }
  0x26   :  { %7101 = vmatpush1.bf16.msra.mxu1 %v10493_v61  ;;  %v1758_v45 = vcombine.high %v1735_v35, %v1749_v36  ;;  %v1757_v0 = vcombine.low %v1735_v35, %v1749_v36  ;;  %v1195_v35 = vrot.slane %v10565_v20, %v11521_v34  ;;  %v10592_v20 = vld [vmem:[%s15411_s0 + $0x660] ss:$28 sps:$4 sm:$0xff]  }
  0x27   :  { %7489 = vmatpush1.bf16.msra.mxu0 %v10422_v43  ;;  %7102 = vmatprep.subr.bf16.mxu1 %v10494_v62  ;;  %v1505_v43 = vcombine.low %v1483_v13, %v1497_v14  ;;  %v10531_v62 = vld [vmem:[%s15411_s0 + $0x388] ss:$28 sps:$4 sm:$0xff]   ;;  %v10559_v14 = vld [vmem:[%s15411_s0] ss:$28 sps:$4 sm:$0xff]  }
  0x28   :  { %7490 = vmatprep.subr.bf16.mxu0 %v10423_v44  ;;  %v1632_v44 = vcombine.high %v1609_v32, %v1623_v33  ;;  %v1069_v19 = vrot.slane %v10559_v14, %v11521_v34  ;;  %v10600_v14 = vld [vmem:[%s15410_s1 + $0x374] ss:$8 sps:$4 sm:$0xff]  }
  0x29   :  { %v5557_v53 = vpack.c.bf16 %v1505_v43, %v1379_v40 }
  0x2a   :  { %7103 = vmatpush1.bf16.msra.mxu1 %v10496_v3  ;;  %v5572_v54 = vpack.c.bf16 %v1758_v45, %v1632_v44  ;;  %v10537_v3 = vld [vmem:[%s15411_s0 + $0x430] ss:$28 sps:$4 sm:$0xff]   ;;  %v10571_v45 = vld [vmem:[%s15411_s0 + $0x548] ss:$28 sps:$4 sm:$0xff]  }
  0x2b   :  { %7491 = vmatpush1.bf16.msra.mxu0 %v10425_v49  ;;  %7104 = vmatprep.subr.bf16.mxu1 %v10508_v6  ;;  %v10518_v49 = vld [vmem:[%s15411_s0 + $0x318] ss:$28 sps:$4 sm:$0xff]   ;;  %v11760_v13 = vrot.slane %v10537_v3, %v11521_v34 }
  0x2c   :  { %7492 = vmatprep.subr.bf16.mxu0 %v10429_v50  ;;  %v10520_v50 = vld [vmem:[%s15411_s0 + $0x350] ss:$28 sps:$4 sm:$0xff]  }
  0x2d   :  { %v2001_v61 = vrot.slane %v10520_v50, %v11521_v34  ;;  %v2379_v50 = vrot.slane %v10550_v26, %v11521_v34  ;;  %v10601_v26 = vld [vmem:[%s15411_s0 + $0x1c0] ss:$28 sps:$4 sm:$0xff]  }
  0x2e   :  { %7105 = vmatpush1.bf16.msra.mxu1 %v10510_v10  ;;  %v11751_v10 = vrot.slane %v10531_v62, %v11521_v34 }
  0x2f   :  { %7493 = vmatpush1.bf16.msra.mxu0 %v10431_v56  ;;  %7106 = vmatprep.subr.bf16.mxu1 %v10511_v11  ;;  %v10524_v56 = vld [vmem:[%s15410_s1 + $0x334] ss:$8 sps:$4 sm:$0xff]  }
  0x30   :  { %7494 = vmatprep.subr.bf16.mxu0 %v10435_v57  ;;  %v10544_v57 = vld [vmem:[%s15410_s1 + $0xe0] ss:$8 sps:$4 sm:$0xff]  }
  0x32   :  { %7107 = vmatpush1.bf16.msra.mxu1 %v10513_v22  ;;  %v10568_v22 = vld [vmem:[%s15411_s0 + $0xa8] ss:$28 sps:$4 sm:$0xff]  }
  0x33   :  { %7495 = vmatpush1.bf16.msra.mxu0 %v10437_v59  ;;  %7108 = vmatprep.subr.bf16.mxu1 %v10525_v27  ;;  %v1875_v59 = vrot.slane %v10516_v47, %v11521_v34  ;;  %v10552_v27 = vld [vmem:[%s15411_s0 + $0x4d8] ss:$28 sps:$4 sm:$0xff]   ;;  %v1209_v36 = vrot.slane %v10568_v22, %v11521_v34  ;;  %v10579_v47 = vld [vmem:[%s15410_s1 + $0x360] ss:$8 sps:$4 sm:$0xff]  }
  0x34   :  { %7496 = vmatprep.subr.bf16.mxu0 %v10441_v60  ;;  %v1987_v60 = vrot.slane %v10518_v49, %v11521_v34  ;;  %v2365_v49 = vrot.slane %v10548_v25, %v11521_v34  ;;  %v10594_v22 = vld [vmem:[%s15411_s0 + $0x698] ss:$28 sps:$4 sm:$0xff]  }
  0x35   :  { %v1884_v5 = vcombine.high %v11714_v55, %v1875_v59  ;;  %v1217_v40 = vcombine.low %v1195_v35, %v1209_v36 }
  0x36   :  { %7109 = vmatpush1.bf16.msra.mxu1 %v10527_v37  ;;  %v2010_v6 = vcombine.high %v1987_v60, %v2001_v61 }
  0x37   :  { %7497 = vmatpush1.bf16.msra.mxu0 %v10443_v63  ;;  %7110 = vmatprep.subr.bf16.mxu1 %v10528_v38  ;;  %v1631_v63 = vcombine.low %v1609_v32, %v1623_v33  ;;  %v2262_v33 = vcombine.high %v11757_v12, %v11760_v13 }
  0x38   :  { %7498 = vmatprep.subr.bf16.mxu0 %v10447_v1  ;;  %v10533_v1 = vld [vmem:[%s15411_s0 + $0x3c0] ss:$28 sps:$4 sm:$0xff]   ;;  %v5586_v15 = vpack.c.bf16 %v2010_v6, %v1884_v5 }
  0x39   :  { %v5571_v9 = vpack.c.bf16 %v1757_v0, %v1631_v63  ;;  %v11754_v11 = vrot.slane %v10533_v1, %v11521_v34  ;;  %v11845_v1 = vrot.slane %v10571_v45, %v11521_v34 }
  0x3a   :  { %7111 = vmatpush1.bf16.msra.mxu1 %v10530_v48  ;;  %v10581_v48 = vld [vmem:[%s15410_s1 + $0x364] ss:$8 sps:$4 sm:$0xff]  }
  0x3b   :  { %7499 = vmatpush1.bf16.msra.mxu0 %v10449_v7  ;;  %7112 = vmatprep.subr.bf16.mxu1 %v10542_v51  ;;  %v10522_v7 = vld [vmem:[%s15410_s1 + $0x330] ss:$8 sps:$4 sm:$0xff]   ;;  %v2136_v32 = vcombine.high %v11751_v10, %v11754_v11  ;;  %v2491_v51 = vrot.slane %v10552_v27, %v11521_v34 }
  0x3c   :  { %7500 = vmatprep.subr.bf16.mxu0 %v10453_v8  ;;  %v10541_v8 = vld [vmem:[%s15410_s1 + $0x344] ss:$8 sps:$4 sm:$0xff]   ;;  %v10603_v27 = vld [vmem:[%s15411_s0 + $0x1f8] ss:$28 sps:$4 sm:$0xff]  }
  0x3d   :  { %v5600_v42 = vpack.c.bf16 %v2262_v33, %v2136_v32  ;;  %v1573_v32 = vrot.slane %v10601_v26, %v11521_v34  ;;  %v10641_v26 = vld [vmem:[%s15411_s0 + $0x3b8] ss:$28 sps:$4 sm:$0xff]  }
  0x3e   :  { %7113 = vmatpush1.bf16.msra.mxu1 %v10544_v57  ;;  %v2135_v57 = vcombine.low %v11751_v10, %v11754_v11 }
  0x3f   :  { %7501 = vmatpush1.bf16.msra.mxu0 %v10455_v23  ;;  %7114 = vmatprep.subr.bf16.mxu1 %v10545_v58  ;;  %v1883_v23 = vcombine.low %v11714_v55, %v1875_v59  ;;  %v10582_v55 = vld [vmem:[%s15411_s0 + $0xe0] ss:$28 sps:$4 sm:$0xff]   ;;  %v2261_v58 = vcombine.low %v11757_v12, %v11760_v13  ;;  %v10586_v59 = vld [vmem:[%s15411_s0 + $0x150] ss:$28 sps:$4 sm:$0xff]  }
  0x40   :  { %7663 = vmatprep.subr.bf16.mxu0 %v10473_v24  ;;  %v2009_v24 = vcombine.low %v1987_v60, %v2001_v61  ;;  %v10588_v60 = vld [vmem:[%s15411_s0 + $0x188] ss:$28 sps:$4 sm:$0xff]   ;;  %v2388_v61 = vcombine.high %v2365_v49, %v2379_v50  ;;  %v1321_v63 = vrot.slane %v10582_v55, %v11521_v34  ;;  %v1447_v3 = vrot.slane %v10586_v59, %v11521_v34  ;;  %v10598_v13 = vld [vmem:[%s15410_s1 + $0x370] ss:$8 sps:$4 sm:$0xff]  }
  0x41   :  { %v10619_v55 = vld [vmem:[%s15410_s1 + $0x384] ss:$8 sps:$4 sm:$0xff]   ;;  %v10622_v59 = vld [vmem:[%s15411_s0 + $0x2d8] ss:$28 sps:$4 sm:$0xff]  }
  0x42   :  { %7503 = vmatmul.mubr.bf16.vlgmr.msra.gmra.mrb[0].mxu0 %v5543_v29  ;;  %7115 = vmatpush1.bf16.msra.mxu1 %v10547_v4  ;;  %v10554_v29 = vld [vmem:[%s15411_s0 + $0x510] ss:$28 sps:$4 sm:$0xff]   ;;  %v1461_v4 = vrot.slane %v10588_v60, %v11521_v34 }
  0x43   :  { %7664 = vmatpush1.bf16.msra.mxu0 %v10471_v30  ;;  %7512 = vmatprep.mubr.bf16.mxu0 %v5558_v39  ;;  %v10556_v30 = vld [vmem:[%s15410_s1 + $0x350] ss:$8 sps:$4 sm:$0xff]   ;;  %v1218_v39 = vcombine.high %v1195_v35, %v1209_v36  ;;  %v1587_v35 = vrot.slane %v10603_v27, %v11521_v34 }
  0x44   :  { %7665 = vmatprep.subr.bf16.mxu0 %v10490_v31  ;;  %v1083_v31 = vrot.slane %v10562_v17, %v11521_v34  ;;  %v1470_v10 = vcombine.high %v1447_v3, %v1461_v4  ;;  %v1469_v11 = vcombine.low %v1447_v3, %v1461_v4  ;;  %v10624_v60 = vld [vmem:[%s15411_s0 + $0x310] ss:$28 sps:$4 sm:$0xff]   ;;  %v1839_v4 = vrot.slane %v10622_v59, %v11521_v34 }
  0x46   :  { %v1092_v37 = vcombine.high %v1069_v19, %v1083_v31  ;;  %v1091_v38 = vcombine.low %v1069_v19, %v1083_v31  ;;  %v10590_v19 = vld [vmem:[%s15411_s0 + $0x628] ss:$28 sps:$4 sm:$0xff]  }
  0x47   :  { %7666 = vmatpush1.bf16.msra.mxu0 %v10488_v41  ;;  %v5585_v41 = vpack.c.bf16 %v2009_v24, %v1883_v23  ;;  %v10596_v23 = vld [vmem:[%s15411_s0 + $0x6d0] ss:$28 sps:$4 sm:$0xff]  }
  0x48   :  { %7667 = vmatprep.subr.bf16.mxu0 %v10507_v46  ;;  %v5540_v43 = vpack.c.bf16 %v1218_v39, %v1092_v37  ;;  %v5539_v44 = vpack.c.bf16 %v1217_v40, %v1091_v38  ;;  %v10573_v46 = vld [vmem:[%s15411_s0 + $0x580] ss:$28 sps:$4 sm:$0xff]   ;;  %v11897_v38 = vrot.slane %v10590_v19, %v11521_v34  ;;  %v11900_v39 = vrot.slane %v10592_v20, %v11521_v34  ;;  %v10636_v20 = vld [vmem:[%s15410_s1 + $0x390] ss:$8 sps:$4 sm:$0xff]  }
  0x49   :  { %v11848_v2 = vrot.slane %v10573_v46, %v11521_v34  ;;  %v2995_v40 = vrot.slane %v10594_v22, %v11521_v34  ;;  %v10609_v46 = vld [vmem:[%s15411_s0 + $0x708] ss:$28 sps:$4 sm:$0xff]   ;;  %v10638_v22 = vld [vmem:[%s15410_s1 + $0x394] ss:$8 sps:$4 sm:$0xff]  }
  0x4a   :  { %7513 = vmatmul.mubr.bf16.gmra.mrb[4].mxu0 %v5557_v53  ;;  %v10575_v53 = vld [vmem:[%s15411_s0 + $0x5b8] ss:$28 sps:$4 sm:$0xff]   ;;  %7116 = vmatprep.mubr.bf16.mxu1 %v5540_v43 }
  0x4b   :  { %7522 = vmatprep.mubr.bf16.mxu0 %v5572_v54  ;;  %7668 = vmatpush1.bf16.msra.mxu0 %v10505_v52  ;;  %v2505_v52 = vrot.slane %v10554_v29, %v11521_v34  ;;  %v10577_v54 = vld [vmem:[%s15411_s0 + $0x5f0] ss:$28 sps:$4 sm:$0xff]   ;;  %v11853_v5 = vrot.slane %v10575_v53, %v11521_v34  ;;  %v2640_v24 = vcombine.high %v11845_v1, %v11848_v2 }
  0x4c   :  { %7669 = vmatprep.subr.bf16.mxu0 %v10524_v56  ;;  %7117 = vmatmul.mubr.bf16.vlgmr.msra.gmra.mrb[0].mxu1 %v5539_v44  ;;  %v10584_v56 = vld [vmem:[%s15411_s0 + $0x118] ss:$28 sps:$4 sm:$0xff]   ;;  %v11856_v6 = vrot.slane %v10577_v54, %v11521_v34  ;;  %v10605_v29 = vld [vmem:[%s15411_s0 + $0x230] ss:$28 sps:$4 sm:$0xff]   ;;  %v1595_v44 = vcombine.low %v1573_v32, %v1587_v35 }
  0x4d   :  { %v2514_v62 = vcombine.high %v2491_v51, %v2505_v52  ;;  %v1335_v0 = vrot.slane %v10584_v56, %v11521_v34  ;;  %v1699_v36 = vrot.slane %v10605_v29, %v11521_v34  ;;  %v2892_v56 = vcombine.high %v11897_v38, %v11900_v39 }
  0x4e   :  { %v2766_v25 = vcombine.high %v11853_v5, %v11856_v6 }
  0x4f   :  { %7670 = vmatpush1.bf16.msra.mxu0 %v10522_v7  ;;  %v1344_v7 = vcombine.high %v1321_v63, %v1335_v0  ;;  %v5614_v12 = vpack.c.bf16 %v2514_v62, %v2388_v61  ;;  %v11938_v62 = vrot.slane %v10609_v46, %v11521_v34  ;;  %v10649_v46 = vld [vmem:[%s15411_s0 + $0x900] ss:$28 sps:$4 sm:$0xff]  }
  0x50   :  { %7671 = vmatprep.subr.bf16.mxu0 %v10541_v8  ;;  %v1343_v8 = vcombine.low %v1321_v63, %v1335_v0  ;;  %v5628_v33 = vpack.c.bf16 %v2766_v25, %v2640_v24  ;;  %v10626_v0 = vld [vmem:[%s15411_s0 + $0x348] ss:$28 sps:$4 sm:$0xff]   ;;  %v10639_v25 = vld [vmem:[%s15411_s0 + $0x380] ss:$28 sps:$4 sm:$0xff]   ;;  %v12018_v59 = vrot.slane %v10649_v46, %v11521_v34 }
  0x51   :  { %v5554_v17 = vpack.c.bf16 %v1470_v10, %v1344_v7  ;;  %v1965_v7 = vrot.slane %v10626_v0, %v11521_v34  ;;  %v10628_v10 = vld [vmem:[%s15411_s0 + $0x7e8] ss:$28 sps:$4 sm:$0xff]   ;;  %v10660_v0 = vld [vmem:[%s15411_s0 + $0x498] ss:$28 sps:$4 sm:$0xff]  }
  0x52   :  { %7523 = vmatmul.mubr.bf16.gmra.mrb[8].mxu0 %v5571_v9  ;;  %v5599_v9 = vpack.c.bf16 %v2261_v58, %v2135_v57  ;;  %v10620_v58 = vld [vmem:[%s15411_s0 + $0x2a0] ss:$28 sps:$4 sm:$0xff]   ;;  %v10685_v46 = vld [vmem:[%s15411_s0 + $0xa88] ss:$28 sps:$4 sm:$0xff]  }
  0x53   :  { %7532 = vmatprep.mubr.bf16.mxu0 %v5586_v15  ;;  %7672 = vmatpush1.bf16.msra.mxu0 %v10539_v16  ;;  %v2387_v15 = vcombine.low %v2365_v49, %v2379_v50  ;;  %v2513_v16 = vcombine.low %v2491_v51, %v2505_v52  ;;  %v10615_v49 = vld [vmem:[%s15411_s0 + $0x7b0] ss:$28 sps:$4 sm:$0xff]   ;;  %v10617_v50 = vld [vmem:[%s15410_s1 + $0x380] ss:$8 sps:$4 sm:$0xff]   ;;  %v2639_v51 = vcombine.low %v11845_v1, %v11848_v2 }
  0x54   :  { %7673 = vmatprep.subr.bf16.mxu0 %v10558_v18  ;;  %v5553_v18 = vpack.c.bf16 %v1469_v11, %v1343_v8  ;;  %7126 = vmatprep.mubr.bf16.mxu1 %v5554_v17  ;;  %v2765_v52 = vcombine.low %v11853_v5, %v11856_v6  ;;  %v3261_v2 = vrot.slane %v10615_v49, %v11521_v34  ;;  %v10630_v11 = vld [vmem:[%s15411_s0 + $0x820] ss:$28 sps:$4 sm:$0xff]   ;;  %v10651_v49 = vld [vmem:[%s15411_s0 + $0x938] ss:$28 sps:$4 sm:$0xff]  }
  0x55   :  { %v5613_v31 = vpack.c.bf16 %v2513_v16, %v2387_v15  ;;  %v1825_v3 = vrot.slane %v10620_v58, %v11521_v34  ;;  %v1951_v6 = vrot.slane %v10624_v60, %v11521_v34  ;;  %v10634_v15 = vld [vmem:[%s15411_s0 + $0x890] ss:$28 sps:$4 sm:$0xff]   ;;  %v2891_v16 = vcombine.low %v11897_v38, %v11900_v39 }
  0x56   :  { %7127 = vmatmul.mubr.bf16.gmra.mrb[4].mxu1 %v5553_v18  ;;  %v5627_v61 = vpack.c.bf16 %v2765_v52, %v2639_v51  ;;  %v2091_v38 = vrot.slane %v10641_v26, %v11521_v34  ;;  %v12021_v60 = vrot.slane %v10651_v49, %v11521_v34 }
  0x57   :  { %7674 = vmatpush1.bf16.msra.mxu0 %v10556_v30  ;;  %v10607_v30 = vld [vmem:[%s15411_s0 + $0x268] ss:$28 sps:$4 sm:$0xff]   ;;  %v1848_v8 = vcombine.high %v1825_v3, %v1839_v4 }
  0x58   :  { %7675 = vmatprep.subr.bf16.mxu0 %v10581_v48  ;;  %v1713_v37 = vrot.slane %v10607_v30, %v11521_v34  ;;  %v10613_v48 = vld [vmem:[%s15411_s0 + $0x778] ss:$28 sps:$4 sm:$0xff]   ;;  %v3373_v30 = vrot.slane %v10628_v10, %v11521_v34 }
  0x59   :  { %v3247_v1 = vrot.slane %v10613_v48, %v11521_v34 }
  0x5a   :  { %7533 = vmatmul.mubr.bf16.gmra.mrb[12].mxu0 %v5585_v41  ;;  %v3009_v41 = vrot.slane %v10596_v23, %v11521_v34  ;;  %v1722_v43 = vcombine.high %v1699_v36, %v1713_v37  ;;  %v1721_v45 = vcombine.low %v1699_v36, %v1713_v37  ;;  %v3513_v36 = vrot.slane %v10634_v15, %v11521_v34 }
  0x5b   :  { %7542 = vmatprep.mubr.bf16.mxu0 %v5600_v42  ;;  %7676 = vmatpush1.bf16.msra.mxu0 %v10579_v47  ;;  %v1596_v42 = vcombine.high %v1573_v32, %v1587_v35  ;;  %v10611_v47 = vld [vmem:[%s15411_s0 + $0x740] ss:$28 sps:$4 sm:$0xff]   ;;  %v3270_v19 = vcombine.high %v3247_v1, %v3261_v2  ;;  %v10643_v32 = vld [vmem:[%s15411_s0 + $0x3f0] ss:$28 sps:$4 sm:$0xff]   ;;  %v2077_v37 = vrot.slane %v10639_v25, %v11521_v34 }
  0x5c   :  { %7677 = vmatprep.subr.bf16.mxu0 %v10600_v14  ;;  %v5567_v54 = vpack.c.bf16 %v1721_v45, %v1595_v44  ;;  %v3018_v57 = vcombine.high %v2995_v40, %v3009_v41  ;;  %v11941_v63 = vrot.slane %v10611_v47, %v11521_v34  ;;  %v10632_v14 = vld [vmem:[%s15411_s0 + $0x858] ss:$28 sps:$4 sm:$0xff]   ;;  %v3017_v17 = vcombine.low %v2995_v40, %v3009_v41  ;;  %v10647_v45 = vld [vmem:[%s15411_s0 + $0x8c8] ss:$28 sps:$4 sm:$0xff]  }
  0x5d   :  { %v5568_v53 = vpack.c.bf16 %v1722_v43, %v1596_v42  ;;  %v3499_v35 = vrot.slane %v10632_v14, %v11521_v34  ;;  %v2203_v39 = vrot.slane %v10643_v32, %v11521_v34  ;;  %v3269_v42 = vcombine.low %v3247_v1, %v3261_v2  ;;  %v10662_v1 = vld [vmem:[%s15411_s0 + $0x4d0] ss:$28 sps:$4 sm:$0xff]   ;;  %v10664_v2 = vld [vmem:[%s15411_s0 + $0x508] ss:$28 sps:$4 sm:$0xff]   ;;  %v10679_v32 = vld [vmem:[%s15411_s0 + $0x578] ss:$28 sps:$4 sm:$0xff]  }
  0x5e   :  { %v5642_v5 = vpack.c.bf16 %v3018_v57, %v2892_v56  ;;  %v3144_v18 = vcombine.high %v11938_v62, %v11941_v63  ;;  %v5641_v27 = vpack.c.bf16 %v3017_v17, %v2891_v16  ;;  %v3143_v41 = vcombine.low %v11938_v62, %v11941_v63  ;;  %v10658_v62 = vld [vmem:[%s15411_s0 + $0x460] ss:$28 sps:$4 sm:$0xff]   ;;  %v10670_v17 = vld [vmem:[%s15411_s0 + $0xa18] ss:$28 sps:$4 sm:$0xff]  }
  0x5f   :  { %7678 = vmatpush1.bf16.msra.mxu0 %v10598_v13  ;;  %7136 = vmatprep.mubr.bf16.mxu1 %v5568_v53  ;;  %v1973_v13 = vcombine.low %v1951_v6, %v1965_v7  ;;  %v2100_v43 = vcombine.high %v2077_v37, %v2091_v38  ;;  %v2099_v44 = vcombine.low %v2077_v37, %v2091_v38  ;;  %v10655_v53 = vld [vmem:[%s15410_s1 + $0x3a0] ss:$8 sps:$4 sm:$0xff]  }
  0x60   :  { %7137 = vmatmul.mubr.bf16.gmra.mrb[8].mxu1 %v5567_v54  ;;  %7679 = vmatprep.subr.bf16.mxu0 %v10619_v55  ;;  %v5656_v29 = vpack.c.bf16 %v3270_v19, %v3144_v18  ;;  %v3522_v52 = vcombine.high %v3499_v35, %v3513_v36  ;;  %v10657_v54 = vld [vmem:[%s15410_s1 + $0x3a4] ss:$8 sps:$4 sm:$0xff]   ;;  %v5655_v57 = vpack.c.bf16 %v3269_v42, %v3143_v41  ;;  %v10668_v16 = vld [vmem:[%s15411_s0 + $0x9e0] ss:$28 sps:$4 sm:$0xff]   ;;  %v10674_v19 = vld [vmem:[%s15410_s1 + $0x3b0] ss:$8 sps:$4 sm:$0xff]  }
  0x61   :  { %v12015_v58 = vrot.slane %v10647_v45, %v11521_v34  ;;  %v10672_v18 = vld [vmem:[%s15411_s0 + $0xa50] ss:$28 sps:$4 sm:$0xff]   ;;  %v12068_v26 = vrot.slane %v10668_v16, %v11521_v34  ;;  %v10683_v37 = vld [vmem:[%s15411_s0 + $0x5e8] ss:$28 sps:$4 sm:$0xff]   ;;  %v2595_v41 = vrot.slane %v10679_v32, %v11521_v34 }
  0x62   :  { %7543 = vmatmul.mubr.bf16.gmra.mrb[16].mxu0 %v5599_v9  ;;  %v1847_v9 = vcombine.low %v1825_v3, %v1839_v4  ;;  %v2329_v4 = vrot.slane %v10658_v62, %v11521_v34  ;;  %v10696_v62 = vld [vmem:[%s15411_s0 + $0x620] ss:$28 sps:$4 sm:$0xff]  }
  0x63   :  { %7552 = vmatprep.mubr.bf16.mxu0 %v5614_v12  ;;  %7680 = vmatpush1.bf16.msra.mxu0 %v10617_v50  ;;  %v1974_v12 = vcombine.high %v1951_v6, %v1965_v7  ;;  %v10653_v50 = vld [vmem:[%s15411_s0 + $0x970] ss:$28 sps:$4 sm:$0xff]   ;;  %v2343_v6 = vrot.slane %v10660_v0, %v11521_v34  ;;  %v2455_v7 = vrot.slane %v10662_v1, %v11521_v34 }
  0x64   :  { %v5581_v24 = vpack.c.bf16 %v1973_v13, %v1847_v9  ;;  %7681 = vmatprep.subr.bf16.mxu0 %v10638_v22  ;;  %v3648_v9 = vcombine.high %v12015_v58, %v12018_v59 }
  0x65   :  { %v5582_v23 = vpack.c.bf16 %v1974_v12, %v1848_v8  ;;  %v2469_v8 = vrot.slane %v10664_v2, %v11521_v34  ;;  %v2352_v12 = vcombine.high %v2329_v4, %v2343_v6  ;;  %v2351_v14 = vcombine.low %v2329_v4, %v2343_v6  ;;  %v10700_v2 = vld [vmem:[%s15411_s0 + $0x690] ss:$28 sps:$4 sm:$0xff]  }
  0x66   :  { %v2833_v6 = vrot.slane %v10696_v62, %v11521_v34 }
  0x67   :  { %7146 = vmatprep.mubr.bf16.mxu1 %v5582_v23  ;;  %7682 = vmatpush1.bf16.msra.mxu0 %v10636_v20  ;;  %v2478_v13 = vcombine.high %v2455_v7, %v2469_v8  ;;  %v2477_v15 = vcombine.low %v2455_v7, %v2469_v8  ;;  %v2959_v8 = vrot.slane %v10700_v2, %v11521_v34 }
  0x68   :  { %7147 = vmatmul.mubr.bf16.gmra.mrb[12].mxu1 %v5581_v24  ;;  %7683 = vmatprep.subr.bf16.mxu0 %v10657_v54  ;;  %v10676_v24 = vld [vmem:[%s15410_s1 + $0x3b4] ss:$8 sps:$4 sm:$0xff]   ;;  %v12107_v54 = vrot.slane %v10685_v46, %v11521_v34 }
  0x69   :  { %v5610_v22 = vpack.c.bf16 %v2478_v13, %v2352_v12  ;;  %v5609_v23 = vpack.c.bf16 %v2477_v15, %v2351_v14  ;;  %v10704_v12 = vld [vmem:[%s15411_s0 + $0xb68] ss:$28 sps:$4 sm:$0xff]   ;;  %v10706_v13 = vld [vmem:[%s15411_s0 + $0xba0] ss:$28 sps:$4 sm:$0xff]  }
  0x6a   :  { %7553 = vmatmul.mubr.bf16.gmra.mrb[20].mxu0 %v5613_v31  ;;  %v3387_v31 = vrot.slane %v10630_v11, %v11521_v34  ;;  %v10666_v11 = vld [vmem:[%s15411_s0 + $0x9a8] ss:$28 sps:$4 sm:$0xff]  }
  0x6b   :  { %7562 = vmatprep.mubr.bf16.mxu0 %v5628_v33  ;;  %v10645_v33 = vld [vmem:[%s15411_s0 + $0x428] ss:$28 sps:$4 sm:$0xff]   ;;  %7684 = vmatpush1.bf16.msra.mxu0 %v10655_v53  ;;  %v12065_v25 = vrot.slane %v10666_v11, %v11521_v34 }
  0x6c   :  { %v2217_v40 = vrot.slane %v10645_v33, %v11521_v34  ;;  %v3396_v51 = vcombine.high %v3373_v30, %v3387_v31  ;;  %v3395_v3 = vcombine.low %v3373_v30, %v3387_v31  ;;  %7685 = vmatprep.subr.bf16.mxu0 %v10676_v24  ;;  %v10677_v31 = vld [vmem:[%s15411_s0 + $0x540] ss:$28 sps:$4 sm:$0xff]   ;;  %v10681_v33 = vld [vmem:[%s15411_s0 + $0x5b0] ss:$28 sps:$4 sm:$0xff]  }
  0x6d   :  { %v3900_v38 = vcombine.high %v12065_v25, %v12068_v26  ;;  %v2707_v42 = vrot.slane %v10681_v33, %v11521_v34  ;;  %v3899_v0 = vcombine.low %v12065_v25, %v12068_v26  ;;  %v10714_v24 = vld [vmem:[%s15410_s1 + $0x3d4] ss:$8 sps:$4 sm:$0xff]  }
  0x6e   :  { %v2226_v47 = vcombine.high %v2203_v39, %v2217_v40  ;;  %v2225_v48 = vcombine.low %v2203_v39, %v2217_v40  ;;  %v5670_v63 = vpack.c.bf16 %v3522_v52, %v3396_v51  ;;  %v2581_v40 = vrot.slane %v10677_v31, %v11521_v34  ;;  %v10691_v51 = vld [vmem:[%s15411_s0 + $0xb30] ss:$28 sps:$4 sm:$0xff]  }
  0x6f   :  { %7686 = vmatpush1.bf16.msra.mxu0 %v10674_v19 }
  0x70   :  { %v5596_v55 = vpack.c.bf16 %v2226_v47, %v2100_v43  ;;  %v5595_v56 = vpack.c.bf16 %v2225_v48, %v2099_v44  ;;  %v2721_v43 = vrot.slane %v10683_v37, %v11521_v34  ;;  %v2604_v44 = vcombine.high %v2581_v40, %v2595_v41  ;;  %v10687_v47 = vld [vmem:[%s15411_s0 + $0xac0] ss:$28 sps:$4 sm:$0xff]   ;;  %v10689_v48 = vld [vmem:[%s15411_s0 + $0xaf8] ss:$28 sps:$4 sm:$0xff]   ;;  %v10719_v37 = vld [vmem:[%s15411_s0 + $0x770] ss:$28 sps:$4 sm:$0xff]  }
  0x71   :  { %v2603_v45 = vcombine.low %v2581_v40, %v2595_v41  ;;  %v10723_v40 = vld [vmem:[%s15410_s1 + $0x100] ss:$8 sps:$4 sm:$0xff]  }
  0x72   :  { %7563 = vmatmul.mubr.bf16.gmra.mrb[24].mxu0 %v5627_v61  ;;  %7156 = vmatprep.mubr.bf16.mxu1 %v5596_v55  ;;  %v12024_v61 = vrot.slane %v10653_v50, %v11521_v34  ;;  %v2730_v49 = vcombine.high %v2707_v42, %v2721_v43  ;;  %v2729_v50 = vcombine.low %v2707_v42, %v2721_v43 }
  0x73   :  { %7572 = vmatprep.mubr.bf16.mxu0 %v5642_v5  ;;  %7157 = vmatmul.mubr.bf16.gmra.mrb[16].mxu1 %v5595_v56  ;;  %v3521_v5 = vcombine.low %v3499_v35, %v3513_v36  ;;  %v3647_v35 = vcombine.low %v12015_v58, %v12018_v59  ;;  %v12110_v55 = vrot.slane %v10687_v47, %v11521_v34  ;;  %v10693_v56 = vld [vmem:[%s15410_s1 + $0x3c0] ss:$8 sps:$4 sm:$0xff]   ;;  %v10728_v47 = vld [vmem:[%s15410_s1 + $0x114] ss:$8 sps:$4 sm:$0xff]  }
  0x74   :  { %v3774_v10 = vcombine.high %v12021_v60, %v12024_v61  ;;  %7166 = vmatprep.mubr.bf16.mxu1 %v5610_v22  ;;  %v3773_v36 = vcombine.low %v12021_v60, %v12024_v61  ;;  %v5624_v58 = vpack.c.bf16 %v2730_v49, %v2604_v44  ;;  %v5623_v59 = vpack.c.bf16 %v2729_v50, %v2603_v45  ;;  %v10725_v44 = vld [vmem:[%s15410_s1 + $0x104] ss:$8 sps:$4 sm:$0xff]  }
  0x75   :  { %v5669_v20 = vpack.c.bf16 %v3521_v5, %v3395_v3  ;;  %v4255_v60 = vrot.slane %v10689_v48, %v11521_v34  ;;  %v4269_v61 = vrot.slane %v10691_v51, %v11521_v34  ;;  %v10702_v3 = vld [vmem:[%s15411_s0 + $0x6c8] ss:$28 sps:$4 sm:$0xff]   ;;  %v4152_v4 = vcombine.high %v12107_v54, %v12110_v55  ;;  %7277 = vmatprep.subr.bf16.mxu1 %v10725_v44 }
  0x76   :  { %v5684_v30 = vpack.c.bf16 %v3774_v10, %v3648_v9  ;;  %v5683_v52 = vpack.c.bf16 %v3773_v36, %v3647_v35  ;;  %v2973_v9 = vrot.slane %v10702_v3, %v11521_v34  ;;  %v4395_v22 = vrot.slane %v10706_v13, %v11521_v34  ;;  %v10715_v35 = vld [vmem:[%s15411_s0 + $0x700] ss:$28 sps:$4 sm:$0xff]   ;;  %v10717_v36 = vld [vmem:[%s15411_s0 + $0x738] ss:$28 sps:$4 sm:$0xff]   ;;  %7278 = vmatpush1.bf16.msra.mxu1 %v10723_v40  ;;  %v10760_v40 = vld [vmem:[%s15411_s0 + $0xdd0] ss:$28 sps:$4 sm:$0xff]  }
  0x77   :  { %v4278_v5 = vcombine.high %v4255_v60, %v4269_v61  ;;  %v4277_v31 = vcombine.low %v4255_v60, %v4269_v61  ;;  %v3099_v41 = vrot.slane %v10717_v36, %v11521_v34  ;;  %v3211_v42 = vrot.slane %v10719_v37, %v11521_v34  ;;  %7279 = vmatprep.subr.bf16.mxu1 %v10728_v47  ;;  %v10735_v60 = vld [vmem:[%s15411_s0 + $0xcf0] ss:$28 sps:$4 sm:$0xff]  }
  0x78   :  { %v2982_v15 = vcombine.high %v2959_v8, %v2973_v9  ;;  %v2981_v16 = vcombine.low %v2959_v8, %v2973_v9  ;;  %v4773_v2 = vrot.slane %v10735_v60, %v11521_v34  ;;  %v10464_v8 = vld [vmem:[%s15411_s0 + $0x44] ss:$28 sps:$4 sm:$0xff]   ;;  %v10742_v9 = vld [vmem:[%s15411_s0 + $0x818] ss:$28 sps:$4 sm:$0xff]  }
  0x79   :  { %v5712_v19 = vpack.c.bf16 %v4278_v5, %v4152_v4  ;;  %v12264_v37 = vrot.slane %v10464_v8, %v11521_v34 }
  0x7a   :  { %7573 = vmatmul.mubr.bf16.gmra.mrb[28].mxu0 %v5641_v27  ;;  %v4003_v27 = vrot.slane %v10670_v17, %v11521_v34  ;;  %v10708_v17 = vld [vmem:[%s15411_s0 + $0xbd8] ss:$28 sps:$4 sm:$0xff]  }
  0x7b   :  { %7582 = vmatprep.mubr.bf16.mxu0 %v5656_v29  ;;  %v4017_v29 = vrot.slane %v10672_v18, %v11521_v34  ;;  %7167 = vmatmul.mubr.bf16.gmra.mrb[20].mxu1 %v5609_v23  ;;  %v10710_v18 = vld [vmem:[%s15411_s0 + $0xc10] ss:$28 sps:$4 sm:$0xff]  }
  0x7c   :  { %7176 = vmatprep.mubr.bf16.mxu1 %v5624_v58  ;;  %v10712_v23 = vld [vmem:[%s15410_s1 + $0x3d0] ss:$8 sps:$4 sm:$0xff]  }
  0x7d   :  { %v4026_v39 = vcombine.high %v4003_v27, %v4017_v29  ;;  %v4025_v1 = vcombine.low %v4003_v27, %v4017_v29  ;;  %v4507_v27 = vrot.slane %v10708_v17, %v11521_v34  ;;  %v4521_v29 = vrot.slane %v10710_v18, %v11521_v34 }
  0x7f   :  { %v5698_v53 = vpack.c.bf16 %v4026_v39, %v3900_v38  ;;  %v5697_v14 = vpack.c.bf16 %v4025_v1, %v3899_v0  ;;  %v4530_v33 = vcombine.high %v4507_v27, %v4521_v29  ;;  %v10721_v38 = vld [vmem:[%s15411_s0 + $0x7a8] ss:$28 sps:$4 sm:$0xff]   ;;  %v3085_v39 = vrot.slane %v10715_v35, %v11521_v34  ;;  %v10756_v35 = vld [vmem:[%s15411_s0 + $0xd60] ss:$28 sps:$4 sm:$0xff]  }
  0x80   :  { %v3225_v43 = vrot.slane %v10721_v38, %v11521_v34  ;;  %v4529_v58 = vcombine.low %v4507_v27, %v4521_v29  ;;  %v10739_v0 = vld [vmem:[%s15410_s1 + $0x3e4] ss:$8 sps:$4 sm:$0xff]   ;;  %v4899_v44 = vrot.slane %v10756_v35, %v11521_v34 }
  0x81   :  { %v3108_v48 = vcombine.high %v3085_v39, %v3099_v41  ;;  %v3107_v50 = vcombine.low %v3085_v39, %v3099_v41  ;;  %v10758_v39 = vld [vmem:[%s15411_s0 + $0xd98] ss:$28 sps:$4 sm:$0xff]  }
  0x82   :  { %7583 = vmatmul.mubr.bf16.gmra.mrb[32].mxu0 %v5655_v57  ;;  %v10695_v57 = vld [vmem:[%s15410_s1 + $0x3c4] ss:$8 sps:$4 sm:$0xff]   ;;  %v3234_v49 = vcombine.high %v3211_v42, %v3225_v43  ;;  %v3233_v51 = vcombine.low %v3211_v42, %v3225_v43  ;;  %v5011_v47 = vrot.slane %v10758_v39, %v11521_v34  ;;  %v10793_v39 = vld [vmem:[%s15410_s1 + $0x170] ss:$8 sps:$4 sm:$0xff]  }
  0x83   :  { %7592 = vmatprep.mubr.bf16.mxu0 %v5670_v63  ;;  %7687 = vmatprep.subr.bf16.mxu0 %v10695_v57  ;;  %v10698_v63 = vld [vmem:[%s15411_s0 + $0x658] ss:$28 sps:$4 sm:$0xff]  }
  0x84   :  { %7688 = vmatpush1.bf16.msra.mxu0 %v10693_v56  ;;  %7177 = vmatmul.mubr.bf16.gmra.mrb[24].mxu1 %v5623_v59  ;;  %v2847_v7 = vrot.slane %v10698_v63, %v11521_v34  ;;  %v10731_v56 = vld [vmem:[%s15411_s0 + $0xc80] ss:$28 sps:$4 sm:$0xff]   ;;  %v10733_v59 = vld [vmem:[%s15411_s0 + $0xcb8] ss:$28 sps:$4 sm:$0xff]  }
  0x85   :  { %7689 = vmatprep.subr.bf16.mxu0 %v10714_v24  ;;  %v4647_v62 = vrot.slane %v10731_v56, %v11521_v34  ;;  %v10737_v63 = vld [vmem:[%s15410_s1 + $0x3e0] ss:$8 sps:$4 sm:$0xff]   ;;  %v4759_v1 = vrot.slane %v10733_v59, %v11521_v34  ;;  %v10753_v24 = vld [vmem:[%s15410_s1 + $0x134] ss:$8 sps:$4 sm:$0xff]  }
  0x86   :  { %v2856_v10 = vcombine.high %v2833_v6, %v2847_v7  ;;  %v2855_v11 = vcombine.low %v2833_v6, %v2847_v7  ;;  %v10740_v6 = vld [vmem:[%s15411_s0 + $0x7e0] ss:$28 sps:$4 sm:$0xff]   ;;  %v10461_v7 = vld [vmem:[%s15411_s0 + $0xc] ss:$28 sps:$4 sm:$0xff]   ;;  %v10767_v56 = vld [vmem:[%s15411_s0 + $0x8f8] ss:$28 sps:$4 sm:$0xff]  }
  0x87   :  { %v4782_v5 = vcombine.high %v4759_v1, %v4773_v2  ;;  %v12261_v36 = vrot.slane %v10461_v7, %v11521_v34 }
  0x88   :  { %v5638_v25 = vpack.c.bf16 %v2982_v15, %v2856_v10  ;;  %v5637_v26 = vpack.c.bf16 %v2981_v16, %v2855_v11  ;;  %7690 = vmatpush1.bf16.msra.mxu0 %v10712_v23  ;;  %v10744_v10 = vld [vmem:[%s15411_s0 + $0x850] ss:$28 sps:$4 sm:$0xff]   ;;  %v10746_v11 = vld [vmem:[%s15411_s0 + $0x888] ss:$28 sps:$4 sm:$0xff]   ;;  %v3351_v16 = vrot.slane %v10742_v9, %v11521_v34  ;;  %v4781_v23 = vcombine.low %v4759_v1, %v4773_v2 }
  0x89   :  { %7691 = vmatprep.subr.bf16.mxu0 %v10739_v0  ;;  %v10748_v15 = vld [vmem:[%s15410_s1 + $0x120] ss:$8 sps:$4 sm:$0xff]   ;;  %v3463_v17 = vrot.slane %v10744_v10, %v11521_v34  ;;  %v3477_v18 = vrot.slane %v10746_v11, %v11521_v34  ;;  %v10775_v1 = vld [vmem:[%s15410_s1 + $0x144] ss:$8 sps:$4 sm:$0xff]   ;;  %v10776_v9 = vld [vmem:[%s15410_s1 + $0x150] ss:$8 sps:$4 sm:$0xff]  }
  0x8a   :  { %7593 = vmatmul.mubr.bf16.gmra.mrb[36].mxu0 %v5669_v20  ;;  %v4381_v20 = vrot.slane %v10704_v12, %v11521_v34  ;;  %7186 = vmatprep.mubr.bf16.mxu1 %v5638_v25  ;;  %v10467_v12 = vld [vmem:[%s15411_s0 + $0x7c] ss:$28 sps:$4 sm:$0xff]   ;;  %v10781_v10 = vld [vmem:[%s15410_s1 + $0x404] ss:$8 sps:$4 sm:$0xff]  }
  0x8b   :  { %7602 = vmatprep.mubr.bf16.mxu0 %v5684_v30  ;;  %v4151_v30 = vcombine.low %v12107_v54, %v12110_v55  ;;  %v5651_v54 = vpack.c.bf16 %v3233_v51, %v3107_v50  ;;  %v10729_v55 = vld [vmem:[%s15411_s0 + $0xc48] ss:$28 sps:$4 sm:$0xff]   ;;  %v3485_v29 = vcombine.low %v3463_v17, %v3477_v18  ;;  %v12273_v41 = vrot.slane %v10467_v12, %v11521_v34 }
  0x8c   :  { %v4404_v32 = vcombine.high %v4381_v20, %v4395_v22  ;;  %7187 = vmatmul.mubr.bf16.gmra.mrb[28].mxu1 %v5637_v26  ;;  %v4403_v57 = vcombine.low %v4381_v20, %v4395_v22  ;;  %v4633_v61 = vrot.slane %v10729_v55, %v11521_v34  ;;  %7692 = vmatpush1.bf16.msra.mxu0 %v10737_v63  ;;  %v10470_v20 = vld [vmem:[%s15411_s0 + $0xb4] ss:$28 sps:$4 sm:$0xff]  }
  0x8d   :  { %v5711_v45 = vpack.c.bf16 %v4277_v31, %v4151_v30  ;;  %v3486_v26 = vcombine.high %v3463_v17, %v3477_v18  ;;  %v10751_v30 = vld [vmem:[%s15410_s1 + $0x130] ss:$8 sps:$4 sm:$0xff]   ;;  %v12276_v42 = vrot.slane %v10470_v20, %v11521_v34  ;;  %v1130_v50 = vcombine.high %v12261_v36, %v12264_v37  ;;  %v10788_v18 = vld [vmem:[%s15411_s0 + $0xa48] ss:$28 sps:$4 sm:$0xff]  }
  0x8e   :  { %v5726_v46 = vpack.c.bf16 %v4530_v33, %v4404_v32  ;;  %v4656_v3 = vcombine.high %v4633_v61, %v4647_v62  ;;  %v5725_v4 = vpack.c.bf16 %v4529_v58, %v4403_v57  ;;  %v4655_v22 = vcombine.low %v4633_v61, %v4647_v62  ;;  %v10754_v33 = vld [vmem:[%s15411_s0 + $0xd28] ss:$28 sps:$4 sm:$0xff]   ;;  %v10769_v57 = vld [vmem:[%s15411_s0 + $0x930] ss:$28 sps:$4 sm:$0xff]  }
  0x8f   :  { %v4885_v43 = vrot.slane %v10754_v33, %v11521_v34  ;;  %v1256_v55 = vcombine.high %v12273_v41, %v12276_v42  ;;  %v10771_v58 = vld [vmem:[%s15411_s0 + $0x968] ss:$28 sps:$4 sm:$0xff]   ;;  %v3603_v62 = vrot.slane %v10767_v56, %v11521_v34  ;;  %v3715_v63 = vrot.slane %v10769_v57, %v11521_v34  ;;  %v10786_v17 = vld [vmem:[%s15411_s0 + $0xa10] ss:$28 sps:$4 sm:$0xff]  }
  0x90   :  { %v5740_v13 = vpack.c.bf16 %v4782_v5, %v4656_v3  ;;  %v5739_v38 = vpack.c.bf16 %v4781_v23, %v4655_v22  ;;  %v10773_v61 = vld [vmem:[%s15410_s1 + $0x140] ss:$8 sps:$4 sm:$0xff]   ;;  %v3729_v0 = vrot.slane %v10771_v58, %v11521_v34  ;;  %v10778_v3 = vld [vmem:[%s15410_s1 + $0x154] ss:$8 sps:$4 sm:$0xff]   ;;  %v3967_v23 = vrot.slane %v10786_v17, %v11521_v34 }
  0x91   :  { %v10790_v20 = vld [vmem:[%s15410_s1 + $0x160] ss:$8 sps:$4 sm:$0xff]  }
  0x92   :  { %7603 = vmatmul.mubr.bf16.gmra.mrb[40].mxu0 %v5683_v52  ;;  %v10726_v52 = vld [vmem:[%s15410_s1 + $0x110] ss:$8 sps:$4 sm:$0xff]   ;;  %v3737_v8 = vcombine.low %v3715_v63, %v3729_v0 }
  0x93   :  { %7612 = vmatprep.mubr.bf16.mxu0 %v5698_v53  ;;  %v5652_v53 = vpack.c.bf16 %v3234_v49, %v3108_v48  ;;  %7280 = vmatpush1.bf16.msra.mxu1 %v10726_v52  ;;  %v5025_v48 = vrot.slane %v10760_v40, %v11521_v34  ;;  %v4908_v49 = vcombine.high %v4885_v43, %v4899_v44 }
  0x94   :  { %v4907_v52 = vcombine.low %v4885_v43, %v4899_v44 }
  0x95   :  { %7196 = vmatprep.mubr.bf16.mxu1 %v5652_v53  ;;  %v5034_v51 = vcombine.high %v5011_v47, %v5025_v48  ;;  %v5033_v53 = vcombine.low %v5011_v47, %v5025_v48 }
  0x96   :  { %7197 = vmatmul.mubr.bf16.gmra.mrb[32].mxu1 %v5651_v54  ;;  %v10765_v54 = vld [vmem:[%s15411_s0 + $0x8c0] ss:$28 sps:$4 sm:$0xff]  }
  0x97   :  { %v5754_v59 = vpack.c.bf16 %v5034_v51, %v4908_v49  ;;  %v3589_v60 = vrot.slane %v10765_v54, %v11521_v34  ;;  %v5753_v2 = vpack.c.bf16 %v5033_v53, %v4907_v52  ;;  %v10803_v52 = vld [vmem:[%s15411_s0 + $0xa80] ss:$28 sps:$4 sm:$0xff]   ;;  %v10805_v53 = vld [vmem:[%s15411_s0 + $0xab8] ss:$28 sps:$4 sm:$0xff]   ;;  %v10807_v54 = vld [vmem:[%s15411_s0 + $0xaf0] ss:$28 sps:$4 sm:$0xff]  }
  0x98   :  { %v4093_v58 = vrot.slane %v10803_v52, %v11521_v34 }
  0x99   :  { %v3612_v5 = vcombine.high %v3589_v60, %v3603_v62  ;;  %v3611_v7 = vcombine.low %v3589_v60, %v3603_v62  ;;  %v10811_v60 = vld [vmem:[%s15410_s1 + $0x180] ss:$8 sps:$4 sm:$0xff]   ;;  %v4219_v62 = vrot.slane %v10807_v54, %v11521_v34 }
  0x9a   :  { %7613 = vmatmul.mubr.bf16.gmra.mrb[44].mxu0 %v5697_v14  ;;  %v3337_v14 = vrot.slane %v10740_v6, %v11521_v34  ;;  %v3738_v6 = vcombine.high %v3715_v63, %v3729_v0  ;;  %v10814_v0 = vld [vmem:[%s15410_s1 + $0x190] ss:$8 sps:$4 sm:$0xff]  }
  0x9b   :  { %7622 = vmatprep.mubr.bf16.mxu0 %v5712_v19  ;;  %v10750_v19 = vld [vmem:[%s15410_s1 + $0x124] ss:$8 sps:$4 sm:$0xff]   ;;  %v5679_v12 = vpack.c.bf16 %v3737_v8, %v3611_v7 }
  0x9c   :  { %v3360_v25 = vcombine.high %v3337_v14, %v3351_v16  ;;  %v3359_v27 = vcombine.low %v3337_v14, %v3351_v16  ;;  %7281 = vmatprep.subr.bf16.mxu1 %v10750_v19  ;;  %v5680_v11 = vpack.c.bf16 %v3738_v6, %v3612_v5  ;;  %v1255_v14 = vcombine.low %v12273_v41, %v12276_v42  ;;  %v10784_v16 = vld [vmem:[%s15411_s0 + $0x9d8] ss:$28 sps:$4 sm:$0xff]   ;;  %v10818_v5 = vld [vmem:[%s15411_s0 + $0x204] ss:$28 sps:$4 sm:$0xff]  }
  0x9d   :  { %7282 = vmatpush1.bf16.msra.mxu1 %v10748_v15  ;;  %v10782_v15 = vld [vmem:[%s15411_s0 + $0x9a0] ss:$28 sps:$4 sm:$0xff]   ;;  %v3855_v22 = vrot.slane %v10784_v16, %v11521_v34 }
  0x9e   :  { %v5666_v31 = vpack.c.bf16 %v3486_v26, %v3360_v25  ;;  %v5665_v32 = vpack.c.bf16 %v3485_v29, %v3359_v27  ;;  %7283 = vmatprep.subr.bf16.mxu1 %v10753_v24  ;;  %v3841_v19 = vrot.slane %v10782_v15, %v11521_v34  ;;  %v3981_v24 = vrot.slane %v10788_v18, %v11521_v34  ;;  %v10792_v25 = vld [vmem:[%s15410_s1 + $0x164] ss:$8 sps:$4 sm:$0xff]   ;;  %v10779_v27 = vld [vmem:[%s15410_s1 + $0x400] ss:$8 sps:$4 sm:$0xff]   ;;  %v10795_v29 = vld [vmem:[%s15410_s1 + $0x174] ss:$8 sps:$4 sm:$0xff]  }
  0x9f   :  { %v10819_v6 = vld [vmem:[%s15411_s0 + $0x23c] ss:$28 sps:$4 sm:$0xff]  }
  0xa0   :  { %7206 = vmatprep.mubr.bf16.mxu1 %v5666_v31  ;;  %v3864_v31 = vcombine.high %v3841_v19, %v3855_v22  ;;  %v3863_v33 = vcombine.low %v3841_v19, %v3855_v22  ;;  %v3989_v35 = vcombine.low %v3967_v23, %v3981_v24 }
  0xa1   :  { %7207 = vmatmul.mubr.bf16.gmra.mrb[36].mxu1 %v5665_v32  ;;  %v3990_v32 = vcombine.high %v3967_v23, %v3981_v24  ;;  %v10824_v23 = vld [vmem:[%s15411_s0 + $0xb60] ss:$28 sps:$4 sm:$0xff]   ;;  %v10826_v24 = vld [vmem:[%s15411_s0 + $0xb98] ss:$28 sps:$4 sm:$0xff]  }
  0xa2   :  { %7623 = vmatmul.mubr.bf16.gmra.mrb[48].mxu0 %v5711_v45  ;;  %v10762_v45 = vld [vmem:[%s15410_s1 + $0x3f0] ss:$8 sps:$4 sm:$0xff]   ;;  %7284 = vmatpush1.bf16.msra.mxu1 %v10751_v30  ;;  %v10796_v30 = vld [vmem:[%s15411_s0 + $0xec] ss:$28 sps:$4 sm:$0xff]   ;;  %v5693_v42 = vpack.c.bf16 %v3989_v35, %v3863_v33 }
  0xa3   :  { %7632 = vmatprep.mubr.bf16.mxu0 %v5726_v46  ;;  %v10764_v46 = vld [vmem:[%s15410_s1 + $0x3f4] ss:$8 sps:$4 sm:$0xff]   ;;  %7285 = vmatprep.subr.bf16.mxu1 %v10775_v1  ;;  %v1364_v40 = vrot.slane %v10796_v30, %v11521_v34  ;;  %v5694_v41 = vpack.c.bf16 %v3990_v32, %v3864_v31  ;;  %v4345_v30 = vrot.slane %v10824_v23, %v11521_v34  ;;  %v10832_v32 = vld [vmem:[%s15410_s1 + $0x1a0] ss:$8 sps:$4 sm:$0xff]   ;;  %v10834_v33 = vld [vmem:[%s15410_s1 + $0x1a4] ss:$8 sps:$4 sm:$0xff]  }
  0xa4   :  { %7693 = vmatprep.subr.bf16.mxu0 %v10764_v46  ;;  %7216 = vmatprep.mubr.bf16.mxu1 %v5680_v11  ;;  %v10802_v46 = vld [vmem:[%s15410_s1 + $0x414] ss:$8 sps:$4 sm:$0xff]   ;;  %v1630_v11 = vrot.slane %v10818_v5, %v11521_v34  ;;  %v4359_v31 = vrot.slane %v10826_v24, %v11521_v34  ;;  %v10853_v5 = vld [vmem:[%s15410_s1 + $0x1c0] ss:$8 sps:$4 sm:$0xff]  }
  0xa5   :  { %7694 = vmatpush1.bf16.msra.mxu0 %v10762_v45  ;;  %v10800_v45 = vld [vmem:[%s15410_s1 + $0x410] ss:$8 sps:$4 sm:$0xff]   ;;  %v10816_v1 = vld [vmem:[%s15410_s1 + $0x194] ss:$8 sps:$4 sm:$0xff]   ;;  %v10863_v23 = vld [vmem:[%s15410_s1 + $0x440] ss:$8 sps:$4 sm:$0xff]  }
  0xa6   :  { %7286 = vmatpush1.bf16.msra.mxu1 %v10773_v61  ;;  %7856 = vmatprep.subr.bf16.mxu0 %v10781_v10  ;;  %v10813_v61 = vld [vmem:[%s15410_s1 + $0x184] ss:$8 sps:$4 sm:$0xff]  }
  0xa7   :  { %7287 = vmatprep.subr.bf16.mxu1 %v10778_v3 }
  0xa9   :  { %7217 = vmatmul.mubr.bf16.gmra.mrb[40].mxu1 %v5679_v12  ;;  %v1742_v12 = vrot.slane %v10819_v6, %v11521_v34 }
  0xaa   :  { %7633 = vmatmul.mubr.bf16.gmra.mrb[52].mxu0 %v5725_v4  ;;  %v5546_v4 = vpack.c.bf16 %v1256_v55, %v1130_v50  ;;  %7288 = vmatpush1.bf16.msra.mxu1 %v10776_v9  ;;  %v10809_v55 = vld [vmem:[%s15411_s0 + $0xb28] ss:$28 sps:$4 sm:$0xff]   ;;  %v10820_v9 = vld [vmem:[%s15411_s0 + $0x274] ss:$28 sps:$4 sm:$0xff]  }
  0xab   :  { %7642 = vmatprep.mubr.bf16.mxu0 %v5740_v13  ;;  %v1129_v13 = vcombine.low %v12261_v36, %v12264_v37  ;;  %7289 = vmatprep.subr.bf16.mxu1 %v10792_v25  ;;  %v10797_v36 = vld [vmem:[%s15411_s0 + $0x124] ss:$28 sps:$4 sm:$0xff]   ;;  %v10798_v37 = vld [vmem:[%s15411_s0 + $0x15c] ss:$28 sps:$4 sm:$0xff]   ;;  %v4233_v63 = vrot.slane %v10809_v55, %v11521_v34  ;;  %v1756_v17 = vrot.slane %v10820_v9, %v11521_v34  ;;  %v10828_v25 = vld [vmem:[%s15411_s0 + $0xbd0] ss:$28 sps:$4 sm:$0xff]  }
  0xac   :  { %v1378_v43 = vrot.slane %v10797_v36, %v11521_v34  ;;  %v1490_v44 = vrot.slane %v10798_v37, %v11521_v34  ;;  %7226 = vmatprep.mubr.bf16.mxu1 %v5694_v41  ;;  %v4471_v35 = vrot.slane %v10828_v25, %v11521_v34  ;;  %v10835_v37 = vld [vmem:[%s15410_s1 + $0x1b0] ss:$8 sps:$4 sm:$0xff]   ;;  %v10838_v41 = vld [vmem:[%s15411_s0 + $0x2ac] ss:$28 sps:$4 sm:$0xff]  }
  0xad   :  { %v5545_v26 = vpack.c.bf16 %v1255_v14, %v1129_v13  ;;  %v4242_v7 = vcombine.high %v4219_v62, %v4233_v63  ;;  %v4241_v8 = vcombine.low %v4219_v62, %v4233_v63  ;;  %v10821_v13 = vld [vmem:[%s15410_s1 + $0x420] ss:$8 sps:$4 sm:$0xff]   ;;  %v10823_v14 = vld [vmem:[%s15410_s1 + $0x424] ss:$8 sps:$4 sm:$0xff]   ;;  %v1759_v22 = vcombine.low %v1742_v12, %v1756_v17 }
  0xae   :  { %7290 = vmatpush1.bf16.msra.mxu1 %v10790_v20  ;;  %v1382_v48 = vcombine.high %v1364_v40, %v1378_v43  ;;  %v1381_v49 = vcombine.low %v1364_v40, %v1378_v43  ;;  %v1760_v20 = vcombine.high %v1742_v12, %v1756_v17  ;;  %v10837_v40 = vld [vmem:[%s15410_s1 + $0x1b4] ss:$8 sps:$4 sm:$0xff]   ;;  %v10851_v62 = vld [vmem:[%s15411_s0 + $0xce8] ss:$28 sps:$4 sm:$0xff]   ;;  %v10856_v17 = vld [vmem:[%s15410_s1 + $0x1d0] ss:$8 sps:$4 sm:$0xff]  }
  0xaf   :  { %7291 = vmatprep.subr.bf16.mxu1 %v10795_v29  ;;  %v10561_v63 = vld [vmem:[%s15411_s0 + $0x4] ss:$28 sps:$4 sm:$0xff]   ;;  %v10859_v12 = vld [vmem:[%s15411_s0 + $0x38c] ss:$28 sps:$4 sm:$0xff]  }
  0xb0   :  { %v10855_v9 = vld [vmem:[%s15410_s1 + $0x1c4] ss:$8 sps:$4 sm:$0xff]  }
  0xb1   :  { %7227 = vmatmul.mubr.bf16.gmra.mrb[44].mxu1 %v5693_v42  ;;  %v10839_v42 = vld [vmem:[%s15411_s0 + $0x2e4] ss:$28 sps:$4 sm:$0xff]  }
  0xb2   :  { %7643 = vmatmul.mubr.bf16.gmra.mrb[56].mxu0 %v5739_v38  ;;  %v10799_v38 = vld [vmem:[%s15411_s0 + $0x194] ss:$28 sps:$4 sm:$0xff]   ;;  %7292 = vmatpush1.bf16.msra.mxu1 %v10793_v39  ;;  %v4367_v39 = vcombine.low %v4345_v30, %v4359_v31 }
  0xb3   :  { %7652 = vmatprep.mubr.bf16.mxu0 %v5754_v59  ;;  %v1504_v47 = vrot.slane %v10799_v38, %v11521_v34  ;;  %v4107_v59 = vrot.slane %v10805_v53, %v11521_v34  ;;  %7293 = vmatprep.subr.bf16.mxu1 %v10813_v61  ;;  %v4368_v38 = vcombine.high %v4345_v30, %v4359_v31  ;;  %v10849_v61 = vld [vmem:[%s15411_s0 + $0xcb0] ss:$28 sps:$4 sm:$0xff]  }
  0xb4   :  { %v12543_v31 = vrot.slane %v10561_v63, %v11521_v34  ;;  %v10883_v63 = vld [vmem:[%s15411_s0 + $0x514] ss:$28 sps:$4 sm:$0xff]  }
  0xb5   :  { %v1508_v50 = vcombine.high %v1490_v44, %v1504_v47  ;;  %v1507_v51 = vcombine.low %v1490_v44, %v1504_v47  ;;  %v4115_v3 = vcombine.low %v4093_v58, %v4107_v59  ;;  %v1868_v47 = vrot.slane %v10838_v41, %v11521_v34  ;;  %v10868_v41 = vld [vmem:[%s15411_s0 + $0xd58] ss:$28 sps:$4 sm:$0xff]  }
  0xb6   :  { %7294 = vmatpush1.bf16.msra.mxu1 %v10811_v60  ;;  %v10847_v60 = vld [vmem:[%s15411_s0 + $0xc78] ss:$28 sps:$4 sm:$0xff]  }
  0xb7   :  { %v5560_v56 = vpack.c.bf16 %v1508_v50, %v1382_v48  ;;  %v5559_v57 = vpack.c.bf16 %v1507_v51, %v1381_v49  ;;  %7295 = vmatprep.subr.bf16.mxu1 %v10816_v1  ;;  %v5707_v16 = vpack.c.bf16 %v4241_v8, %v4115_v3  ;;  %v1882_v48 = vrot.slane %v10839_v42, %v11521_v34  ;;  %v10842_v49 = vld [vmem:[%s15410_s1 + $0x430] ss:$8 sps:$4 sm:$0xff]   ;;  %v10844_v50 = vld [vmem:[%s15410_s1 + $0x434] ss:$8 sps:$4 sm:$0xff]  }
  0xb8   :  { %v10567_v1 = vld [vmem:[%s15411_s0 + $0x74] ss:$28 sps:$4 sm:$0xff]   ;;  %v4611_v6 = vrot.slane %v10847_v60, %v11521_v34  ;;  %v4737_v8 = vrot.slane %v10851_v62, %v11521_v34  ;;  %v10882_v60 = vld [vmem:[%s15411_s0 + $0x4dc] ss:$28 sps:$4 sm:$0xff]  }
  0xb9   :  { %v1886_v55 = vcombine.high %v1868_v47, %v1882_v48  ;;  %v10870_v42 = vld [vmem:[%s15411_s0 + $0xd90] ss:$28 sps:$4 sm:$0xff]  }
  0xba   :  { %7653 = vmatmul.mubr.bf16.gmra.mrb[60].mxu0 %v5753_v2  ;;  %v4116_v2 = vcombine.high %v4093_v58, %v4107_v59  ;;  %7296 = vmatpush1.bf16.msra.mxu1 %v10814_v0  ;;  %v10845_v59 = vld [vmem:[%s15411_s0 + $0xc40] ss:$28 sps:$4 sm:$0xff]  }
  0xbb   :  { %7695 = vmatprep.mubr.bf16.mxu0 %v5546_v4  ;;  %v10817_v4 = vld [vmem:[%s15411_s0 + $0x1cc] ss:$28 sps:$4 sm:$0xff]   ;;  %7297 = vmatprep.subr.bf16.mxu1 %v10834_v33  ;;  %v10564_v0 = vld [vmem:[%s15411_s0 + $0x3c] ss:$28 sps:$4 sm:$0xff]   ;;  %v12549_v33 = vrot.slane %v10567_v1, %v11521_v34 }
  0xbc   :  { %v1616_v10 = vrot.slane %v10817_v4, %v11521_v34  ;;  %v5708_v15 = vpack.c.bf16 %v4242_v7, %v4116_v2  ;;  %v4597_v4 = vrot.slane %v10845_v59, %v11521_v34  ;;  %v4723_v7 = vrot.slane %v10849_v61, %v11521_v34  ;;  %v10881_v59 = vld [vmem:[%s15411_s0 + $0x4a4] ss:$28 sps:$4 sm:$0xff]  }
  0xbd   :  { %v2386_v1 = vrot.slane %v10881_v59, %v11521_v34 }
  0xbe   :  { %v1634_v18 = vcombine.high %v1616_v10, %v1630_v11  ;;  %v1633_v19 = vcombine.low %v1616_v10, %v1630_v11  ;;  %7236 = vmatprep.mubr.bf16.mxu1 %v5708_v15  ;;  %7298 = vmatpush1.bf16.msra.mxu1 %v10832_v32  ;;  %v10570_v10 = vld [vmem:[%s15411_s0 + $0xac] ss:$28 sps:$4 sm:$0xff]   ;;  %v10858_v11 = vld [vmem:[%s15410_s1 + $0x1d4] ss:$8 sps:$4 sm:$0xff]   ;;  %v4619_v15 = vcombine.low %v4597_v4, %v4611_v6 }
  0xbf   :  { %7237 = vmatmul.mubr.bf16.gmra.mrb[48].mxu1 %v5707_v16  ;;  %7299 = vmatprep.subr.bf16.mxu1 %v10837_v40  ;;  %v4745_v16 = vcombine.low %v4723_v7, %v4737_v8  ;;  %v12546_v32 = vrot.slane %v10564_v0, %v11521_v34  ;;  %v10866_v40 = vld [vmem:[%s15411_s0 + $0xd20] ss:$28 sps:$4 sm:$0xff]  }
  0xc0   :  { %v5573_v29 = vpack.c.bf16 %v1759_v22, %v1633_v19  ;;  %v10861_v19 = vld [vmem:[%s15411_s0 + $0x3fc] ss:$28 sps:$4 sm:$0xff]   ;;  %v2120_v22 = vrot.slane %v10859_v12, %v11521_v34 }
  0xc1   :  { %v5735_v25 = vpack.c.bf16 %v4745_v16, %v4619_v15  ;;  %v10889_v12 = vld [vmem:[%s15411_s0 + $0x5bc] ss:$28 sps:$4 sm:$0xff]  }
  0xc2   :  { %7696 = vmatmul.mubr.bf16.vlgmr.msra.gmra.mrb[0].mxu0 %v5545_v26  ;;  %v10830_v26 = vld [vmem:[%s15411_s0 + $0xc08] ss:$28 sps:$4 sm:$0xff]   ;;  %7300 = vmatpush1.bf16.msra.mxu1 %v10835_v37  ;;  %v12552_v37 = vrot.slane %v10570_v10, %v11521_v34 }
  0xc3   :  { %7857 = vmatpush1.bf16.msra.mxu0 %v10779_v27  ;;  %7705 = vmatprep.mubr.bf16.mxu0 %v5560_v56  ;;  %v5574_v27 = vpack.c.bf16 %v1760_v20, %v1634_v18  ;;  %v4485_v36 = vrot.slane %v10830_v26, %v11521_v34  ;;  %v1885_v56 = vcombine.low %v1868_v47, %v1882_v48  ;;  %v10860_v18 = vld [vmem:[%s15411_s0 + $0x3c4] ss:$28 sps:$4 sm:$0xff]   ;;  %v10862_v20 = vld [vmem:[%s15411_s0 + $0x434] ss:$28 sps:$4 sm:$0xff]  }
  0xc4   :  { %7858 = vmatprep.subr.bf16.mxu0 %v10802_v46  ;;  %v10841_v46 = vld [vmem:[%s15411_s0 + $0x354] ss:$28 sps:$4 sm:$0xff]   ;;  %7301 = vmatprep.subr.bf16.mxu1 %v10855_v9  ;;  %v2134_v26 = vrot.slane %v10860_v18, %v11521_v34  ;;  %v2260_v30 = vrot.slane %v10862_v20, %v11521_v34  ;;  %v4863_v47 = vrot.slane %v10868_v41, %v11521_v34  ;;  %v10874_v48 = vld [vmem:[%s15410_s1 + $0x1e0] ss:$8 sps:$4 sm:$0xff]  }
  0xc5   :  { %v4494_v43 = vcombine.high %v4471_v35, %v4485_v36  ;;  %v4493_v44 = vcombine.low %v4471_v35, %v4485_v36  ;;  %v2008_v54 = vrot.slane %v10841_v46, %v11521_v34  ;;  %v4849_v46 = vrot.slane %v10866_v40, %v11521_v34 }
  0xc6   :  { %7302 = vmatpush1.bf16.msra.mxu1 %v10853_v5  ;;  %v2138_v35 = vcombine.high %v2120_v22, %v2134_v26  ;;  %v2137_v36 = vcombine.low %v2120_v22, %v2134_v26  ;;  %v1093_v5 = vcombine.low %v12543_v31, %v12546_v32  ;;  %v2512_v9 = vrot.slane %v10883_v63, %v11521_v34  ;;  %v10893_v22 = vld [vmem:[%s15410_s1 + $0x464] ss:$8 sps:$4 sm:$0xff]  }
  0xc7   :  { %7859 = vmatpush1.bf16.msra.mxu0 %v10800_v45  ;;  %v10840_v45 = vld [vmem:[%s15411_s0 + $0x31c] ss:$28 sps:$4 sm:$0xff]   ;;  %v5722_v51 = vpack.c.bf16 %v4494_v43, %v4368_v38  ;;  %v5721_v52 = vpack.c.bf16 %v4493_v44, %v4367_v39  ;;  %7303 = vmatprep.subr.bf16.mxu1 %v10858_v11  ;;  %v10872_v43 = vld [vmem:[%s15411_s0 + $0xdc8] ss:$28 sps:$4 sm:$0xff]   ;;  %v1219_v16 = vcombine.low %v12549_v33, %v12552_v37 }
  0xc8   :  { %7860 = vmatprep.subr.bf16.mxu0 %v10823_v14  ;;  %v1994_v53 = vrot.slane %v10840_v45, %v11521_v34  ;;  %v4746_v14 = vcombine.high %v4723_v7, %v4737_v8  ;;  %v10888_v11 = vld [vmem:[%s15411_s0 + $0x584] ss:$28 sps:$4 sm:$0xff]  }
  0xc9   :  { %7246 = vmatprep.mubr.bf16.mxu1 %v5722_v51  ;;  %v4989_v51 = vrot.slane %v10872_v43, %v11521_v34  ;;  %v2638_v20 = vrot.slane %v10888_v11, %v11521_v34 }
  0xca   :  { %7706 = vmatmul.mubr.bf16.gmra.mrb[4].mxu0 %v5559_v57  ;;  %v2012_v57 = vcombine.high %v1994_v53, %v2008_v54  ;;  %v2011_v58 = vcombine.low %v1994_v53, %v2008_v54  ;;  %7247 = vmatmul.mubr.bf16.gmra.mrb[52].mxu1 %v5721_v52  ;;  %v10877_v52 = vld [vmem:[%s15410_s1 + $0x1f0] ss:$8 sps:$4 sm:$0xff]   ;;  %v10879_v53 = vld [vmem:[%s15410_s1 + $0x1f4] ss:$8 sps:$4 sm:$0xff]   ;;  %v1094_v54 = vcombine.high %v12543_v31, %v12546_v32 }
  0xcb   :  { %7861 = vmatpush1.bf16.msra.mxu0 %v10821_v13  ;;  %7715 = vmatprep.mubr.bf16.mxu0 %v5574_v27  ;;  %v4620_v13 = vcombine.high %v4597_v4, %v4611_v6  ;;  %v2246_v27 = vrot.slane %v10861_v19, %v11521_v34  ;;  %v10886_v4 = vld [vmem:[%s15410_s1 + $0x454] ss:$8 sps:$4 sm:$0xff]   ;;  %v10887_v6 = vld [vmem:[%s15411_s0 + $0x54c] ss:$28 sps:$4 sm:$0xff]  }
  0xcc   :  { %7862 = vmatprep.subr.bf16.mxu0 %v10844_v50  ;;  %v5588_v2 = vpack.c.bf16 %v2012_v57, %v1886_v55  ;;  %v5587_v3 = vpack.c.bf16 %v2011_v58, %v1885_v56  ;;  %7304 = vmatpush1.bf16.msra.mxu1 %v10856_v17  ;;  %v4975_v50 = vrot.slane %v10870_v42, %v11521_v34  ;;  %v10880_v58 = vld [vmem:[%s15411_s0 + $0x46c] ss:$28 sps:$4 sm:$0xff]   ;;  %v10901_v42 = vld [vmem:[%s15411_s0 + $0x6d4] ss:$28 sps:$4 sm:$0xff]  }
  0xcd   :  { %v5736_v24 = vpack.c.bf16 %v4746_v14, %v4620_v13  ;;  %v2264_v38 = vcombine.high %v2246_v27, %v2260_v30  ;;  %v2263_v39 = vcombine.low %v2246_v27, %v2260_v30  ;;  %v1220_v55 = vcombine.high %v12549_v33, %v12552_v37  ;;  %v10890_v13 = vld [vmem:[%s15411_s0 + $0x5f4] ss:$28 sps:$4 sm:$0xff]   ;;  %v10898_v30 = vld [vmem:[%s15411_s0 + $0x62c] ss:$28 sps:$4 sm:$0xff]   ;;  %v10900_v37 = vld [vmem:[%s15411_s0 + $0x69c] ss:$28 sps:$4 sm:$0xff]  }
  0xce   :  { %v4872_v56 = vcombine.high %v4849_v46, %v4863_v47  ;;  %v4871_v57 = vcombine.low %v4849_v46, %v4863_v47  ;;  %v4998_v61 = vcombine.high %v4975_v50, %v4989_v51  ;;  %v4997_v62 = vcombine.low %v4975_v50, %v4989_v51  ;;  %v10896_v27 = vld [vmem:[%s15411_s0 + $0x154] ss:$28 sps:$4 sm:$0xff]  }
  0xcf   :  { %7863 = vmatpush1.bf16.msra.mxu0 %v10842_v49  ;;  %7256 = vmatprep.mubr.bf16.mxu1 %v5736_v24  ;;  %v5602_v44 = vpack.c.bf16 %v2264_v38, %v2138_v35  ;;  %v5601_v45 = vpack.c.bf16 %v2263_v39, %v2137_v36  ;;  %v10876_v49 = vld [vmem:[%s15410_s1 + $0x1e4] ss:$8 sps:$4 sm:$0xff]   ;;  %v2372_v0 = vrot.slane %v10880_v58, %v11521_v34  ;;  %v10895_v24 = vld [vmem:[%s15411_s0 + $0x11c] ss:$28 sps:$4 sm:$0xff]   ;;  %v10891_v35 = vld [vmem:[%s15410_s1 + $0x460] ss:$8 sps:$4 sm:$0xff]  }
  0xd0   :  { %7305 = vmatprep.subr.bf16.mxu1 %v10876_v49  ;;  %v5750_v7 = vpack.c.bf16 %v4998_v61, %v4872_v56  ;;  %v5749_v8 = vpack.c.bf16 %v4997_v62, %v4871_v57  ;;  %v5542_v10 = vpack.c.bf16 %v1220_v55, %v1094_v54  ;;  %v12625_v17 = vrot.slane %v10887_v6, %v11521_v34  ;;  %v10899_v36 = vld [vmem:[%s15411_s0 + $0x664] ss:$28 sps:$4 sm:$0xff]   ;;  %v10904_v47 = vld [vmem:[%s15410_s1 + $0x474] ss:$8 sps:$4 sm:$0xff]   ;;  %v10908_v55 = vld [vmem:[%s15411_s0 + $0x26c] ss:$28 sps:$4 sm:$0xff]  }
  0xd1   :  { %7306 = vmatpush1.bf16.msra.mxu1 %v10874_v48  ;;  %v2390_v14 = vcombine.high %v2372_v0, %v2386_v1  ;;  %v2389_v15 = vcombine.low %v2372_v0, %v2386_v1  ;;  %v2764_v26 = vrot.slane %v10890_v13, %v11521_v34  ;;  %v5541_v38 = vpack.c.bf16 %v1219_v16, %v1093_v5  ;;  %v10905_v48 = vld [vmem:[%s15411_s0 + $0x1c4] ss:$28 sps:$4 sm:$0xff]   ;;  %v10906_v49 = vld [vmem:[%s15411_s0 + $0x1fc] ss:$28 sps:$4 sm:$0xff]   ;;  %v10907_v54 = vld [vmem:[%s15411_s0 + $0x234] ss:$28 sps:$4 sm:$0xff]  }
  0xd2   :  { %7716 = vmatmul.mubr.bf16.gmra.mrb[8].mxu0 %v5573_v29  ;;  %v10865_v29 = vld [vmem:[%s15410_s1 + $0x444] ss:$8 sps:$4 sm:$0xff]   ;;  %7257 = vmatmul.mubr.bf16.gmra.mrb[56].mxu1 %v5735_v25  ;;  %v2750_v25 = vrot.slane %v10889_v12, %v11521_v34  ;;  %v2642_v33 = vcombine.high %v12625_v17, %v2638_v20  ;;  %v1342_v41 = vrot.slane %v10895_v24, %v11521_v34  ;;  %v10911_v5 = vld [vmem:[%s15411_s0 + $0x77c] ss:$28 sps:$4 sm:$0xff]   ;;  %v10912_v6 = vld [vmem:[%s15411_s0 + $0x7b4] ss:$28 sps:$4 sm:$0xff]  }
  0xd3   :  { %7725 = vmatprep.mubr.bf16.mxu0 %v5588_v2  ;;  %7864 = vmatprep.subr.bf16.mxu0 %v10865_v29  ;;  %v2498_v2 = vrot.slane %v10882_v60, %v11521_v34  ;;  %v10897_v29 = vld [vmem:[%s15411_s0 + $0x18c] ss:$28 sps:$4 sm:$0xff]   ;;  %v1454_v43 = vrot.slane %v10896_v27, %v11521_v34  ;;  %v12669_v46 = vrot.slane %v10899_v36, %v11521_v34  ;;  %v10902_v60 = vld [vmem:[%s15410_s1 + $0x470] ss:$8 sps:$4 sm:$0xff]   ;;  %v10910_v61 = vld [vmem:[%s15411_s0 + $0x744] ss:$28 sps:$4 sm:$0xff]  }
  0xd4   :  { %7865 = vmatpush1.bf16.msra.mxu0 %v10863_v23  ;;  %7307 = vmatprep.subr.bf16.mxu1 %v10879_v53  ;;  %v10894_v23 = vld [vmem:[%s15411_s0 + $0xe4] ss:$28 sps:$4 sm:$0xff]   ;;  %v2768_v39 = vcombine.high %v2750_v25, %v2764_v26  ;;  %v2641_v51 = vcombine.low %v12625_v17, %v2638_v20  ;;  %v10909_v56 = vld [vmem:[%s15411_s0 + $0x70c] ss:$28 sps:$4 sm:$0xff]   ;;  %v3002_v59 = vrot.slane %v10900_v37, %v11521_v34  ;;  %v10917_v13 = vld [vmem:[%s15411_s0 + $0x2dc] ss:$28 sps:$4 sm:$0xff]  }
  0xd5   :  { %7866 = vmatprep.subr.bf16.mxu0 %v10886_v4  ;;  %7266 = vmatprep.mubr.bf16.mxu1 %v5750_v7  ;;  %v2516_v18 = vcombine.high %v2498_v2, %v2512_v9  ;;  %v2515_v19 = vcombine.low %v2498_v2, %v2512_v9  ;;  %v1328_v40 = vrot.slane %v10894_v23, %v11521_v34  ;;  %v10915_v7 = vld [vmem:[%s15410_s1 + $0x484] ss:$8 sps:$4 sm:$0xff]   ;;  %v10918_v16 = vld [vmem:[%s15411_s0 + $0x314] ss:$28 sps:$4 sm:$0xff]   ;;  %v10913_v20 = vld [vmem:[%s15410_s1 + $0x480] ss:$8 sps:$4 sm:$0xff]  }
  0xd6   :  { %7308 = vmatpush1.bf16.msra.mxu1 %v10877_v52  ;;  %v5630_v50 = vpack.c.bf16 %v2768_v39, %v2642_v33  ;;  %v2767_v52 = vcombine.low %v2750_v25, %v2764_v26  ;;  %v3016_v63 = vrot.slane %v10901_v42, %v11521_v34  ;;  %v12701_v0 = vrot.slane %v10905_v48, %v11521_v34  ;;  %v10916_v12 = vld [vmem:[%s15411_s0 + $0x2a4] ss:$28 sps:$4 sm:$0xff]   ;;  %v10919_v17 = vld [vmem:[%s15411_s0 + $0x34c] ss:$28 sps:$4 sm:$0xff]   ;;  %v10926_v26 = vld [vmem:[%s15410_s1 + $0x494] ss:$8 sps:$4 sm:$0xff]  }
  0xd7   :  { %v5616_v31 = vpack.c.bf16 %v2516_v18, %v2390_v14  ;;  %v5615_v32 = vpack.c.bf16 %v2515_v19, %v2389_v15  ;;  %v1346_v53 = vcombine.high %v1328_v40, %v1342_v41  ;;  %v1345_v58 = vcombine.low %v1328_v40, %v1342_v41  ;;  %v10921_v33 = vld [vmem:[%s15411_s0 + $0x824] ss:$28 sps:$4 sm:$0xff]   ;;  %v10922_v39 = vld [vmem:[%s15411_s0 + $0x85c] ss:$28 sps:$4 sm:$0xff]   ;;  %v10923_v40 = vld [vmem:[%s15411_s0 + $0x894] ss:$28 sps:$4 sm:$0xff]  }
  0xd8   :  { %v12707_v4 = vrot.slane %v10907_v54, %v11521_v34  ;;  %v3020_v9 = vcombine.high %v3002_v59, %v3016_v63  ;;  %v12720_v11 = vrot.slane %v10909_v56, %v11521_v34  ;;  %v12731_v15 = vrot.slane %v10910_v61, %v11521_v34  ;;  %v10924_v41 = vld [vmem:[%s15410_s1 + $0x490] ss:$8 sps:$4 sm:$0xff]   ;;  %v10930_v56 = vld [vmem:[%s15411_s0 + $0x42c] ss:$28 sps:$4 sm:$0xff]  }
  0xd9   :  { %v12746_v24 = vrot.slane %v10911_v5, %v11521_v34  ;;  %v12749_v25 = vrot.slane %v10912_v6, %v11521_v34  ;;  %v3019_v27 = vcombine.low %v3002_v59, %v3016_v63  ;;  %v12771_v37 = vrot.slane %v10918_v16, %v11521_v34 }
  0xda   :  { %7726 = vmatmul.mubr.bf16.gmra.mrb[12].mxu0 %v5587_v3  ;;  %v10884_v3 = vld [vmem:[%s15410_s1 + $0x450] ss:$8 sps:$4 sm:$0xff]   ;;  %7267 = vmatmul.mubr.bf16.gmra.mrb[60].mxu1 %v5749_v8  ;;  %v5629_v8 = vpack.c.bf16 %v2767_v52, %v2641_v51  ;;  %v12797_v48 = vrot.slane %v10921_v33, %v11521_v34  ;;  %v12811_v54 = vrot.slane %v10923_v40, %v11521_v34 }
  0xdb   :  { %7735 = vmatprep.mubr.bf16.mxu0 %v5602_v44  ;;  %7867 = vmatpush1.bf16.msra.mxu0 %v10884_v3  ;;  %v1468_v44 = vrot.slane %v10897_v29, %v11521_v34  ;;  %v12704_v3 = vrot.slane %v10906_v49, %v11521_v34  ;;  %v3146_v29 = vcombine.high %v12720_v11, %v12731_v15  ;;  %v10927_v49 = vld [vmem:[%s15411_s0 + $0x384] ss:$28 sps:$4 sm:$0xff]  }
  0xdc   :  { %7309 = vmatprep.mubr.bf16.mxu1 %v5542_v10  ;;  %7868 = vmatprep.subr.bf16.mxu0 %v10893_v22  ;;  %v1720_v10 = vrot.slane %v10908_v55, %v11521_v34  ;;  %v3272_v36 = vcombine.high %v12746_v24, %v12749_v25  ;;  %v10929_v55 = vld [vmem:[%s15411_s0 + $0x3f4] ss:$28 sps:$4 sm:$0xff]   ;;  %v3145_v59 = vcombine.low %v12720_v11, %v12731_v15 }
  0xdd   :  { %v1472_v57 = vcombine.high %v1454_v43, %v1468_v44  ;;  %v1471_v2 = vcombine.low %v1454_v43, %v1468_v44  ;;  %v1598_v14 = vcombine.high %v12701_v0, %v12704_v3  ;;  %v1597_v42 = vcombine.low %v12701_v0, %v12704_v3  ;;  %v10937_v44 = vld [vmem:[%s15410_s1 + $0x4a4] ss:$8 sps:$4 sm:$0xff]  }
  0xde   :  { %v1724_v19 = vcombine.high %v12707_v4, %v1720_v10  ;;  %v1723_v43 = vcombine.low %v12707_v4, %v1720_v10  ;;  %v5658_v51 = vpack.c.bf16 %v3272_v36, %v3146_v29  ;;  %v3271_v61 = vcombine.low %v12746_v24, %v12749_v25 }
  0xdf   :  { %7869 = vmatpush1.bf16.msra.mxu0 %v10891_v35  ;;  %v5556_v1 = vpack.c.bf16 %v1472_v57, %v1346_v53  ;;  %v5555_v22 = vpack.c.bf16 %v1471_v2, %v1345_v58  ;;  %v12808_v53 = vrot.slane %v10922_v39, %v11521_v34  ;;  %v10935_v57 = vld [vmem:[%s15410_s1 + $0x4a0] ss:$8 sps:$4 sm:$0xff]   ;;  %v12832_v63 = vrot.slane %v10927_v49, %v11521_v34 }
  0xe0   :  { %7870 = vmatprep.subr.bf16.mxu0 %v10904_v47  ;;  %v5570_v35 = vpack.c.bf16 %v1724_v19, %v1598_v14  ;;  %v5569_v58 = vpack.c.bf16 %v1723_v43, %v1597_v42  ;;  %v10932_v2 = vld [vmem:[%s15411_s0 + $0x904] ss:$28 sps:$4 sm:$0xff]   ;;  %v12846_v5 = vrot.slane %v10929_v55, %v11521_v34  ;;  %v12849_v6 = vrot.slane %v10930_v56, %v11521_v34  ;;  %v10940_v19 = vld [vmem:[%s15411_s0 + $0x4d4] ss:$28 sps:$4 sm:$0xff]   ;;  %v10944_v42 = vld [vmem:[%s15411_s0 + $0xa1c] ss:$28 sps:$4 sm:$0xff]  }
  0xe1   :  { %v3524_v4 = vcombine.high %v12808_v53, %v12811_v54  ;;  %v5657_v14 = vpack.c.bf16 %v3271_v61, %v3145_v59  ;;  %v10945_v43 = vld [vmem:[%s15411_s0 + $0xa54] ss:$28 sps:$4 sm:$0xff]   ;;  %v12962_v56 = vrot.slane %v10944_v42, %v11521_v34  ;;  %v10952_v59 = vld [vmem:[%s15411_s0 + $0x5ec] ss:$28 sps:$4 sm:$0xff]   ;;  %v10954_v61 = vld [vmem:[%s15411_s0 + $0xac4] ss:$28 sps:$4 sm:$0xff]  }
  0xe2   :  { %7736 = vmatmul.mubr.bf16.gmra.mrb[16].mxu0 %v5601_v45  ;;  %v12666_v45 = vrot.slane %v10898_v30, %v11521_v34  ;;  %7310 = vmatmul.mubr.bf16.vlgmr.msra.gmra.mrb[0].mxu1 %v5541_v38  ;;  %v12757_v30 = vrot.slane %v10916_v12, %v11521_v34  ;;  %v12774_v38 = vrot.slane %v10919_v17, %v11521_v34  ;;  %v10938_v12 = vld [vmem:[%s15411_s0 + $0x464] ss:$28 sps:$4 sm:$0xff]   ;;  %v10967_v42 = vld [vmem:[%s15411_s0 + $0xc14] ss:$28 sps:$4 sm:$0xff]  }
  0xe3   :  { %7745 = vmatprep.mubr.bf16.mxu0 %v5616_v31  ;;  %7319 = vmatprep.mubr.bf16.mxu1 %v5556_v1  ;;  %v12760_v31 = vrot.slane %v10917_v13, %v11521_v34  ;;  %v10931_v1 = vld [vmem:[%s15411_s0 + $0x8cc] ss:$28 sps:$4 sm:$0xff]   ;;  %v12876_v17 = vrot.slane %v10932_v2, %v11521_v34 }
  0xe4   :  { %v2894_v62 = vcombine.high %v12666_v45, %v12669_v46  ;;  %7871 = vmatpush1.bf16.msra.mxu0 %v10902_v60  ;;  %v2893_v23 = vcombine.low %v12666_v45, %v12669_v46  ;;  %v1976_v52 = vcombine.high %v12771_v37, %v12774_v38  ;;  %v10948_v60 = vld [vmem:[%s15410_s1 + $0x4b4] ss:$8 sps:$4 sm:$0xff]   ;;  %v1975_v11 = vcombine.low %v12771_v37, %v12774_v38  ;;  %v10959_v13 = vld [vmem:[%s15410_s1 + $0x4c4] ss:$8 sps:$4 sm:$0xff]  }
  0xe5   :  { %7872 = vmatprep.subr.bf16.mxu0 %v10915_v7  ;;  %v1850_v46 = vcombine.high %v12757_v30, %v12760_v31  ;;  %v10933_v7 = vld [vmem:[%s15411_s0 + $0x93c] ss:$28 sps:$4 sm:$0xff]   ;;  %v1849_v10 = vcombine.low %v12757_v30, %v12760_v31  ;;  %v12873_v16 = vrot.slane %v10931_v1, %v11521_v34  ;;  %v3523_v30 = vcombine.low %v12808_v53, %v12811_v54  ;;  %v10942_v37 = vld [vmem:[%s15411_s0 + $0x9ac] ss:$28 sps:$4 sm:$0xff]   ;;  %v10943_v38 = vld [vmem:[%s15411_s0 + $0x9e4] ss:$28 sps:$4 sm:$0xff]  }
  0xe6   :  { %v5644_v18 = vpack.c.bf16 %v3020_v9, %v2894_v62  ;;  %v5643_v45 = vpack.c.bf16 %v3019_v27, %v2893_v23  ;;  %v10946_v9 = vld [vmem:[%s15410_s1 + $0x4b0] ss:$8 sps:$4 sm:$0xff]   ;;  %v2228_v23 = vcombine.high %v12846_v5, %v12849_v6  ;;  %v12890_v24 = vrot.slane %v10933_v7, %v11521_v34  ;;  %v10970_v31 = vld [vmem:[%s15410_s1 + $0x4d4] ss:$8 sps:$4 sm:$0xff]   ;;  %v10949_v53 = vld [vmem:[%s15411_s0 + $0x544] ss:$28 sps:$4 sm:$0xff]  }
  0xe7   :  { %v5584_v3 = vpack.c.bf16 %v1976_v52, %v1850_v46  ;;  %v5583_v27 = vpack.c.bf16 %v1975_v11, %v1849_v10  ;;  %v3650_v40 = vcombine.high %v12873_v16, %v12876_v17  ;;  %v12953_v52 = vrot.slane %v10943_v38, %v11521_v34  ;;  %v10950_v54 = vld [vmem:[%s15411_s0 + $0x57c] ss:$28 sps:$4 sm:$0xff]   ;;  %v10956_v7 = vld [vmem:[%s15411_s0 + $0xb34] ss:$28 sps:$4 sm:$0xff]  }
  0xe8   :  { %7873 = vmatpush1.bf16.msra.mxu0 %v10913_v20  ;;  %v10941_v20 = vld [vmem:[%s15411_s0 + $0x50c] ss:$28 sps:$4 sm:$0xff]   ;;  %v12990_v1 = vld [vmem:[%s15410_s1 + $0x514] ss:$8 sps:$4 sm:$0xff]   ;;  %v13014_v11 = vrot.slane %v10952_v59, %v11521_v34 }
  0xe9   :  { %7874 = vmatprep.subr.bf16.mxu0 %v10926_v26  ;;  %v10957_v26 = vld [vmem:[%s15410_s1 + $0x4c0] ss:$8 sps:$4 sm:$0xff]   ;;  %v12915_v36 = vrot.slane %v10941_v20, %v11521_v34 }
  0xea   :  { %7746 = vmatmul.mubr.bf16.gmra.mrb[20].mxu0 %v5615_v32  ;;  %v10920_v32 = vld [vmem:[%s15411_s0 + $0x7ec] ss:$28 sps:$4 sm:$0xff]   ;;  %7320 = vmatmul.mubr.bf16.gmra.mrb[4].mxu1 %v5555_v22 }
  0xeb   :  { %7755 = vmatprep.mubr.bf16.mxu0 %v5630_v50  ;;  %v12794_v47 = vrot.slane %v10920_v32, %v11521_v34  ;;  %v10928_v50 = vld [vmem:[%s15411_s0 + $0x3bc] ss:$28 sps:$4 sm:$0xff]   ;;  %7329 = vmatprep.mubr.bf16.mxu1 %v5570_v35  ;;  %v12906_v32 = vrot.slane %v10938_v12, %v11521_v34  ;;  %v12912_v35 = vrot.slane %v10940_v19, %v11521_v34 }
  0xec   :  { %7875 = vmatpush1.bf16.msra.mxu0 %v10924_v41  ;;  %v12835_v0 = vrot.slane %v10928_v50, %v11521_v34  ;;  %v13020_v12 = vld [vmem:[%s15410_s1 + $0x510] ss:$8 sps:$4 sm:$0xff]  }
  0xed   :  { %7876 = vmatprep.subr.bf16.mxu0 %v10937_v44  ;;  %v3398_v62 = vcombine.high %v12794_v47, %v12797_v48  ;;  %v3397_v29 = vcombine.low %v12794_v47, %v12797_v48  ;;  %v10968_v44 = vld [vmem:[%s15410_s1 + $0x4d0] ss:$8 sps:$4 sm:$0xff]   ;;  %v2227_v47 = vcombine.low %v12846_v5, %v12849_v6  ;;  %v12943_v48 = vld [vmem:[%s15410_s1 + $0x504] ss:$8 sps:$4 sm:$0xff]   ;;  %v2480_v50 = vcombine.high %v12912_v35, %v12915_v36 }
  0xee   :  { %v2102_v15 = vcombine.high %v12832_v63, %v12835_v0  ;;  %v2101_v46 = vcombine.low %v12832_v63, %v12835_v0  ;;  %v3649_v0 = vcombine.low %v12873_v16, %v12876_v17  ;;  %9908 = vmatprep.subr.bf16.mxu1 %v12943_v48  ;;  %v12997_v5 = vrot.slane %v10949_v53, %v11521_v34  ;;  %v10955_v6 = vld [vmem:[%s15411_s0 + $0xafc] ss:$28 sps:$4 sm:$0xff]   ;;  %v10971_v53 = vld [vmem:[%s15411_s0 + $0x704] ss:$28 sps:$4 sm:$0xff]  }
  0xef   :  { %v5672_v22 = vpack.c.bf16 %v3524_v4, %v3398_v62  ;;  %v12982_v62 = vld [vmem:[%s15410_s1 + $0x500] ss:$8 sps:$4 sm:$0xff]   ;;  %v13033_v17 = vrot.slane %v10954_v61, %v11521_v34  ;;  %v13040_v20 = vrot.slane %v10955_v6, %v11521_v34 }
  0xf0   :  { %7877 = vmatpush1.bf16.msra.mxu0 %v10935_v57  ;;  %v5598_v39 = vpack.c.bf16 %v2228_v23, %v2102_v15  ;;  %v12965_v57 = vrot.slane %v10945_v43, %v11521_v34  ;;  %v5597_v63 = vpack.c.bf16 %v2227_v47, %v2101_v46  ;;  %9924 = vmatpush1.bf16.msra.mxu1 %v12982_v62  ;;  %v10960_v23 = vld [vmem:[%s15411_s0 + $0x624] ss:$28 sps:$4 sm:$0xff]   ;;  %v11004_v43 = vld [vmem:[%s15410_s1 + $0x4f4] ss:$8 sps:$4 sm:$0xff]   ;;  %v13110_v47 = vld [vmem:[%s15410_s1 + $0x530] ss:$8 sps:$4 sm:$0xff]  }
  0xf1   :  { %7878 = vmatprep.subr.bf16.mxu0 %v10948_v60  ;;  %v10953_v60 = vld [vmem:[%s15411_s0 + $0xa8c] ss:$28 sps:$4 sm:$0xff]   ;;  %v2479_v15 = vcombine.low %v12912_v35, %v12915_v36  ;;  %9909 = vmatprep.subr.bf16.mxu1 %v12990_v1  ;;  %v10965_v35 = vld [vmem:[%s15411_s0 + $0xba4] ss:$28 sps:$4 sm:$0xff]   ;;  %v13081_v36 = vld [vmem:[%s15410_s1 + $0x534] ss:$8 sps:$4 sm:$0xff]  }
  0xf2   :  { %7756 = vmatmul.mubr.bf16.gmra.mrb[24].mxu0 %v5629_v8  ;;  %v10934_v8 = vld [vmem:[%s15411_s0 + $0x974] ss:$28 sps:$4 sm:$0xff]   ;;  %7330 = vmatmul.mubr.bf16.gmra.mrb[8].mxu1 %v5569_v58  ;;  %v13030_v16 = vrot.slane %v10953_v60, %v11521_v34  ;;  %v10981_v6 = vld [vmem:[%s15411_s0 + $0xc4c] ss:$28 sps:$4 sm:$0xff]  }
  0xf3   :  { %7765 = vmatprep.mubr.bf16.mxu0 %v5644_v18  ;;  %v10939_v18 = vld [vmem:[%s15411_s0 + $0x49c] ss:$28 sps:$4 sm:$0xff]   ;;  %7339 = vmatprep.mubr.bf16.mxu1 %v5584_v3  ;;  %v12893_v25 = vrot.slane %v10934_v8, %v11521_v34  ;;  %v10951_v58 = vld [vmem:[%s15411_s0 + $0x5b4] ss:$28 sps:$4 sm:$0xff]   ;;  %v4028_v8 = vcombine.high %v12962_v56, %v12965_v57 }
  0xf4   :  { %7879 = vmatpush1.bf16.msra.mxu0 %v10946_v9  ;;  %v12909_v33 = vrot.slane %v10939_v18, %v11521_v34  ;;  %v13008_v9 = vrot.slane %v10950_v54, %v11521_v34  ;;  %v13011_v10 = vrot.slane %v10951_v58, %v11521_v34  ;;  %v10985_v18 = vld [vmem:[%s15410_s1 + $0x4e0] ss:$8 sps:$4 sm:$0xff]   ;;  %9925 = vmatpush1.bf16.msra.mxu1 %v13020_v12  ;;  %v13136_v58 = vld [vmem:[%s15410_s1 + $0x544] ss:$8 sps:$4 sm:$0xff]  }
  0xf5   :  { %7880 = vmatprep.subr.bf16.mxu0 %v10959_v13  ;;  %v3776_v41 = vcombine.high %v12890_v24, %v12893_v25  ;;  %v3775_v2 = vcombine.low %v12890_v24, %v12893_v25  ;;  %v10987_v13 = vld [vmem:[%s15410_s1 + $0x4e4] ss:$8 sps:$4 sm:$0xff]   ;;  %v10961_v24 = vld [vmem:[%s15411_s0 + $0x65c] ss:$28 sps:$4 sm:$0xff]  }
  0xf6   :  { %v2354_v49 = vcombine.high %v12906_v32, %v12909_v33  ;;  %v13054_v25 = vld [vmem:[%s15410_s1 + $0x524] ss:$8 sps:$4 sm:$0xff]   ;;  %v13104_v46 = vrot.slane %v10961_v24, %v11521_v34 }
  0xf7   :  { %v5686_v55 = vpack.c.bf16 %v3776_v41, %v3650_v40  ;;  %v5685_v19 = vpack.c.bf16 %v3775_v2, %v3649_v0  ;;  %v4154_v40 = vcombine.high %v13030_v16, %v13033_v17  ;;  %v10966_v41 = vld [vmem:[%s15411_s0 + $0xbdc] ss:$28 sps:$4 sm:$0xff]   ;;  %9910 = vmatprep.subr.bf16.mxu1 %v13054_v25  ;;  %v10973_v0 = vld [vmem:[%s15411_s0 + $0x774] ss:$28 sps:$4 sm:$0xff]   ;;  %v10974_v2 = vld [vmem:[%s15411_s0 + $0x7ac] ss:$28 sps:$4 sm:$0xff]  }
  0xf8   :  { %7881 = vmatpush1.bf16.msra.mxu0 %v10957_v26  ;;  %v5612_v3 = vpack.c.bf16 %v2480_v50, %v2354_v49  ;;  %v11002_v49 = vld [vmem:[%s15410_s1 + $0x4f0] ss:$8 sps:$4 sm:$0xff]  }
  0xf9   :  { %7882 = vmatprep.subr.bf16.mxu0 %v10970_v31  ;;  %v10963_v31 = vld [vmem:[%s15411_s0 + $0x6cc] ss:$28 sps:$4 sm:$0xff]  }
  0xfa   :  { %7766 = vmatmul.mubr.bf16.gmra.mrb[28].mxu0 %v5643_v45  ;;  %v5671_v45 = vpack.c.bf16 %v3523_v30, %v3397_v29  ;;  %7340 = vmatmul.mubr.bf16.gmra.mrb[12].mxu1 %v5583_v27  ;;  %v2606_v27 = vcombine.high %v12997_v5, %v13008_v9  ;;  %v2732_v29 = vcombine.high %v13011_v10, %v13014_v11  ;;  %v10962_v30 = vld [vmem:[%s15411_s0 + $0x694] ss:$28 sps:$4 sm:$0xff]  }
  0xfb   :  { %7775 = vmatprep.mubr.bf16.mxu0 %v5658_v51  ;;  %v12950_v51 = vrot.slane %v10942_v37, %v11521_v34  ;;  %7349 = vmatprep.mubr.bf16.mxu1 %v5598_v39  ;;  %v4027_v39 = vcombine.low %v12962_v56, %v12965_v57  ;;  %v2731_v56 = vcombine.low %v13011_v10, %v13014_v11  ;;  %v10972_v57 = vld [vmem:[%s15411_s0 + $0x73c] ss:$28 sps:$4 sm:$0xff]  }
  0xfc   :  { %7883 = vmatpush1.bf16.msra.mxu0 %v10968_v44  ;;  %v5626_v50 = vpack.c.bf16 %v2732_v29, %v2606_v27  ;;  %v4153_v10 = vcombine.low %v13030_v16, %v13033_v17  ;;  %v13192_v16 = vrot.slane %v10973_v0, %v11521_v34  ;;  %v13195_v17 = vrot.slane %v10974_v2, %v11521_v34 }
  0xfd   :  { %v3902_v4 = vcombine.high %v12950_v51, %v12953_v52  ;;  %7884 = vmatprep.subr.bf16.mxu0 %v10987_v13  ;;  %v3901_v38 = vcombine.low %v12950_v51, %v12953_v52  ;;  %v13116_v51 = vrot.slane %v10962_v30, %v11521_v34  ;;  %v13119_v52 = vrot.slane %v10963_v31, %v11521_v34 }
  0xfe   :  { %v13180_v13 = vrot.slane %v10971_v53, %v11521_v34  ;;  %v13218_v31 = vrot.slane %v10981_v6, %v11521_v34 }
  0xff   :  { %v5700_v26 = vpack.c.bf16 %v4028_v8, %v3902_v4  ;;  %v5699_v54 = vpack.c.bf16 %v4027_v39, %v3901_v38  ;;  %v13155_v4 = vrot.slane %v10966_v41, %v11521_v34  ;;  %v10983_v8 = vld [vmem:[%s15411_s0 + $0xcbc] ss:$28 sps:$4 sm:$0xff]   ;;  %v2983_v29 = vcombine.low %v13116_v51, %v13119_v52  ;;  %v10988_v39 = vld [vmem:[%s15411_s0 + $0x7e4] ss:$28 sps:$4 sm:$0xff]  }
 0x100   :  { %7885 = vmatpush1.bf16.msra.mxu0 %v10985_v18  ;;  %v10989_v41 = vld [vmem:[%s15411_s0 + $0x81c] ss:$28 sps:$4 sm:$0xff]  }
 0x101   :  { %7886 = vmatprep.subr.bf16.mxu0 %v11004_v43  ;;  %v10991_v43 = vld [vmem:[%s15411_s0 + $0x88c] ss:$28 sps:$4 sm:$0xff]  }
 0x102   :  { %7776 = vmatmul.mubr.bf16.gmra.mrb[32].mxu0 %v5657_v14  ;;  %v2353_v14 = vcombine.low %v12906_v32, %v12909_v33  ;;  %7350 = vmatmul.mubr.bf16.gmra.mrb[16].mxu1 %v5597_v63  ;;  %v13069_v32 = vld [vmem:[%s15410_s1 + $0x520] ss:$8 sps:$4 sm:$0xff]   ;;  %v13144_v63 = vrot.slane %v10965_v35, %v11521_v34  ;;  %v13296_v0 = vrot.slane %v10991_v43, %v11521_v34 }
 0x103   :  { %7785 = vmatprep.mubr.bf16.mxu0 %v5672_v22  ;;  %v13043_v22 = vrot.slane %v10956_v7, %v11521_v34  ;;  %7359 = vmatprep.mubr.bf16.mxu1 %v5612_v3  ;;  %v10964_v33 = vld [vmem:[%s15411_s0 + $0xb6c] ss:$28 sps:$4 sm:$0xff]   ;;  %v2984_v3 = vcombine.high %v13116_v51, %v13119_v52  ;;  %v10982_v7 = vld [vmem:[%s15411_s0 + $0xc84] ss:$28 sps:$4 sm:$0xff]   ;;  %v11000_v51 = vld [vmem:[%s15411_s0 + $0xd9c] ss:$28 sps:$4 sm:$0xff]  }
 0x104   :  { %v5611_v37 = vpack.c.bf16 %v2479_v15, %v2353_v14  ;;  %9926 = vmatpush1.bf16.msra.mxu1 %v13069_v32  ;;  %v13141_v61 = vrot.slane %v10964_v33, %v11521_v34  ;;  %7887 = vmatpush1.bf16.msra.mxu0 %v11002_v49  ;;  %v13183_v14 = vrot.slane %v10972_v57, %v11521_v34  ;;  %v13189_v15 = vld [vmem:[%s15410_s1 + $0x554] ss:$8 sps:$4 sm:$0xff]  }
 0x105   :  { %v4280_v44 = vcombine.high %v13040_v20, %v13043_v22  ;;  %9911 = vmatprep.subr.bf16.mxu1 %v13081_v36  ;;  %v4279_v11 = vcombine.low %v13040_v20, %v13043_v22  ;;  %v13203_v20 = vld [vmem:[%s15410_s1 + $0x550] ss:$8 sps:$4 sm:$0xff]   ;;  %8049 = vmatprep.subr.bf16.mxu0 %v12943_v48  ;;  %v13224_v48 = vld [vmem:[%s15410_s1 + $0x564] ss:$8 sps:$4 sm:$0xff]   ;;  %v3236_v33 = vcombine.high %v13192_v16, %v13195_v17  ;;  %v13270_v52 = vld [vmem:[%s15410_s1 + $0x574] ss:$8 sps:$4 sm:$0xff]  }
 0x106   :  { %v3110_v30 = vcombine.high %v13180_v13, %v13183_v14  ;;  %v13229_v35 = vrot.slane %v10982_v7, %v11521_v34  ;;  %v11001_v57 = vld [vmem:[%s15411_s0 + $0xdd4] ss:$28 sps:$4 sm:$0xff]   ;;  %v3109_v2 = vcombine.low %v13180_v13, %v13183_v14  ;;  %v11008_v14 = vld [vmem:[%s15411_s0 + $0x96c] ss:$28 sps:$4 sm:$0xff]  }
 0x107   :  { %v5714_v59 = vpack.c.bf16 %v4280_v44, %v4154_v40  ;;  %v5713_v27 = vpack.c.bf16 %v4279_v11, %v4153_v10  ;;  %v10998_v44 = vld [vmem:[%s15411_s0 + $0xd2c] ss:$28 sps:$4 sm:$0xff]   ;;  %v11006_v11 = vld [vmem:[%s15411_s0 + $0x8fc] ss:$28 sps:$4 sm:$0xff]   ;;  %v11007_v13 = vld [vmem:[%s15411_s0 + $0x934] ss:$28 sps:$4 sm:$0xff]  }
 0x108   :  { %9927 = vmatpush1.bf16.msra.mxu1 %v13110_v47 }
 0x109   :  { %9912 = vmatprep.subr.bf16.mxu1 %v13136_v58 }
 0x10a   :  { %7786 = vmatmul.mubr.bf16.gmra.mrb[36].mxu0 %v5671_v45  ;;  %v13101_v45 = vrot.slane %v10960_v23, %v11521_v34  ;;  %7360 = vmatmul.mubr.bf16.gmra.mrb[20].mxu1 %v5611_v37  ;;  %v4406_v23 = vcombine.high %v13141_v61, %v13144_v63  ;;  %v13232_v37 = vrot.slane %v10983_v8, %v11521_v34 }
 0x10b   :  { %7795 = vmatprep.mubr.bf16.mxu0 %v5686_v55  ;;  %v2605_v55 = vcombine.low %v12997_v5, %v13008_v9  ;;  %7369 = vmatprep.mubr.bf16.mxu1 %v5626_v50  ;;  %v13158_v5 = vrot.slane %v10967_v42, %v11521_v34  ;;  %v13173_v9 = vld [vmem:[%s15410_s1 + $0x540] ss:$8 sps:$4 sm:$0xff]   ;;  %v10990_v42 = vld [vmem:[%s15411_s0 + $0x854] ss:$28 sps:$4 sm:$0xff]   ;;  %v4405_v50 = vcombine.low %v13141_v61, %v13144_v63 }
 0x10c   :  { %v2858_v60 = vcombine.high %v13101_v45, %v13104_v46  ;;  %9928 = vmatpush1.bf16.msra.mxu1 %v13173_v9  ;;  %v13290_v61 = vrot.slane %v10989_v41, %v11521_v34  ;;  %v13293_v63 = vrot.slane %v10990_v42, %v11521_v34  ;;  %v13313_v8 = vrot.slane %v10998_v44, %v11521_v34 }
 0x10d   :  { %v5625_v18 = vpack.c.bf16 %v2731_v56, %v2605_v55  ;;  %v4532_v24 = vcombine.high %v13155_v4, %v13158_v5  ;;  %9913 = vmatprep.subr.bf16.mxu1 %v13189_v15  ;;  %v4531_v53 = vcombine.low %v13155_v4, %v13158_v5  ;;  %v4658_v55 = vcombine.high %v13218_v31, %v13229_v35  ;;  %v11005_v4 = vld [vmem:[%s15411_s0 + $0x8c4] ss:$28 sps:$4 sm:$0xff]  }
 0x10e   :  { %v5640_v22 = vpack.c.bf16 %v2984_v3, %v2858_v60  ;;  %v13287_v60 = vrot.slane %v10988_v39, %v11521_v34  ;;  %v3235_v3 = vcombine.low %v13192_v16, %v13195_v17  ;;  %v13310_v5 = vld [vmem:[%s15410_s1 + $0x584] ss:$8 sps:$4 sm:$0xff]   ;;  %v3488_v16 = vcombine.high %v13293_v63, %v13296_v0 }
 0x10f   :  { %v5728_v40 = vpack.c.bf16 %v4532_v24, %v4406_v23  ;;  %v5727_v6 = vpack.c.bf16 %v4531_v53, %v4405_v50  ;;  %v13332_v17 = vrot.slane %v11000_v51, %v11521_v34  ;;  %v11017_v23 = vld [vmem:[%s15411_s0 + $0x48] ss:$28 sps:$4 sm:$0xff]   ;;  %v13363_v39 = vrot.slane %v11005_v4, %v11521_v34 }
 0x110   :  { %9929 = vmatpush1.bf16.msra.mxu1 %v13203_v20  ;;  %v13347_v24 = vld [vmem:[%s15410_s1 + $0x580] ss:$8 sps:$4 sm:$0xff]   ;;  %v13395_v50 = vld [vmem:[%s15410_s1 + $0x5a4] ss:$8 sps:$4 sm:$0xff]  }
 0x111   :  { %9914 = vmatprep.subr.bf16.mxu1 %v13224_v48  ;;  %v11035_v4 = vld [vmem:[%s15411_s0 + $0x128] ss:$28 sps:$4 sm:$0xff]  }
 0x112   :  { %7796 = vmatmul.mubr.bf16.gmra.mrb[40].mxu0 %v5685_v19  ;;  %v10984_v19 = vld [vmem:[%s15411_s0 + $0xcf4] ss:$28 sps:$4 sm:$0xff]   ;;  %7370 = vmatmul.mubr.bf16.gmra.mrb[24].mxu1 %v5625_v18  ;;  %v3362_v18 = vcombine.high %v13287_v60, %v13290_v61 }
 0x113   :  { %7805 = vmatprep.mubr.bf16.mxu0 %v5700_v26  ;;  %v2857_v26 = vcombine.low %v13101_v45, %v13104_v46  ;;  %v13235_v38 = vrot.slane %v10984_v19, %v11521_v34  ;;  %7379 = vmatprep.mubr.bf16.mxu1 %v5640_v22  ;;  %v10999_v45 = vld [vmem:[%s15411_s0 + $0xd64] ss:$28 sps:$4 sm:$0xff]   ;;  %v13335_v19 = vrot.slane %v11001_v57, %v11521_v34  ;;  %v11015_v22 = vld [vmem:[%s15411_s0 + $0x10] ss:$28 sps:$4 sm:$0xff]   ;;  %v11024_v57 = vld [vmem:[%s15411_s0 + $0x9dc] ss:$28 sps:$4 sm:$0xff]  }
 0x114   :  { %v13259_v46 = vld [vmem:[%s15410_s1 + $0x560] ss:$8 sps:$4 sm:$0xff]   ;;  %v13316_v10 = vrot.slane %v10999_v45, %v11521_v34  ;;  %v5668_v41 = vpack.c.bf16 %v3488_v16, %v3362_v18  ;;  %v3361_v45 = vcombine.low %v13287_v60, %v13290_v61  ;;  %v11025_v60 = vld [vmem:[%s15411_s0 + $0xa14] ss:$28 sps:$4 sm:$0xff]  }
 0x115   :  { %v5639_v49 = vpack.c.bf16 %v2983_v29, %v2857_v26  ;;  %v4784_v56 = vcombine.high %v13232_v37, %v13235_v38  ;;  %9930 = vmatpush1.bf16.msra.mxu1 %v13259_v46  ;;  %v5653_v26 = vpack.c.bf16 %v3235_v3, %v3109_v2  ;;  %v4783_v29 = vcombine.low %v13232_v37, %v13235_v38  ;;  %v11021_v38 = vld [vmem:[%s15411_s0 + $0xb8] ss:$28 sps:$4 sm:$0xff]   ;;  %v11026_v2 = vld [vmem:[%s15411_s0 + $0xa4c] ss:$28 sps:$4 sm:$0xff]  }
 0x116   :  { %9915 = vmatprep.subr.bf16.mxu1 %v13270_v52  ;;  %v13372_v37 = vrot.slane %v11008_v14, %v11521_v34  ;;  %v4910_v42 = vcombine.high %v13313_v8, %v13316_v10  ;;  %v5036_v43 = vcombine.high %v13332_v17, %v13335_v19  ;;  %v11033_v3 = vld [vmem:[%s15411_s0 + $0xf0] ss:$28 sps:$4 sm:$0xff]   ;;  %v13446_v14 = vld [vmem:[%s15410_s1 + $0x5b4] ss:$8 sps:$4 sm:$0xff]   ;;  %v5035_v18 = vcombine.low %v13332_v17, %v13335_v19 }
 0x117   :  { %v5742_v7 = vpack.c.bf16 %v4784_v56, %v4658_v55  ;;  %v13405_v55 = vrot.slane %v11017_v23, %v11521_v34  ;;  %v11023_v56 = vld [vmem:[%s15411_s0 + $0x9a4] ss:$28 sps:$4 sm:$0xff]   ;;  %v13466_v19 = vrot.slane %v11024_v57, %v11521_v34 }
 0x118   :  { %v5756_v61 = vpack.c.bf16 %v5036_v43, %v4910_v42  ;;  %v13453_v23 = vrot.slane %v11023_v56, %v11521_v34  ;;  %v11041_v42 = vld [vmem:[%s15411_s0 + $0xa84] ss:$28 sps:$4 sm:$0xff]  }
 0x119   :  { %v13492_v43 = vld [vmem:[%s15410_s1 + $0x5c4] ss:$8 sps:$4 sm:$0xff]   ;;  %v13519_v57 = vld [vmem:[%s15410_s1 + $0x5c0] ss:$8 sps:$4 sm:$0xff]  }
 0x11a   :  { %7806 = vmatmul.mubr.bf16.gmra.mrb[44].mxu0 %v5699_v54  ;;  %v5654_v54 = vpack.c.bf16 %v3236_v33, %v3110_v30  ;;  %7380 = vmatmul.mubr.bf16.gmra.mrb[28].mxu1 %v5639_v49  ;;  %v11019_v30 = vld [vmem:[%s15411_s0 + $0x80] ss:$28 sps:$4 sm:$0xff]   ;;  %v3487_v49 = vcombine.low %v13293_v63, %v13296_v0  ;;  %v13420_v0 = vrot.slane %v11021_v38, %v11521_v34 }
 0x11b   :  { %7815 = vmatprep.mubr.bf16.mxu0 %v5714_v59  ;;  %v13284_v59 = vld [vmem:[%s15410_s1 + $0x570] ss:$8 sps:$4 sm:$0xff]   ;;  %v13360_v33 = vld [vmem:[%s15410_s1 + $0x594] ss:$8 sps:$4 sm:$0xff]   ;;  %v13417_v63 = vrot.slane %v11019_v30, %v11521_v34  ;;  %v13480_v38 = vrot.slane %v11033_v3, %v11521_v34  ;;  %v13526_v3 = vrot.slane %v11041_v42, %v11521_v34 }
 0x11c   :  { %7389 = vmatprep.mubr.bf16.mxu1 %v5654_v54  ;;  %9931 = vmatpush1.bf16.msra.mxu1 %v13284_v59  ;;  %v13402_v54 = vrot.slane %v11015_v22, %v11521_v34 }
 0x11d   :  { %9916 = vmatprep.subr.bf16.mxu1 %v13310_v5  ;;  %v1290_v17 = vcombine.high %v13417_v63, %v13420_v0 }
 0x11e   :  { %v1164_v22 = vcombine.high %v13402_v54, %v13405_v55  ;;  %v1163_v56 = vcombine.low %v13402_v54, %v13405_v55  ;;  %v11051_v54 = vld [vmem:[%s15411_s0 + $0x1d0] ss:$28 sps:$4 sm:$0xff]   ;;  %v11053_v55 = vld [vmem:[%s15411_s0 + $0x208] ss:$28 sps:$4 sm:$0xff]  }
 0x120   :  { %9932 = vmatpush1.bf16.msra.mxu1 %v13347_v24 }
 0x121   :  { %9917 = vmatprep.subr.bf16.mxu1 %v13360_v33 }
 0x122   :  { %7816 = vmatmul.mubr.bf16.gmra.mrb[48].mxu0 %v5713_v27  ;;  %v4657_v27 = vcombine.low %v13218_v31, %v13229_v35  ;;  %v13366_v31 = vrot.slane %v11006_v11, %v11521_v34  ;;  %v13369_v35 = vrot.slane %v11007_v13, %v11521_v34  ;;  %7390 = vmatmul.mubr.bf16.gmra.mrb[32].mxu1 %v5653_v26 }
 0x123   :  { %7825 = vmatprep.mubr.bf16.mxu0 %v5728_v40  ;;  %v13380_v40 = vld [vmem:[%s15410_s1 + $0x590] ss:$8 sps:$4 sm:$0xff]   ;;  %7399 = vmatprep.mubr.bf16.mxu1 %v5668_v41  ;;  %v5667_v11 = vpack.c.bf16 %v3487_v49, %v3361_v45  ;;  %v4909_v13 = vcombine.low %v13313_v8, %v13316_v10  ;;  %v13469_v26 = vrot.slane %v11025_v60, %v11521_v34  ;;  %v11044_v45 = vld [vmem:[%s15411_s0 + $0xb2c] ss:$28 sps:$4 sm:$0xff]  }
 0x124   :  { %v5741_v44 = vpack.c.bf16 %v4783_v29, %v4657_v27  ;;  %v3614_v51 = vcombine.high %v13363_v39, %v13366_v31  ;;  %v3740_v53 = vcombine.high %v13369_v35, %v13372_v37  ;;  %9933 = vmatpush1.bf16.msra.mxu1 %v13380_v40  ;;  %v11039_v8 = vld [vmem:[%s15411_s0 + $0x198] ss:$28 sps:$4 sm:$0xff]   ;;  %v13472_v27 = vrot.slane %v11026_v2, %v11521_v34 }
 0x125   :  { %9918 = vmatprep.subr.bf16.mxu1 %v13395_v50  ;;  %v13461_v10 = vld [vmem:[%s15410_s1 + $0x5b0] ss:$8 sps:$4 sm:$0xff]   ;;  %v3613_v29 = vcombine.low %v13363_v39, %v13366_v31  ;;  %v3739_v30 = vcombine.low %v13369_v35, %v13372_v37  ;;  %v13483_v41 = vrot.slane %v11035_v4, %v11521_v34  ;;  %v5755_v39 = vpack.c.bf16 %v5035_v18, %v4909_v13  ;;  %v11055_v4 = vld [vmem:[%s15411_s0 + $0x240] ss:$28 sps:$4 sm:$0xff]  }
 0x126   :  { %v5682_v16 = vpack.c.bf16 %v3740_v53, %v3614_v51  ;;  %v13498_v35 = vrot.slane %v11039_v8, %v11521_v34  ;;  %v11042_v37 = vld [vmem:[%s15411_s0 + $0xabc] ss:$28 sps:$4 sm:$0xff]   ;;  %v5548_v49 = vpack.c.bf16 %v1290_v17, %v1164_v22  ;;  %v3866_v51 = vcombine.high %v13453_v23, %v13466_v19 }
 0x127   :  { %v3992_v53 = vcombine.high %v13469_v26, %v13472_v27  ;;  %v5681_v60 = vpack.c.bf16 %v3739_v30, %v3613_v29  ;;  %v1416_v2 = vcombine.high %v13480_v38, %v13483_v41  ;;  %v13552_v13 = vrot.slane %v11044_v45, %v11521_v34  ;;  %v11057_v18 = vld [vmem:[%s15411_s0 + $0x278] ss:$28 sps:$4 sm:$0xff]   ;;  %v11059_v29 = vld [vmem:[%s15411_s0 + $0xb64] ss:$28 sps:$4 sm:$0xff]  }
 0x128   :  { %v3865_v8 = vcombine.low %v13453_v23, %v13466_v19  ;;  %v3991_v17 = vcombine.low %v13469_v26, %v13472_v27  ;;  %v13574_v30 = vld [vmem:[%s15410_s1 + $0x5e4] ss:$8 sps:$4 sm:$0xff]   ;;  %v11060_v26 = vld [vmem:[%s15411_s0 + $0xb9c] ss:$28 sps:$4 sm:$0xff]   ;;  %v11061_v27 = vld [vmem:[%s15411_s0 + $0xbd4] ss:$28 sps:$4 sm:$0xff]   ;;  %v13593_v45 = vrot.slane %v11053_v55, %v11521_v34  ;;  %v13621_v55 = vrot.slane %v11059_v29, %v11521_v34 }
 0x129   :  { %v5696_v22 = vpack.c.bf16 %v3992_v53, %v3866_v51  ;;  %v13599_v51 = vrot.slane %v11057_v18, %v11521_v34  ;;  %v13604_v53 = vld [vmem:[%s15410_s1 + $0x5e0] ss:$8 sps:$4 sm:$0xff]   ;;  %v13657_v29 = vld [vmem:[%s15410_s1 + $0x5f0] ss:$8 sps:$4 sm:$0xff]  }
 0x12a   :  { %7826 = vmatmul.mubr.bf16.gmra.mrb[52].mxu0 %v5727_v6  ;;  %v11037_v6 = vld [vmem:[%s15411_s0 + $0x160] ss:$28 sps:$4 sm:$0xff]   ;;  %7400 = vmatmul.mubr.bf16.gmra.mrb[36].mxu1 %v5667_v11 }
 0x12b   :  { %7835 = vmatprep.mubr.bf16.mxu0 %v5742_v7  ;;  %v13438_v7 = vld [vmem:[%s15410_s1 + $0x5a0] ss:$8 sps:$4 sm:$0xff]   ;;  %v13495_v31 = vrot.slane %v11037_v6, %v11521_v34  ;;  %7409 = vmatprep.mubr.bf16.mxu1 %v5682_v16  ;;  %v13546_v6 = vrot.slane %v11042_v37, %v11521_v34  ;;  %v13560_v16 = vld [vmem:[%s15410_s1 + $0x5d0] ss:$8 sps:$4 sm:$0xff]  }
 0x12c   :  { %9934 = vmatpush1.bf16.msra.mxu1 %v13438_v7  ;;  %v11062_v37 = vld [vmem:[%s15411_s0 + $0xc0c] ss:$28 sps:$4 sm:$0xff]  }
 0x12d   :  { %9919 = vmatprep.subr.bf16.mxu1 %v13446_v14  ;;  %v4118_v23 = vcombine.high %v13526_v3, %v13546_v6  ;;  %v13630_v18 = vrot.slane %v11062_v37, %v11521_v34 }
 0x130   :  { %9935 = vmatpush1.bf16.msra.mxu1 %v13461_v10 }
 0x131   :  { %9920 = vmatprep.subr.bf16.mxu1 %v13492_v43 }
 0x132   :  { %7836 = vmatmul.mubr.bf16.gmra.mrb[56].mxu0 %v5741_v44  ;;  %v11043_v44 = vld [vmem:[%s15411_s0 + $0xaf4] ss:$28 sps:$4 sm:$0xff]   ;;  %7410 = vmatmul.mubr.bf16.gmra.mrb[40].mxu1 %v5681_v60 }
 0x133   :  { %7845 = vmatprep.mubr.bf16.mxu0 %v5756_v61  ;;  %v1289_v61 = vcombine.low %v13417_v63, %v13420_v0  ;;  %v13541_v63 = vld [vmem:[%s15410_s1 + $0x5d4] ss:$8 sps:$4 sm:$0xff]   ;;  %v1542_v0 = vcombine.high %v13495_v31, %v13498_v35  ;;  %v13549_v11 = vrot.slane %v11043_v44, %v11521_v34  ;;  %7419 = vmatprep.mubr.bf16.mxu1 %v5696_v22  ;;  %v11069_v60 = vld [vmem:[%s15411_s0 + $0x2b0] ss:$28 sps:$4 sm:$0xff]  }
 0x134   :  { %9936 = vmatpush1.bf16.msra.mxu1 %v13519_v57  ;;  %v13590_v44 = vrot.slane %v11051_v54, %v11521_v34  ;;  %v1541_v54 = vcombine.low %v13495_v31, %v13498_v35  ;;  %v11073_v22 = vld [vmem:[%s15411_s0 + $0x320] ss:$28 sps:$4 sm:$0xff]  }
 0x135   :  { %9921 = vmatprep.subr.bf16.mxu1 %v13541_v63  ;;  %v5547_v42 = vpack.c.bf16 %v1289_v61, %v1163_v56  ;;  %v4244_v19 = vcombine.high %v13549_v11, %v13552_v13  ;;  %v13609_v56 = vld [vmem:[%s15410_s1 + $0x5f4] ss:$8 sps:$4 sm:$0xff]   ;;  %v5695_v61 = vpack.c.bf16 %v3991_v17, %v3865_v8 }
 0x136   :  { %v1668_v31 = vcombine.high %v13590_v44, %v13593_v45  ;;  %v11075_v8 = vld [vmem:[%s15411_s0 + $0x358] ss:$28 sps:$4 sm:$0xff]  }
 0x137   :  { %v11078_v17 = vld [vmem:[%s15411_s0 + $0xc7c] ss:$28 sps:$4 sm:$0xff]   ;;  %v2037_v37 = vrot.slane %v11075_v8, %v11521_v34 }
 0x138   :  { %9937 = vmatpush1.bf16.msra.mxu1 %v13560_v16 }
 0x139   :  { %9922 = vmatprep.subr.bf16.mxu1 %v13574_v30 }
 0x13a   :  { %7846 = vmatmul.mubr.bf16.gmra.mrb[60].mxu0 %v5755_v39  ;;  %v5562_v39 = vpack.c.bf16 %v1542_v0, %v1416_v2  ;;  %v1415_v2 = vcombine.low %v13480_v38, %v13483_v41  ;;  %v13627_v0 = vrot.slane %v11061_v27, %v11521_v34  ;;  %v11071_v38 = vld [vmem:[%s15411_s0 + $0x2e8] ss:$28 sps:$4 sm:$0xff]   ;;  %v5710_v41 = vpack.c.bf16 %v4244_v19, %v4118_v23  ;;  %v11079_v23 = vld [vmem:[%s15411_s0 + $0xcb4] ss:$28 sps:$4 sm:$0xff]  }
 0x13b   :  { %7888 = vmatprep.mubr.bf16.mxu0 %v5548_v49  ;;  %v13596_v49 = vrot.slane %v11055_v4, %v11521_v34  ;;  %v13624_v4 = vrot.slane %v11060_v26, %v11521_v34  ;;  %v11080_v19 = vld [vmem:[%s15411_s0 + $0xcec] ss:$28 sps:$4 sm:$0xff]   ;;  %7420 = vmatmul.mubr.bf16.gmra.mrb[44].mxu1 %v5695_v61  ;;  %v2023_v27 = vrot.slane %v11073_v22, %v11521_v34 }
 0x13c   :  { %9938 = vmatpush1.bf16.msra.mxu1 %v13604_v53  ;;  %7429 = vmatprep.mubr.bf16.mxu1 %v5710_v41  ;;  %v4495_v8 = vcombine.low %v13627_v0, %v13630_v18 }
 0x13d   :  { %v1794_v35 = vcombine.high %v13596_v49, %v13599_v51  ;;  %9923 = vmatprep.subr.bf16.mxu1 %v13609_v56  ;;  %v4370_v26 = vcombine.high %v13621_v55, %v13624_v4  ;;  %v4369_v22 = vcombine.low %v13621_v55, %v13624_v4  ;;  %v11097_v4 = vld [vmem:[%s15411_s0 + $0xd94] ss:$28 sps:$4 sm:$0xff]  }
 0x140   :  { %9939 = vmatpush1.bf16.msra.mxu1 %v13657_v29 }
 0x142   :  { %7889 = vmatmul.mubr.bf16.vlgmr.msra.gmra.mrb[0].mxu0 %v5547_v42  ;;  %v5561_v42 = vpack.c.bf16 %v1541_v54, %v1415_v2  ;;  %v1793_v2 = vcombine.low %v13596_v49, %v13599_v51  ;;  %v11089_v54 = vld [vmem:[%s15411_s0 + $0x3c8] ss:$28 sps:$4 sm:$0xff]   ;;  %v11093_v49 = vld [vmem:[%s15411_s0 + $0x438] ss:$28 sps:$4 sm:$0xff]   ;;  %v2046_v51 = vcombine.high %v2023_v27, %v2037_v37 }
 0x143   :  { %8050 = vmatpush1.bf16.msra.mxu0 %v12982_v62  ;;  %7898 = vmatprep.mubr.bf16.mxu0 %v5562_v39  ;;  %v11077_v62 = vld [vmem:[%s15411_s0 + $0xc44] ss:$28 sps:$4 sm:$0xff]   ;;  %v4117_v39 = vcombine.low %v13526_v3, %v13546_v6  ;;  %v4496_v3 = vcombine.high %v13627_v0, %v13630_v18  ;;  %v13675_v6 = vrot.slane %v11069_v60, %v11521_v34  ;;  %v11098_v0 = vld [vmem:[%s15411_s0 + $0xdcc] ss:$28 sps:$4 sm:$0xff]  }
 0x144   :  { %8051 = vmatprep.subr.bf16.mxu0 %v12990_v1  ;;  %v4243_v1 = vcombine.low %v13549_v11, %v13552_v13  ;;  %v13678_v11 = vrot.slane %v11071_v38, %v11521_v34  ;;  %v5576_v13 = vpack.c.bf16 %v1794_v35, %v1668_v31  ;;  %v1667_v60 = vcombine.low %v13590_v44, %v13593_v45  ;;  %v11091_v45 = vld [vmem:[%s15411_s0 + $0x400] ss:$28 sps:$4 sm:$0xff]  }
 0x145   :  { %v5724_v38 = vpack.c.bf16 %v4496_v3, %v4370_v26  ;;  %v13698_v41 = vrot.slane %v11077_v62, %v11521_v34  ;;  %v13701_v44 = vrot.slane %v11078_v17, %v11521_v34  ;;  %v4730_v31 = vrot.slane %v11079_v23, %v11521_v34 }
 0x146   :  { %v5709_v61 = vpack.c.bf16 %v4243_v1, %v4117_v39  ;;  %v4744_v35 = vrot.slane %v11080_v19, %v11521_v34  ;;  %v13721_v17 = vrot.slane %v11089_v54, %v11521_v34  ;;  %v13727_v39 = vrot.slane %v11091_v45, %v11521_v34  ;;  %v11113_v54 = vld [vmem:[%s15411_s0 + $0x474] ss:$28 sps:$4 sm:$0xff]  }
 0x147   :  { %8052 = vmatpush1.bf16.msra.mxu0 %v13020_v12  ;;  %v11087_v12 = vld [vmem:[%s15411_s0 + $0x390] ss:$28 sps:$4 sm:$0xff]   ;;  %v13730_v55 = vrot.slane %v11093_v49, %v11521_v34  ;;  %v4622_v1 = vcombine.high %v13698_v41, %v13701_v44  ;;  %v5723_v19 = vpack.c.bf16 %v4495_v8, %v4369_v22  ;;  %v1919_v26 = vcombine.low %v13675_v6, %v13678_v11 }
 0x148   :  { %8053 = vmatprep.subr.bf16.mxu0 %v13054_v25  ;;  %v1920_v25 = vcombine.high %v13675_v6, %v13678_v11  ;;  %v13718_v62 = vrot.slane %v11087_v12, %v11521_v34  ;;  %7430 = vmatmul.mubr.bf16.gmra.mrb[48].mxu1 %v5709_v61  ;;  %v4748_v23 = vcombine.high %v4730_v31, %v4744_v35  ;;  %v11105_v6 = vld [vmem:[%s15411_s0 + $0x470] ss:$28 sps:$4 sm:$0xff]   ;;  %v11111_v12 = vld [vmem:[%s15411_s0 + $0x518] ss:$28 sps:$4 sm:$0xff]  }
 0x149   :  { %7439 = vmatprep.mubr.bf16.mxu1 %v5724_v38  ;;  %v2045_v3 = vcombine.low %v2023_v27, %v2037_v37  ;;  %v11107_v27 = vld [vmem:[%s15411_s0 + $0x4a8] ss:$28 sps:$4 sm:$0xff]   ;;  %v11109_v37 = vld [vmem:[%s15411_s0 + $0x4e0] ss:$28 sps:$4 sm:$0xff]   ;;  %v4621_v45 = vcombine.low %v13698_v41, %v13701_v44  ;;  %v4747_v49 = vcombine.low %v4730_v31, %v4744_v35  ;;  %v13805_v44 = vrot.slane %v11111_v12, %v11521_v34 }
 0x14a   :  { %7899 = vmatmul.mubr.bf16.gmra.mrb[4].mxu0 %v5561_v42  ;;  %v5575_v42 = vpack.c.bf16 %v1793_v2, %v1667_v60  ;;  %v5590_v18 = vpack.c.bf16 %v2046_v51, %v1920_v25  ;;  %v2298_v60 = vcombine.high %v13727_v39, %v13730_v55  ;;  %v5738_v11 = vpack.c.bf16 %v4748_v23, %v4622_v1  ;;  %v11115_v38 = vld [vmem:[%s15411_s0 + $0x4e4] ss:$28 sps:$4 sm:$0xff]  }
 0x14b   :  { %7908 = vmatprep.mubr.bf16.mxu0 %v5576_v13  ;;  %8054 = vmatpush1.bf16.msra.mxu0 %v13069_v32  ;;  %v11095_v32 = vld [vmem:[%s15411_s0 + $0xd24] ss:$28 sps:$4 sm:$0xff]   ;;  %v2172_v13 = vcombine.high %v13718_v62, %v13721_v17  ;;  %v5589_v25 = vpack.c.bf16 %v2045_v3, %v1919_v26  ;;  %v13802_v41 = vrot.slane %v11109_v37, %v11521_v34  ;;  %v11129_v37 = vld [vmem:[%s15411_s0 + $0x630] ss:$28 sps:$4 sm:$0xff]  }
 0x14c   :  { %8055 = vmatprep.subr.bf16.mxu0 %v13081_v36  ;;  %v11096_v36 = vld [vmem:[%s15411_s0 + $0xd5c] ss:$28 sps:$4 sm:$0xff]   ;;  %v13750_v61 = vrot.slane %v11095_v32, %v11521_v34  ;;  %v13796_v32 = vrot.slane %v11105_v6, %v11521_v34  ;;  %v5737_v31 = vpack.c.bf16 %v4747_v49, %v4621_v45  ;;  %v2171_v35 = vcombine.low %v13718_v62, %v13721_v17  ;;  %v11131_v12 = vld [vmem:[%s15411_s0 + $0x668] ss:$28 sps:$4 sm:$0xff]  }
 0x14d   :  { %v13755_v2 = vrot.slane %v11096_v36, %v11521_v34  ;;  %v5604_v51 = vpack.c.bf16 %v2298_v60, %v2172_v13  ;;  %v2297_v36 = vcombine.low %v13727_v39, %v13730_v55  ;;  %v13826_v62 = vrot.slane %v11115_v38, %v11521_v34  ;;  %v11121_v39 = vld [vmem:[%s15411_s0 + $0x5c0] ss:$28 sps:$4 sm:$0xff]   ;;  %v11123_v55 = vld [vmem:[%s15411_s0 + $0x5f8] ss:$28 sps:$4 sm:$0xff]  }
 0x14e   :  { %v2550_v23 = vcombine.high %v13802_v41, %v13805_v44 }
 0x14f   :  { %8056 = vmatpush1.bf16.msra.mxu0 %v13110_v47  ;;  %v13758_v47 = vrot.slane %v11097_v4, %v11521_v34  ;;  %v4874_v22 = vcombine.high %v13750_v61, %v13755_v2  ;;  %v11117_v4 = vld [vmem:[%s15411_s0 + $0x550] ss:$28 sps:$4 sm:$0xff]   ;;  %v4873_v26 = vcombine.low %v13750_v61, %v13755_v2  ;;  %v11127_v2 = vld [vmem:[%s15411_s0 + $0x5c4] ss:$28 sps:$4 sm:$0xff]  }
 0x150   :  { %8057 = vmatprep.subr.bf16.mxu0 %v13136_v58  ;;  %v13761_v58 = vrot.slane %v11098_v0, %v11521_v34  ;;  %7440 = vmatmul.mubr.bf16.gmra.mrb[52].mxu1 %v5723_v19  ;;  %v11119_v0 = vld [vmem:[%s15411_s0 + $0x588] ss:$28 sps:$4 sm:$0xff]   ;;  %v5603_v19 = vpack.c.bf16 %v2297_v36, %v2171_v35  ;;  %v13852_v6 = vrot.slane %v11117_v4, %v11521_v34  ;;  %v11140_v36 = vld [vmem:[%s15411_s0 + $0x6dc] ss:$28 sps:$4 sm:$0xff]  }
 0x151   :  { %7449 = vmatprep.mubr.bf16.mxu1 %v5738_v11  ;;  %v11126_v61 = vld [vmem:[%s15411_s0 + $0x58c] ss:$28 sps:$4 sm:$0xff]   ;;  %v2793_v11 = vrot.slane %v11123_v55, %v11521_v34  ;;  %v13918_v35 = vrot.slane %v11131_v12, %v11521_v34 }
 0x152   :  { %7909 = vmatmul.mubr.bf16.gmra.mrb[8].mxu0 %v5575_v42  ;;  %v5000_v8 = vcombine.high %v13758_v47, %v13761_v58  ;;  %v13799_v42 = vrot.slane %v11107_v27, %v11521_v34  ;;  %v4999_v3 = vcombine.low %v13758_v47, %v13761_v58  ;;  %v2779_v58 = vrot.slane %v11121_v39, %v11521_v34  ;;  %v11128_v27 = vld [vmem:[%s15411_s0 + $0x5fc] ss:$28 sps:$4 sm:$0xff]  }
 0x153   :  { %7918 = vmatprep.mubr.bf16.mxu0 %v5590_v18  ;;  %8058 = vmatpush1.bf16.msra.mxu0 %v13173_v9  ;;  %v11114_v9 = vld [vmem:[%s15411_s0 + $0x4ac] ss:$28 sps:$4 sm:$0xff]  }
 0x154   :  { %8059 = vmatprep.subr.bf16.mxu0 %v13189_v15  ;;  %v11116_v15 = vld [vmem:[%s15411_s0 + $0x51c] ss:$28 sps:$4 sm:$0xff]   ;;  %v5752_v18 = vpack.c.bf16 %v5000_v8, %v4874_v22  ;;  %v2424_v1 = vcombine.high %v13796_v32, %v13799_v42  ;;  %v2423_v38 = vcombine.low %v13796_v32, %v13799_v42  ;;  %v2786_v22 = vrot.slane %v11127_v2, %v11521_v34 }
 0x155   :  { %v13829_v17 = vrot.slane %v11116_v15, %v11521_v34  ;;  %v13892_v15 = vrot.slane %v11126_v61, %v11521_v34  ;;  %v2800_v8 = vrot.slane %v11128_v27, %v11521_v34  ;;  %v2801_v55 = vcombine.low %v2779_v58, %v2793_v11  ;;  %v11151_v27 = vld [vmem:[%s15411_s0 + $0x784] ss:$28 sps:$4 sm:$0xff]  }
 0x156   :  { %v5618_v47 = vpack.c.bf16 %v2550_v23, %v2424_v1  ;;  %v11141_v23 = vld [vmem:[%s15411_s0 + $0x710] ss:$28 sps:$4 sm:$0xff]  }
 0x157   :  { %8060 = vmatpush1.bf16.msra.mxu0 %v13203_v20  ;;  %v13820_v20 = vrot.slane %v11113_v54, %v11521_v34  ;;  %v2552_v60 = vcombine.high %v13826_v62, %v13829_v17  ;;  %v11133_v54 = vld [vmem:[%s15411_s0 + $0x6a0] ss:$28 sps:$4 sm:$0xff]   ;;  %v2551_v42 = vcombine.low %v13826_v62, %v13829_v17  ;;  %v2804_v62 = vcombine.high %v2786_v22, %v2800_v8 }
 0x158   :  { %8061 = vmatprep.subr.bf16.mxu0 %v13224_v48  ;;  %v13823_v48 = vrot.slane %v11114_v9, %v11521_v34  ;;  %7450 = vmatmul.mubr.bf16.gmra.mrb[56].mxu1 %v5737_v31  ;;  %v5751_v9 = vpack.c.bf16 %v4999_v3, %v4873_v26  ;;  %v11139_v31 = vld [vmem:[%s15411_s0 + $0x6a4] ss:$28 sps:$4 sm:$0xff]   ;;  %v3052_v3 = vrot.slane %v11140_v36, %v11521_v34 }
 0x159   :  { %7459 = vmatprep.mubr.bf16.mxu1 %v5752_v18  ;;  %v13949_v26 = vrot.slane %v11139_v31, %v11521_v34  ;;  %v2803_v61 = vcombine.low %v2786_v22, %v2800_v8  ;;  %v14004_v22 = vrot.slane %v11151_v27, %v11521_v34  ;;  %v11175_v27 = vld [vmem:[%s15411_s0 + $0x944] ss:$28 sps:$4 sm:$0xff]  }
 0x15a   :  { %7919 = vmatmul.mubr.bf16.gmra.mrb[12].mxu0 %v5589_v25  ;;  %v2426_v13 = vcombine.high %v13820_v20, %v13823_v48  ;;  %v2549_v25 = vcombine.low %v13802_v41, %v13805_v44  ;;  %v2425_v32 = vcombine.low %v13820_v20, %v13823_v48  ;;  %v11137_v41 = vld [vmem:[%s15411_s0 + $0x634] ss:$28 sps:$4 sm:$0xff]   ;;  %v11138_v44 = vld [vmem:[%s15411_s0 + $0x66c] ss:$28 sps:$4 sm:$0xff]  }
 0x15b   :  { %7928 = vmatprep.mubr.bf16.mxu0 %v5604_v51  ;;  %8062 = vmatpush1.bf16.msra.mxu0 %v13259_v46  ;;  %v13855_v46 = vrot.slane %v11119_v0, %v11521_v34  ;;  %v2802_v51 = vcombine.high %v2779_v58, %v2793_v11  ;;  %v13924_v0 = vrot.slane %v11133_v54, %v11521_v34 }
 0x15c   :  { %8063 = vmatprep.subr.bf16.mxu0 %v13270_v52  ;;  %v11125_v52 = vld [vmem:[%s15411_s0 + $0x554] ss:$28 sps:$4 sm:$0xff]   ;;  %v5620_v45 = vpack.c.bf16 %v2552_v60, %v2426_v13  ;;  %v5617_v4 = vpack.c.bf16 %v2549_v25, %v2423_v38  ;;  %v5619_v17 = vpack.c.bf16 %v2551_v42, %v2425_v32  ;;  %v13936_v1 = vrot.slane %v11137_v41, %v11521_v34  ;;  %v11145_v13 = vld [vmem:[%s15411_s0 + $0x780] ss:$28 sps:$4 sm:$0xff]   ;;  %v11155_v25 = vld [vmem:[%s15411_s0 + $0x828] ss:$28 sps:$4 sm:$0xff]  }
 0x15d   :  { %v2676_v49 = vcombine.high %v13852_v6, %v13855_v46  ;;  %v2675_v39 = vcombine.low %v13852_v6, %v13855_v46  ;;  %v11147_v60 = vld [vmem:[%s15411_s0 + $0x7b8] ss:$28 sps:$4 sm:$0xff]   ;;  %v3056_v58 = vcombine.high %v13949_v26, %v3052_v3  ;;  %v13966_v11 = vrot.slane %v11141_v23, %v11521_v34  ;;  %v11153_v38 = vld [vmem:[%s15411_s0 + $0x7f0] ss:$28 sps:$4 sm:$0xff]  }
 0x15e   :  { %v3283_v12 = vrot.slane %v11145_v13, %v11521_v34  ;;  %v3297_v54 = vrot.slane %v11147_v60, %v11521_v34  ;;  %v3055_v31 = vcombine.low %v13949_v26, %v3052_v3  ;;  %v11169_v3 = vld [vmem:[%s15411_s0 + $0x940] ss:$28 sps:$4 sm:$0xff]   ;;  %v11171_v13 = vld [vmem:[%s15411_s0 + $0x978] ss:$28 sps:$4 sm:$0xff]   ;;  %v11243_v60 = vld [vmem:[%s15410_s1 + $0x604] ss:$8 sps:$4 sm:$0xff]  }
 0x15f   :  { %8064 = vmatpush1.bf16.msra.mxu0 %v13284_v59  ;;  %v13889_v59 = vrot.slane %v11125_v52, %v11521_v34  ;;  %v5632_v48 = vpack.c.bf16 %v2802_v51, %v2676_v49  ;;  %v5631_v46 = vpack.c.bf16 %v2801_v55, %v2675_v39 }
 0x160   :  { %8065 = vmatprep.subr.bf16.mxu0 %v13310_v5  ;;  %v11135_v5 = vld [vmem:[%s15411_s0 + $0x6d8] ss:$28 sps:$4 sm:$0xff]   ;;  %7460 = vmatmul.mubr.bf16.gmra.mrb[60].mxu1 %v5751_v9  ;;  %v3306_v32 = vcombine.high %v3283_v12, %v3297_v54  ;;  %v3305_v55 = vcombine.low %v3283_v12, %v3297_v54 }
 0x161   :  { %v3045_v20 = vrot.slane %v11135_v5, %v11521_v34  ;;  %8131 = vmatprep.mubr.bf16.mxu1 %v5620_v45  ;;  %v2677_v52 = vcombine.low %v13889_v59, %v13892_v15  ;;  %v11152_v9 = vld [vmem:[%s15411_s0 + $0x7bc] ss:$28 sps:$4 sm:$0xff]  }
 0x162   :  { %7929 = vmatmul.mubr.bf16.gmra.mrb[16].mxu0 %v5603_v19  ;;  %v13946_v19 = vrot.slane %v11138_v44, %v11521_v34  ;;  %v11157_v45 = vld [vmem:[%s15411_s0 + $0x860] ss:$28 sps:$4 sm:$0xff]   ;;  %v3304_v42 = vrot.slane %v11152_v9, %v11521_v34 }
 0x163   :  { %7938 = vmatprep.mubr.bf16.mxu0 %v5618_v47  ;;  %8066 = vmatpush1.bf16.msra.mxu0 %v13347_v24  ;;  %v13915_v24 = vrot.slane %v11129_v37, %v11521_v34  ;;  %v5633_v49 = vpack.c.bf16 %v2803_v61, %v2677_v52  ;;  %v14023_v36 = vrot.slane %v11157_v45, %v11521_v34 }
 0x164   :  { %8067 = vmatprep.subr.bf16.mxu0 %v13360_v33  ;;  %v2678_v33 = vcombine.high %v13889_v59, %v13892_v15  ;;  %v2930_v47 = vcombine.high %v13936_v1, %v13946_v19  ;;  %v2929_v44 = vcombine.low %v13936_v1, %v13946_v19  ;;  %v3307_v52 = vcombine.low %v14004_v22, %v3304_v42 }
 0x165   :  { %v2928_v18 = vcombine.high %v13915_v24, %v13918_v35  ;;  %v2927_v59 = vcombine.low %v13915_v24, %v13918_v35  ;;  %v14017_v24 = vrot.slane %v11153_v38, %v11521_v34  ;;  %v14020_v35 = vrot.slane %v11155_v25, %v11521_v34 }
 0x166   :  { %v5634_v6 = vpack.c.bf16 %v2804_v62, %v2678_v33  ;;  %v5648_v15 = vpack.c.bf16 %v3056_v58, %v2930_v47  ;;  %v11163_v33 = vld [vmem:[%s15411_s0 + $0x864] ss:$28 sps:$4 sm:$0xff]   ;;  %v11164_v62 = vld [vmem:[%s15411_s0 + $0x89c] ss:$28 sps:$4 sm:$0xff]   ;;  %v11174_v58 = vld [vmem:[%s15411_s0 + $0x90c] ss:$28 sps:$4 sm:$0xff]  }
 0x167   :  { %8068 = vmatpush1.bf16.msra.mxu0 %v13380_v40  ;;  %v11143_v40 = vld [vmem:[%s15411_s0 + $0x748] ss:$28 sps:$4 sm:$0xff]   ;;  %v14063_v19 = vrot.slane %v11163_v33, %v11521_v34  ;;  %v3556_v26 = vrot.slane %v11164_v62, %v11521_v34  ;;  %v3431_v12 = vcombine.low %v14017_v24, %v14020_v35  ;;  %v14111_v45 = vrot.slane %v11174_v58, %v11521_v34  ;;  %v11200_v58 = vld [vmem:[%s15411_s0 + $0xb3c] ss:$28 sps:$4 sm:$0xff]  }
 0x168   :  { %8069 = vmatprep.subr.bf16.mxu0 %v13395_v50  ;;  %v3054_v50 = vcombine.high %v13924_v0, %v3045_v20  ;;  %8132 = vmatmul.mubr.bf16.vlgmr.msra.gmra.mrb[64].mxu1 %v5619_v17  ;;  %v3171_v37 = vrot.slane %v11143_v40, %v11521_v34  ;;  %v5647_v17 = vpack.c.bf16 %v3055_v31, %v2929_v44 }
 0x169   :  { %8141 = vmatprep.mubr.bf16.mxu1 %v5634_v6 }
 0x16a   :  { %7939 = vmatmul.mubr.bf16.gmra.mrb[20].mxu0 %v5617_v4  ;;  %v5646_v2 = vpack.c.bf16 %v3054_v50, %v2928_v18  ;;  %v3180_v8 = vcombine.high %v13966_v11, %v3171_v37  ;;  %v11162_v4 = vld [vmem:[%s15411_s0 + $0x82c] ss:$28 sps:$4 sm:$0xff]   ;;  %v3179_v39 = vcombine.low %v13966_v11, %v3171_v37  ;;  %v3432_v18 = vcombine.high %v14017_v24, %v14020_v35  ;;  %v11176_v37 = vld [vmem:[%s15411_s0 + $0x97c] ss:$28 sps:$4 sm:$0xff]   ;;  %v11187_v35 = vld [vmem:[%s15411_s0 + $0xa24] ss:$28 sps:$4 sm:$0xff]  }
 0x16b   :  { %7948 = vmatprep.mubr.bf16.mxu0 %v5632_v48  ;;  %8070 = vmatpush1.bf16.msra.mxu0 %v13438_v7  ;;  %v11149_v7 = vld [vmem:[%s15411_s0 + $0x714] ss:$28 sps:$4 sm:$0xff]   ;;  %v3308_v48 = vcombine.high %v14004_v22, %v3304_v42  ;;  %v14054_v40 = vrot.slane %v11162_v4, %v11521_v34  ;;  %v3560_v11 = vcombine.high %v14063_v19, %v3556_v26  ;;  %v11186_v24 = vld [vmem:[%s15411_s0 + $0x9ec] ss:$28 sps:$4 sm:$0xff]  }
 0x16c   :  { %8071 = vmatprep.subr.bf16.mxu0 %v13446_v14  ;;  %v11150_v14 = vld [vmem:[%s15411_s0 + $0x74c] ss:$28 sps:$4 sm:$0xff]   ;;  %v13998_v5 = vrot.slane %v11149_v7, %v11521_v34  ;;  %v5659_v6 = vpack.c.bf16 %v3305_v55, %v3179_v39  ;;  %v3787_v7 = vrot.slane %v11169_v3, %v11521_v34  ;;  %v11183_v22 = vld [vmem:[%s15411_s0 + $0xa58] ss:$28 sps:$4 sm:$0xff]   ;;  %v3559_v42 = vcombine.low %v14063_v19, %v3556_v26 }
 0x16d   :  { %v14001_v51 = vrot.slane %v11150_v14, %v11521_v34  ;;  %v3801_v14 = vrot.slane %v11171_v13, %v11521_v34  ;;  %v4053_v4 = vrot.slane %v11183_v22, %v11521_v34  ;;  %v11197_v19 = vld [vmem:[%s15411_s0 + $0xa94] ss:$28 sps:$4 sm:$0xff]   ;;  %v11198_v26 = vld [vmem:[%s15411_s0 + $0xacc] ss:$28 sps:$4 sm:$0xff]  }
 0x16f   :  { %8072 = vmatpush1.bf16.msra.mxu0 %v13461_v10  ;;  %v3053_v10 = vcombine.low %v13924_v0, %v3045_v20  ;;  %v5660_v0 = vpack.c.bf16 %v3306_v32, %v3180_v8  ;;  %v3182_v20 = vcombine.high %v13998_v5, %v14001_v51  ;;  %v11185_v32 = vld [vmem:[%s15411_s0 + $0x9b4] ss:$28 sps:$4 sm:$0xff]   ;;  %v3809_v62 = vcombine.low %v3787_v7, %v3801_v14 }
 0x170   :  { %8073 = vmatprep.subr.bf16.mxu0 %v13492_v43  ;;  %v11159_v43 = vld [vmem:[%s15411_s0 + $0x898] ss:$28 sps:$4 sm:$0xff]   ;;  %8142 = vmatmul.mubr.bf16.gmra.mrb[68].mxu1 %v5633_v49  ;;  %v11179_v49 = vld [vmem:[%s15411_s0 + $0x9e8] ss:$28 sps:$4 sm:$0xff]   ;;  %v14156_v55 = vrot.slane %v11185_v32, %v11521_v34 }
 0x171   :  { %v5645_v41 = vpack.c.bf16 %v3053_v10, %v2927_v59  ;;  %8151 = vmatprep.mubr.bf16.mxu1 %v5648_v15  ;;  %v5662_v50 = vpack.c.bf16 %v3308_v48, %v3182_v20  ;;  %v3810_v10 = vcombine.high %v3787_v7, %v3801_v14  ;;  %v3794_v15 = vrot.slane %v11175_v27, %v11521_v34  ;;  %v11189_v20 = vld [vmem:[%s15411_s0 + $0xa90] ss:$28 sps:$4 sm:$0xff]   ;;  %v11191_v48 = vld [vmem:[%s15411_s0 + $0xac8] ss:$28 sps:$4 sm:$0xff]  }
 0x172   :  { %7949 = vmatmul.mubr.bf16.gmra.mrb[24].mxu0 %v5631_v46  ;;  %v3181_v46 = vcombine.low %v13998_v5, %v14001_v51  ;;  %v3808_v5 = vrot.slane %v11176_v37, %v11521_v34  ;;  %v11181_v51 = vld [vmem:[%s15411_s0 + $0xa20] ss:$28 sps:$4 sm:$0xff]   ;;  %v3927_v31 = vrot.slane %v11179_v49, %v11521_v34  ;;  %v11203_v7 = vld [vmem:[%s15411_s0 + $0xba8] ss:$28 sps:$4 sm:$0xff]  }
 0x173   :  { %7958 = vmatprep.mubr.bf16.mxu0 %v5646_v2  ;;  %8074 = vmatpush1.bf16.msra.mxu0 %v13519_v57  ;;  %v14026_v57 = vrot.slane %v11159_v43, %v11521_v34  ;;  %v11205_v49 = vld [vmem:[%s15411_s0 + $0xbe0] ss:$28 sps:$4 sm:$0xff]   ;;  %v4431_v32 = vrot.slane %v11203_v7, %v11521_v34 }
 0x174   :  { %8075 = vmatprep.subr.bf16.mxu0 %v13541_v63  ;;  %v11161_v63 = vld [vmem:[%s15411_s0 + $0x7f4] ss:$28 sps:$4 sm:$0xff]   ;;  %v5661_v9 = vpack.c.bf16 %v3307_v52, %v3181_v46  ;;  %v4165_v46 = vrot.slane %v11189_v20, %v11521_v34  ;;  %v4179_v52 = vrot.slane %v11191_v48, %v11521_v34 }
 0x175   :  { %v3558_v1 = vcombine.high %v14023_v36, %v14026_v57  ;;  %v14051_v23 = vrot.slane %v11161_v63, %v11521_v34  ;;  %v3557_v54 = vcombine.low %v14023_v36, %v14026_v57  ;;  %v3812_v57 = vcombine.high %v3794_v15, %v3808_v5 }
 0x176   :  { %v4039_v63 = vrot.slane %v11181_v51, %v11521_v34 }
 0x177   :  { %8076 = vmatpush1.bf16.msra.mxu0 %v13560_v16  ;;  %v11165_v16 = vld [vmem:[%s15411_s0 + $0x8d0] ss:$28 sps:$4 sm:$0xff]   ;;  %v5674_v61 = vpack.c.bf16 %v3558_v1, %v3432_v18  ;;  %v3434_v2 = vcombine.high %v14051_v23, %v14054_v40  ;;  %v5673_v43 = vpack.c.bf16 %v3557_v54, %v3431_v12  ;;  %v3433_v8 = vcombine.low %v14051_v23, %v14054_v40 }
 0x178   :  { %8077 = vmatprep.subr.bf16.mxu0 %v13574_v30  ;;  %v11167_v30 = vld [vmem:[%s15411_s0 + $0x908] ss:$28 sps:$4 sm:$0xff]   ;;  %8152 = vmatmul.mubr.bf16.gmra.mrb[72].mxu1 %v5647_v17  ;;  %v14083_v47 = vrot.slane %v11165_v16, %v11521_v34  ;;  %v3934_v18 = vrot.slane %v11186_v24, %v11521_v34  ;;  %v4062_v23 = vcombine.high %v4039_v63, %v4053_v4 }
 0x179   :  { %8161 = vmatprep.mubr.bf16.mxu1 %v5662_v50  ;;  %v5676_v59 = vpack.c.bf16 %v3560_v11, %v3434_v2  ;;  %v5675_v17 = vpack.c.bf16 %v3559_v42, %v3433_v8  ;;  %v4046_v40 = vrot.slane %v11187_v35, %v11521_v34  ;;  %v11195_v50 = vld [vmem:[%s15411_s0 + $0xb38] ss:$28 sps:$4 sm:$0xff]   ;;  %v11201_v11 = vld [vmem:[%s15411_s0 + $0xb70] ss:$28 sps:$4 sm:$0xff]   ;;  %v4061_v27 = vcombine.low %v4039_v63, %v4053_v4  ;;  %v11211_v24 = vld [vmem:[%s15411_s0 + $0xbe4] ss:$28 sps:$4 sm:$0xff]  }
 0x17a   :  { %7959 = vmatmul.mubr.bf16.gmra.mrb[28].mxu0 %v5645_v41  ;;  %v4188_v12 = vcombine.high %v4165_v46, %v4179_v52  ;;  %v14193_v54 = vrot.slane %v11197_v19, %v11521_v34  ;;  %v3937_v51 = vcombine.low %v14156_v55, %v3934_v18  ;;  %v4417_v8 = vrot.slane %v11201_v11, %v11521_v34  ;;  %v11212_v35 = vld [vmem:[%s15411_s0 + $0xc1c] ss:$28 sps:$4 sm:$0xff]  }
 0x17b   :  { %7968 = vmatprep.mubr.bf16.mxu0 %v5660_v0  ;;  %8078 = vmatpush1.bf16.msra.mxu0 %v13604_v53  ;;  %v3675_v53 = vrot.slane %v11167_v30, %v11521_v34  ;;  %v11188_v0 = vld [vmem:[%s15411_s0 + $0xa5c] ss:$28 sps:$4 sm:$0xff]   ;;  %v4187_v63 = vcombine.low %v4165_v46, %v4179_v52  ;;  %v11223_v52 = vld [vmem:[%s15411_s0 + $0xcc4] ss:$28 sps:$4 sm:$0xff]  }
 0x17c   :  { %8079 = vmatprep.subr.bf16.mxu0 %v13609_v56  ;;  %v11173_v56 = vld [vmem:[%s15411_s0 + $0x8d4] ss:$28 sps:$4 sm:$0xff]   ;;  %v4060_v16 = vrot.slane %v11188_v0, %v11521_v34  ;;  %v11193_v30 = vld [vmem:[%s15411_s0 + $0xb00] ss:$28 sps:$4 sm:$0xff]   ;;  %v4440_v20 = vcombine.high %v4417_v8, %v4431_v32 }
 0x17d   :  { %v3684_v38 = vcombine.high %v14083_v47, %v3675_v53  ;;  %v14108_v25 = vrot.slane %v11173_v56, %v11521_v34  ;;  %v3683_v33 = vcombine.low %v14083_v47, %v3675_v53  ;;  %v4291_v47 = vrot.slane %v11193_v30, %v11521_v34  ;;  %v11199_v56 = vld [vmem:[%s15411_s0 + $0xb04] ss:$28 sps:$4 sm:$0xff]  }
 0x17e   :  { %v4064_v2 = vcombine.high %v4046_v40, %v4060_v16  ;;  %v4305_v53 = vrot.slane %v11195_v50, %v11521_v34  ;;  %v4063_v22 = vcombine.low %v4046_v40, %v4060_v16  ;;  %v11222_v40 = vld [vmem:[%s15411_s0 + $0xc8c] ss:$28 sps:$4 sm:$0xff]  }
 0x17f   :  { %8080 = vmatpush1.bf16.msra.mxu0 %v13657_v29  ;;  %v11177_v29 = vld [vmem:[%s15411_s0 + $0x9b0] ss:$28 sps:$4 sm:$0xff]   ;;  %v3686_v41 = vcombine.high %v14108_v25, %v14111_v45  ;;  %v5688_v36 = vpack.c.bf16 %v3810_v10, %v3684_v38  ;;  %v5687_v3 = vpack.c.bf16 %v3809_v62, %v3683_v33  ;;  %v3685_v13 = vcombine.low %v14108_v25, %v14111_v45 }
 0x180   :  { %8242 = vmatprep.subr.bf16.mxu0 %v11243_v60  ;;  %8162 = vmatmul.mubr.bf16.gmra.mrb[76].mxu1 %v5661_v9  ;;  %v3913_v44 = vrot.slane %v11177_v29, %v11521_v34  ;;  %v3811_v60 = vcombine.low %v3794_v15, %v3808_v5  ;;  %v4186_v9 = vrot.slane %v11198_v26, %v11521_v34  ;;  %v11209_v10 = vld [vmem:[%s15411_s0 + $0xb74] ss:$28 sps:$4 sm:$0xff]   ;;  %v11210_v15 = vld [vmem:[%s15411_s0 + $0xbac] ss:$28 sps:$4 sm:$0xff]  }
 0x181   :  { %8171 = vmatprep.mubr.bf16.mxu1 %v5676_v59  ;;  %v5690_v1 = vpack.c.bf16 %v3812_v57, %v3686_v41  ;;  %v4314_v25 = vcombine.high %v4291_v47, %v4305_v53  ;;  %v4298_v45 = vrot.slane %v11199_v56, %v11521_v34  ;;  %v4312_v29 = vrot.slane %v11200_v58, %v11521_v34  ;;  %v11207_v59 = vld [vmem:[%s15411_s0 + $0xc18] ss:$28 sps:$4 sm:$0xff]   ;;  %v11215_v57 = vld [vmem:[%s15411_s0 + $0xc88] ss:$28 sps:$4 sm:$0xff]  }
 0x182   :  { %7969 = vmatmul.mubr.bf16.gmra.mrb[32].mxu0 %v5659_v6  ;;  %v3936_v39 = vcombine.high %v3913_v44, %v3927_v31  ;;  %v3938_v6 = vcombine.high %v14156_v55, %v3934_v18  ;;  %v3935_v14 = vcombine.low %v3913_v44, %v3927_v31  ;;  %v5689_v37 = vpack.c.bf16 %v3811_v60, %v3685_v13  ;;  %v11217_v18 = vld [vmem:[%s15411_s0 + $0xcc0] ss:$28 sps:$4 sm:$0xff]  }
 0x183   :  { %7978 = vmatprep.mubr.bf16.mxu0 %v5674_v61  ;;  %v5716_v42 = vpack.c.bf16 %v4314_v25, %v4188_v12  ;;  %v4316_v41 = vcombine.high %v4298_v45, %v4312_v29  ;;  %v4543_v44 = vrot.slane %v11205_v49, %v11521_v34  ;;  %v4557_v31 = vrot.slane %v11207_v59, %v11521_v34  ;;  %v11233_v25 = vld [vmem:[%s15411_s0 + $0xd34] ss:$28 sps:$4 sm:$0xff]  }
 0x184   :  { %v5702_v61 = vpack.c.bf16 %v4062_v23, %v3936_v39  ;;  %v5704_v38 = vpack.c.bf16 %v4064_v2, %v3938_v6  ;;  %v5701_v5 = vpack.c.bf16 %v4061_v27, %v3935_v14  ;;  %v4313_v4 = vcombine.low %v4291_v47, %v4305_v53  ;;  %v11221_v23 = vld [vmem:[%s15411_s0 + $0xc54] ss:$28 sps:$4 sm:$0xff]   ;;  %v11227_v47 = vld [vmem:[%s15411_s0 + $0xd68] ss:$28 sps:$4 sm:$0xff]  }
 0x185   :  { %v5703_v0 = vpack.c.bf16 %v4063_v22, %v3937_v51  ;;  %v14229_v48 = vrot.slane %v11209_v10, %v11521_v34  ;;  %v4438_v33 = vrot.slane %v11210_v15, %v11521_v34  ;;  %v4550_v39 = vrot.slane %v11211_v24, %v11521_v34  ;;  %v11225_v2 = vld [vmem:[%s15411_s0 + $0xd30] ss:$28 sps:$4 sm:$0xff]  }
 0x186   :  { %v4564_v55 = vrot.slane %v11212_v35, %v11521_v34  ;;  %v5715_v16 = vpack.c.bf16 %v4313_v4, %v4187_v63  ;;  %v4189_v30 = vcombine.low %v14193_v54, %v4186_v9  ;;  %v4315_v50 = vcombine.low %v4298_v45, %v4312_v29  ;;  %v11234_v45 = vld [vmem:[%s15411_s0 + $0xd6c] ss:$28 sps:$4 sm:$0xff]  }
 0x187   :  { %v4442_v19 = vcombine.high %v14229_v48, %v4438_v33  ;;  %v4795_v6 = vrot.slane %v11217_v18, %v11521_v34  ;;  %v4439_v53 = vcombine.low %v4417_v8, %v4431_v32  ;;  %v4565_v56 = vcombine.low %v4543_v44, %v4557_v31  ;;  %v11235_v32 = vld [vmem:[%s15411_s0 + $0xda4] ss:$28 sps:$4 sm:$0xff]  }
 0x188   :  { %8172 = vmatmul.mubr.bf16.gmra.mrb[80].mxu1 %v5675_v17  ;;  %v4566_v17 = vcombine.high %v4543_v44, %v4557_v31  ;;  %v4568_v60 = vcombine.high %v4550_v39, %v4564_v55  ;;  %v5717_v58 = vpack.c.bf16 %v4315_v50, %v4189_v30  ;;  %v4676_v7 = vrot.slane %v11221_v23, %v11521_v34  ;;  %v11238_v44 = vld [vmem:[%s15411_s0 + $0x4c] ss:$28 sps:$4 sm:$0xff]  }
 0x189   :  { %8181 = vmatprep.mubr.bf16.mxu1 %v5690_v1  ;;  %v11219_v1 = vld [vmem:[%s15411_s0 + $0xcf8] ss:$28 sps:$4 sm:$0xff]   ;;  %v4690_v14 = vrot.slane %v11222_v40, %v11521_v34  ;;  %v4802_v12 = vrot.slane %v11223_v52, %v11521_v34  ;;  %v5729_v29 = vpack.c.bf16 %v4565_v56, %v4439_v53  ;;  %v4441_v49 = vcombine.low %v14229_v48, %v4438_v33  ;;  %v11239_v33 = vld [vmem:[%s15411_s0 + $0x84] ss:$28 sps:$4 sm:$0xff]   ;;  %v11248_v52 = vld [vmem:[%s15411_s0 + $0x12c] ss:$28 sps:$4 sm:$0xff]  }
 0x18a   :  { %7979 = vmatmul.mubr.bf16.gmra.mrb[36].mxu0 %v5673_v43  ;;  %v4190_v43 = vcombine.high %v14193_v54, %v4186_v9  ;;  %v5730_v13 = vpack.c.bf16 %v4566_v17, %v4440_v20  ;;  %v4809_v46 = vrot.slane %v11219_v1, %v11521_v34  ;;  %v5732_v27 = vpack.c.bf16 %v4568_v60, %v4442_v19  ;;  %v11229_v9 = vld [vmem:[%s15411_s0 + $0xda0] ss:$28 sps:$4 sm:$0xff]   ;;  %v11247_v19 = vld [vmem:[%s15411_s0 + $0xf4] ss:$28 sps:$4 sm:$0xff]  }
 0x18b   :  { %7988 = vmatprep.mubr.bf16.mxu0 %v5688_v36  ;;  %v11213_v36 = vld [vmem:[%s15411_s0 + $0xc50] ss:$28 sps:$4 sm:$0xff]   ;;  %v4567_v59 = vcombine.low %v4550_v39, %v4564_v55  ;;  %v4694_v10 = vcombine.high %v4676_v7, %v4690_v14  ;;  %v4921_v15 = vrot.slane %v11225_v2, %v11521_v34  ;;  %v4942_v63 = vrot.slane %v11234_v45, %v11521_v34  ;;  %v11250_v2 = vld [vmem:[%s15411_s0 + $0x19c] ss:$28 sps:$4 sm:$0xff]  }
 0x18c   :  { %v5718_v62 = vpack.c.bf16 %v4316_v41, %v4190_v43  ;;  %v4669_v26 = vrot.slane %v11213_v36, %v11521_v34  ;;  %v5047_v43 = vrot.slane %v11229_v9, %v11521_v34  ;;  %v11237_v41 = vld [vmem:[%s15411_s0 + $0x14] ss:$28 sps:$4 sm:$0xff]   ;;  %v4817_v24 = vcombine.low %v4795_v6, %v4809_v46  ;;  %v11258_v45 = vld [vmem:[%s15411_s0 + $0x20c] ss:$28 sps:$4 sm:$0xff]  }
 0x18d   :  { %v5731_v35 = vpack.c.bf16 %v4567_v59, %v4441_v49  ;;  %v5054_v20 = vrot.slane %v11235_v32, %v11521_v34  ;;  %v4693_v39 = vcombine.low %v4676_v7, %v4690_v14  ;;  %v1148_v1 = vrot.slane %v11237_v41, %v11521_v34  ;;  %v11260_v49 = vld [vmem:[%s15411_s0 + $0x27c] ss:$28 sps:$4 sm:$0xff]   ;;  %v11241_v59 = vld [vmem:[%s15410_s1 + $0x600] ss:$8 sps:$4 sm:$0xff]   ;;  %v11264_v32 = vld [vmem:[%s15411_s0 + $0x2b4] ss:$28 sps:$4 sm:$0xff]  }
 0x18e   :  { %v1162_v23 = vrot.slane %v11238_v44, %v11521_v34  ;;  %v1274_v30 = vrot.slane %v11239_v33, %v11521_v34  ;;  %v1414_v7 = vrot.slane %v11248_v52, %v11521_v34  ;;  %v11265_v41 = vld [vmem:[%s15411_s0 + $0x2ec] ss:$28 sps:$4 sm:$0xff]  }
 0x190   :  { %8182 = vmatmul.mubr.bf16.gmra.mrb[84].mxu1 %v5689_v37  ;;  %v4818_v37 = vcombine.high %v4795_v6, %v4809_v46  ;;  %v1166_v6 = vcombine.high %v1148_v1, %v1162_v23 }
 0x191   :  { %8191 = vmatprep.mubr.bf16.mxu1 %v5704_v38  ;;  %v11231_v38 = vld [vmem:[%s15411_s0 + $0xdd8] ss:$28 sps:$4 sm:$0xff]  }
 0x192   :  { %7989 = vmatmul.mubr.bf16.gmra.mrb[40].mxu0 %v5687_v3  ;;  %v4683_v3 = vrot.slane %v11215_v57, %v11521_v34  ;;  %v5061_v8 = vrot.slane %v11231_v38, %v11521_v34  ;;  %v4928_v57 = vrot.slane %v11233_v25, %v11521_v34 }
 0x193   :  { %7998 = vmatprep.mubr.bf16.mxu0 %v5702_v61  ;;  %v11224_v61 = vld [vmem:[%s15411_s0 + $0xcfc] ss:$28 sps:$4 sm:$0xff]  }
 0x194   :  { %v4692_v11 = vcombine.high %v4669_v26, %v4683_v3  ;;  %v4816_v54 = vrot.slane %v11224_v61, %v11521_v34  ;;  %v4691_v31 = vcombine.low %v4669_v26, %v4683_v3  ;;  %v4946_v18 = vcombine.high %v4928_v57, %v4942_v63  ;;  %v11249_v61 = vld [vmem:[%s15411_s0 + $0x164] ss:$28 sps:$4 sm:$0xff]  }
 0x195   :  { %v4945_v53 = vcombine.low %v4928_v57, %v4942_v63  ;;  %v1526_v14 = vrot.slane %v11249_v61, %v11521_v34  ;;  %v11266_v63 = vld [vmem:[%s15411_s0 + $0x324] ss:$28 sps:$4 sm:$0xff]  }
 0x196   :  { %v5744_v51 = vpack.c.bf16 %v4818_v37, %v4692_v11  ;;  %v4820_v22 = vcombine.high %v4802_v12, %v4816_v54  ;;  %v5743_v17 = vpack.c.bf16 %v4817_v24, %v4691_v31  ;;  %v4819_v55 = vcombine.low %v4802_v12, %v4816_v54  ;;  %v11257_v37 = vld [vmem:[%s15411_s0 + $0x1d4] ss:$28 sps:$4 sm:$0xff]   ;;  %v11263_v61 = vld [vmem:[%s15410_s1 + $0x644] ss:$8 sps:$4 sm:$0xff]  }
 0x197   :  { %v1165_v54 = vcombine.low %v1148_v1, %v1162_v23  ;;  %v11256_v23 = vld [vmem:[%s15410_s1 + $0x634] ss:$8 sps:$4 sm:$0xff]  }
 0x198   :  { %8192 = vmatmul.mubr.bf16.gmra.mrb[88].mxu1 %v5703_v0  ;;  %v5746_v4 = vpack.c.bf16 %v4820_v22, %v4694_v10  ;;  %v5070_v0 = vcombine.high %v5047_v43, %v5061_v8  ;;  %v5745_v26 = vpack.c.bf16 %v4819_v55, %v4693_v39  ;;  %v1666_v22 = vrot.slane %v11258_v45, %v11521_v34  ;;  %v11284_v45 = vld [vmem:[%s15411_s0 + $0x18] ss:$28 sps:$4 sm:$0xff]  }
 0x199   :  { %8201 = vmatprep.mubr.bf16.mxu1 %v5718_v62  ;;  %v11240_v62 = vld [vmem:[%s15411_s0 + $0xbc] ss:$28 sps:$4 sm:$0xff]   ;;  %v1918_v55 = vrot.slane %v11265_v41, %v11521_v34 }
 0x19a   :  { %7999 = vmatmul.mubr.bf16.gmra.mrb[44].mxu0 %v5701_v5  ;;  %v4935_v5 = vrot.slane %v11227_v47, %v11521_v34  ;;  %v1288_v50 = vrot.slane %v11240_v62, %v11521_v34  ;;  %v1904_v62 = vrot.slane %v11264_v32, %v11521_v34  ;;  %v1175_v32 = vrot.slane %v11284_v45, %v11521_v34 }
 0x19b   :  { %8008 = vmatprep.mubr.bf16.mxu0 %v5716_v42  ;;  %v11236_v42 = vld [vmem:[%s15411_s0 + $0xddc] ss:$28 sps:$4 sm:$0xff]  }
 0x19c   :  { %v4944_v36 = vcombine.high %v4921_v15, %v4935_v5  ;;  %v5068_v48 = vrot.slane %v11236_v42, %v11521_v34  ;;  %v4943_v3 = vcombine.low %v4921_v15, %v4935_v5  ;;  %v1292_v46 = vcombine.high %v1274_v30, %v1288_v50  ;;  %v11246_v15 = vld [vmem:[%s15410_s1 + $0x614] ss:$8 sps:$4 sm:$0xff]   ;;  %v11244_v42 = vld [vmem:[%s15410_s1 + $0x610] ss:$8 sps:$4 sm:$0xff]  }
 0x19d   :  { %v1291_v9 = vcombine.low %v1274_v30, %v1288_v50  ;;  %v1652_v5 = vrot.slane %v11257_v37, %v11521_v34  ;;  %v11274_v30 = vld [vmem:[%s15411_s0 + $0x394] ss:$28 sps:$4 sm:$0xff]   ;;  %v11275_v50 = vld [vmem:[%s15411_s0 + $0x3cc] ss:$28 sps:$4 sm:$0xff]  }
 0x19e   :  { %v5758_v40 = vpack.c.bf16 %v5070_v0, %v4944_v36  ;;  %v5071_v56 = vcombine.low %v5054_v20, %v5068_v48  ;;  %v5550_v11 = vpack.c.bf16 %v1292_v46, %v1166_v6  ;;  %v1922_v6 = vcombine.high %v1904_v62, %v1918_v55  ;;  %v11268_v37 = vld [vmem:[%s15410_s1 + $0x650] ss:$8 sps:$4 sm:$0xff]  }
 0x19f   :  { %v5549_v10 = vpack.c.bf16 %v1291_v9, %v1165_v54  ;;  %v1670_v36 = vcombine.high %v1652_v5, %v1666_v22  ;;  %v1921_v54 = vcombine.low %v1904_v62, %v1918_v55  ;;  %v11290_v55 = vld [vmem:[%s15411_s0 + $0x168] ss:$28 sps:$4 sm:$0xff]  }
 0x1a0   :  { %8202 = vmatmul.mubr.bf16.gmra.mrb[92].mxu1 %v5717_v58  ;;  %v1400_v58 = vrot.slane %v11247_v19, %v11521_v34  ;;  %v5759_v12 = vpack.c.bf16 %v5071_v56, %v4945_v53  ;;  %v2156_v53 = vrot.slane %v11274_v30, %v11521_v34  ;;  %v2170_v56 = vrot.slane %v11275_v50, %v11521_v34  ;;  %v11281_v50 = vld [vmem:[%s15410_s1 + $0x680] ss:$8 sps:$4 sm:$0xff]  }
 0x1a1   :  { %8211 = vmatprep.mubr.bf16.mxu1 %v5732_v27  ;;  %v1540_v27 = vrot.slane %v11250_v2, %v11521_v34 }
 0x1a2   :  { %8009 = vmatmul.mubr.bf16.gmra.mrb[48].mxu0 %v5715_v16  ;;  %v5072_v16 = vcombine.high %v5054_v20, %v5068_v48  ;;  %v1418_v38 = vcombine.high %v1400_v58, %v1414_v7  ;;  %v1417_v31 = vcombine.low %v1400_v58, %v1414_v7  ;;  %v11253_v20 = vld [vmem:[%s15410_s1 + $0x624] ss:$8 sps:$4 sm:$0xff]   ;;  %v11261_v7 = vld [vmem:[%s15410_s1 + $0x640] ss:$8 sps:$4 sm:$0xff]  }
 0x1a3   :  { %8018 = vmatprep.mubr.bf16.mxu0 %v5730_v13  ;;  %v5069_v13 = vcombine.low %v5047_v43, %v5061_v8  ;;  %v1544_v25 = vcombine.high %v1526_v14, %v1540_v27  ;;  %v1792_v8 = vrot.slane %v11260_v49, %v11521_v34  ;;  %v1543_v24 = vcombine.low %v1526_v14, %v1540_v27  ;;  %v11270_v27 = vld [vmem:[%s15410_s1 + $0x654] ss:$8 sps:$4 sm:$0xff]  }
 0x1a4   :  { %v5760_v60 = vpack.c.bf16 %v5072_v16, %v4946_v18  ;;  %v2030_v18 = vrot.slane %v11266_v63, %v11521_v34  ;;  %v2173_v63 = vcombine.low %v2156_v53, %v2170_v56 }
 0x1a5   :  { %v5757_v47 = vpack.c.bf16 %v5069_v13, %v4943_v3  ;;  %v5563_v33 = vpack.c.bf16 %v1543_v24, %v1417_v31  ;;  %v11277_v3 = vld [vmem:[%s15411_s0 + $0x43c] ss:$28 sps:$4 sm:$0xff]  }
 0x1a6   :  { %v11280_v24 = vld [vmem:[%s15410_s1 + $0x674] ss:$8 sps:$4 sm:$0xff]  }
 0x1a8   :  { %8212 = vmatmul.mubr.bf16.gmra.mrb[96].mxu1 %v5731_v35 }
 0x1a9   :  { %8221 = vmatprep.mubr.bf16.mxu1 %v5746_v4  ;;  %v11267_v4 = vld [vmem:[%s15411_s0 + $0x35c] ss:$28 sps:$4 sm:$0xff]  }
 0x1aa   :  { %8019 = vmatmul.mubr.bf16.gmra.mrb[52].mxu0 %v5729_v29  ;;  %v11259_v29 = vld [vmem:[%s15411_s0 + $0x244] ss:$28 sps:$4 sm:$0xff]   ;;  %v2044_v1 = vrot.slane %v11267_v4, %v11521_v34 }
 0x1ab   :  { %8028 = vmatprep.mubr.bf16.mxu0 %v5744_v51  ;;  %v5564_v51 = vpack.c.bf16 %v1544_v25, %v1418_v38  ;;  %v1778_v43 = vrot.slane %v11259_v29, %v11521_v34  ;;  %v2174_v38 = vcombine.high %v2156_v53, %v2170_v56  ;;  %v11285_v29 = vld [vmem:[%s15411_s0 + $0x50] ss:$28 sps:$4 sm:$0xff]   ;;  %v11292_v53 = vld [vmem:[%s15411_s0 + $0x1d8] ss:$28 sps:$4 sm:$0xff]  }
 0x1ac   :  { %v2048_v46 = vcombine.high %v2030_v18, %v2044_v1  ;;  %v2047_v9 = vcombine.low %v2030_v18, %v2044_v1  ;;  %v11291_v18 = vld [vmem:[%s15411_s0 + $0x1a0] ss:$28 sps:$4 sm:$0xff]   ;;  %v11293_v56 = vld [vmem:[%s15411_s0 + $0x210] ss:$28 sps:$4 sm:$0xff]  }
 0x1ad   :  { %v1796_v57 = vcombine.high %v1778_v43, %v1792_v8  ;;  %v1795_v16 = vcombine.low %v1778_v43, %v1792_v8  ;;  %v11271_v8 = vld [vmem:[%s15410_s1 + $0x660] ss:$8 sps:$4 sm:$0xff]   ;;  %v1686_v45 = vrot.slane %v11293_v56, %v11521_v34  ;;  %v15421_v56 = vmov 0  }
 0x1ae   :  { %v5592_v14 = vpack.c.bf16 %v2048_v46, %v1922_v6  ;;  %v1560_v6 = vrot.slane %v11291_v18, %v11521_v34  ;;  %8699 = vmatprep.subr.bf16.mxu1 %v15421_v56  ;;  %10392 = vset.pattern.permute.xlu0 %v15421_v56 }
 0x1af   :  { %v5578_v39 = vpack.c.bf16 %v1796_v57, %v1670_v36  ;;  %v11278_v36 = vld [vmem:[%s15410_s1 + $0x670] ss:$8 sps:$4 sm:$0xff]  }
 0x1b0   :  { %8222 = vmatmul.mubr.bf16.gmra.mrb[100].mxu1 %v5745_v26  ;;  %v11276_v26 = vld [vmem:[%s15411_s0 + $0x404] ss:$28 sps:$4 sm:$0xff]  }
 0x1b1   :  { %8231 = vmatprep.mubr.bf16.mxu1 %v5760_v60  ;;  %v11254_v60 = vld [vmem:[%s15410_s1 + $0x630] ss:$8 sps:$4 sm:$0xff]   ;;  %v2282_v58 = vrot.slane %v11276_v26, %v11521_v34 }
 0x1b2   :  { %8029 = vmatmul.mubr.bf16.gmra.mrb[56].mxu0 %v5743_v17  ;;  %v11251_v17 = vld [vmem:[%s15410_s1 + $0x620] ss:$8 sps:$4 sm:$0xff]  }
 0x1b3   :  { %8038 = vmatprep.mubr.bf16.mxu0 %v5758_v40  ;;  %v1669_v40 = vcombine.low %v1652_v5, %v1666_v22  ;;  %v11273_v5 = vld [vmem:[%s15410_s1 + $0x664] ss:$8 sps:$4 sm:$0xff]   ;;  %v5591_v22 = vpack.c.bf16 %v2047_v9, %v1921_v54 }
 0x1b5   :  { %v14358_v44 = vpop.f32.mrb[0].mxu1 }
 0x1b6   :  { %15427 = vst [vmem:[#allocation4_spill] sm:$0xff] %v14358_v44  ;;  %v14360_v35 = vpop.f32.mrb[1].mxu1 }
 0x1b7   :  { %15428 = vst [vmem:[#allocation5_spill] sm:$0xff] %v14360_v35  ;;  %v14368_v0 = vpop.f32.mrb[2].mxu1 }
 0x1b8   :  { %8232 = vmatmul.mubr.bf16.gmra.mrb[104].mxu1 %v5759_v12  ;;  %15429 = vst [vmem:[#allocation6_spill] sm:$0xff] %v14368_v0  ;;  %v14373_v48 = vpop.f32.mrb[3].mxu1 }
 0x1b9   :  { %15430 = vst [vmem:[#allocation7_spill] sm:$0xff] %v14373_v48 }
 0x1ba   :  { %8039 = vmatmul.mubr.bf16.gmra.mrb[60].mxu0 %v5757_v47  ;;  %v5577_v47 = vpack.c.bf16 %v1795_v16, %v1669_v40 }
 0x1bb   :  { %8081 = vmatprep.mubr.bf16.mxu0 %v5550_v11  ;;  %v2296_v11 = vrot.slane %v11277_v3, %v11521_v34 }
 0x1bd   :  { %v14391_v19 = vpop.f32.mrb[4].mxu1  ;;  %v2300_v25 = vcombine.high %v2282_v58, %v2296_v11  ;;  %v2299_v4 = vcombine.low %v2282_v58, %v2296_v11 }
 0x1be   :  { %15431 = vst [vmem:[#allocation8_spill] sm:$0xff] %v14391_v19  ;;  %v14399_v13 = vpop.f32.mrb[5].mxu1 }
 0x1bf   :  { %15432 = vst [vmem:[#allocation9_spill] sm:$0xff] %v14399_v13  ;;  %v14404_v52 = vpop.f32.mrb[6].mxu1  ;;  %v5606_v43 = vpack.c.bf16 %v2300_v25, %v2174_v38  ;;  %v5605_v16 = vpack.c.bf16 %v2299_v4, %v2173_v63  ;;  %v1679_v38 = vrot.slane %v11292_v53, %v11521_v34  ;;  %v11332_v13 = vld [vmem:[%s15411_s0 + $0xa98] ss:$28 sps:$4 sm:$0xff]  }
 0x1c0   :  { %15433 = vst [vmem:[#allocation10_spill] sm:$0xff] %v14404_v52  ;;  %v14409_v2 = vpop.f32.mrb[7].mxu1  ;;  %v14812_v0 = vrot.slane %v11332_v13, %v11521_v34 }
 0x1c1   :  { %15434 = vst [vmem:[#allocation11_spill] sm:$0xff] %v14409_v2 }
 0x1c2   :  { %8082 = vmatmul.mubr.bf16.vlgmr.msra.gmra.mrb[0].mxu0 %v5549_v10  ;;  %v11287_v10 = vld [vmem:[%s15411_s0 + $0xc0] ss:$28 sps:$4 sm:$0xff]  }
 0x1c3   :  { %8243 = vmatpush1.bf16.msra.mxu0 %v11241_v59  ;;  %8091 = vmatprep.mubr.bf16.mxu0 %v5564_v51  ;;  %v11286_v59 = vld [vmem:[%s15411_s0 + $0x88] ss:$28 sps:$4 sm:$0xff]   ;;  %v1308_v31 = vrot.slane %v11287_v10, %v11521_v34 }
 0x1c4   :  { %8244 = vmatprep.subr.bf16.mxu0 %v11246_v15  ;;  %v1301_v41 = vrot.slane %v11286_v59, %v11521_v34 }
 0x1c5   :  { %v14424_v12 = vpop.f32.mrb[8].mxu1 }
 0x1c6   :  { %15435 = vst [vmem:[#allocation12_spill] sm:$0xff] %v14424_v12  ;;  %v14432_v49 = vpop.f32.mrb[9].mxu1 }
 0x1c7   :  { %8245 = vmatpush1.bf16.msra.mxu0 %v11244_v42  ;;  %15436 = vst [vmem:[#allocation13_spill] sm:$0xff] %v14432_v49  ;;  %v14440_v15 = vpop.f32.mrb[10].mxu1  ;;  %v1182_v42 = vrot.slane %v11285_v29, %v11521_v34 }
 0x1c8   :  { %8246 = vmatprep.subr.bf16.mxu0 %v11253_v20  ;;  %15437 = vst [vmem:[#allocation14_spill] sm:$0xff] %v14440_v15  ;;  %v14445_v51 = vpop.f32.mrb[11].mxu1  ;;  %v11288_v20 = vld [vmem:[%s15411_s0 + $0xf8] ss:$28 sps:$4 sm:$0xff]  }
 0x1c9   :  { %15438 = vst [vmem:[#allocation15_spill] sm:$0xff] %v14445_v51  ;;  %v1427_v30 = vrot.slane %v11288_v20, %v11521_v34 }
 0x1ca   :  { %8092 = vmatmul.mubr.bf16.gmra.mrb[4].mxu0 %v5563_v33  ;;  %v11289_v33 = vld [vmem:[%s15411_s0 + $0x130] ss:$28 sps:$4 sm:$0xff]  }
 0x1cb   :  { %8247 = vmatpush1.bf16.msra.mxu0 %v11251_v17  ;;  %8101 = vmatprep.mubr.bf16.mxu0 %v5578_v39  ;;  %v1184_v17 = vcombine.high %v1175_v32, %v1182_v42  ;;  %v1310_v39 = vcombine.high %v1301_v41, %v1308_v31  ;;  %v1434_v3 = vrot.slane %v11289_v33, %v11521_v34 }
 0x1cc   :  { %8248 = vmatprep.subr.bf16.mxu0 %v11256_v23  ;;  %v11283_v23 = vld [vmem:[%s15410_s1 + $0x684] ss:$8 sps:$4 sm:$0xff]  }
 0x1cd   :  { %v14460_v57 = vpop.f32.mrb[12].mxu1  ;;  %v5552_v26 = vpack.c.bf16 %v1310_v39, %v1184_v17  ;;  %v1436_v11 = vcombine.high %v1427_v30, %v1434_v3 }
 0x1ce   :  { %15439 = vst [vmem:[#allocation16_spill] sm:$0xff] %v14460_v57  ;;  %v14468_v62 = vpop.f32.mrb[13].mxu1 }
 0x1cf   :  { %8249 = vmatpush1.bf16.msra.mxu0 %v11254_v60  ;;  %15440 = vst [vmem:[#allocation17_spill] sm:$0xff] %v14468_v62  ;;  %v14476_v1 = vpop.f32.mrb[14].mxu1  ;;  %v1553_v60 = vrot.slane %v11290_v55, %v11521_v34 }
 0x1d0   :  { %8250 = vmatprep.subr.bf16.mxu0 %v11263_v61  ;;  %15441 = vst [vmem:[#allocation18_spill] sm:$0xff] %v14476_v1  ;;  %v14481_v40 = vpop.f32.mrb[15].mxu1  ;;  %v1183_v61 = vcombine.low %v1175_v32, %v1182_v42  ;;  %v1688_v42 = vcombine.high %v1679_v38, %v1686_v45 }
 0x1d1   :  { %15442 = vst [vmem:[#allocation19_spill] sm:$0xff] %v14481_v40 }
 0x1d2   :  { %8102 = vmatmul.mubr.bf16.gmra.mrb[8].mxu0 %v5577_v47  ;;  %v1309_v47 = vcombine.low %v1301_v41, %v1308_v31  ;;  %v11298_v31 = vld [vmem:[%s15411_s0 + $0x328] ss:$28 sps:$4 sm:$0xff]  }
 0x1d3   :  { %8251 = vmatpush1.bf16.msra.mxu0 %v11261_v7  ;;  %8111 = vmatprep.mubr.bf16.mxu0 %v5592_v14  ;;  %v1562_v7 = vcombine.high %v1553_v60, %v1560_v6  ;;  %v11294_v14 = vld [vmem:[%s15411_s0 + $0x248] ss:$28 sps:$4 sm:$0xff]   ;;  %v2057_v39 = vrot.slane %v11298_v31, %v11521_v34 }
 0x1d4   :  { %8252 = vmatprep.subr.bf16.mxu0 %v11270_v27  ;;  %v11295_v27 = vld [vmem:[%s15411_s0 + $0x280] ss:$28 sps:$4 sm:$0xff]   ;;  %v5551_v9 = vpack.c.bf16 %v1309_v47, %v1183_v61  ;;  %v1805_v29 = vrot.slane %v11294_v14, %v11521_v34 }
 0x1d5   :  { %v14490_v46 = vpop.f32.mrb[16].mxu1  ;;  %v5566_v25 = vpack.c.bf16 %v1562_v7, %v1436_v11  ;;  %v1812_v59 = vrot.slane %v11295_v27, %v11521_v34  ;;  %v11303_v61 = vld [vmem:[%s15411_s0 + $0x440] ss:$28 sps:$4 sm:$0xff]  }
 0x1d6   :  { %15443 = vst [vmem:[#allocation20_spill] sm:$0xff] %v14490_v46  ;;  %v14498_v58 = vpop.f32.mrb[17].mxu1  ;;  %v11348_v11 = vld [vmem:[%s15412_s3] sm:$0xff]  }
 0x1d7   :  { %8253 = vmatpush1.bf16.msra.mxu0 %v11268_v37  ;;  %15444 = vst [vmem:[#allocation21_spill] sm:$0xff] %v14498_v58  ;;  %v14507_v37 = vpop.f32.mrb[18].mxu1  ;;  %v1814_v41 = vcombine.high %v1805_v29, %v1812_v59  ;;  %8700 = vmatpush1.bf16.msra.mxu1 %v11348_v11  ;;  %v15447_v58 = vmov 0  }
 0x1d8   :  { %8254 = vmatprep.subr.bf16.mxu0 %v11273_v5  ;;  %15445 = vst [vmem:[#allocation22_spill] sm:$0xff] %v14507_v37  ;;  %v14509_v54 = vpop.f32.mrb[19].mxu1  ;;  %v1435_v5 = vcombine.low %v1427_v30, %v1434_v3  ;;  %v11300_v30 = vld [vmem:[%s15411_s0 + $0x398] ss:$28 sps:$4 sm:$0xff]   ;;  %8701 = vmatprep.subr.bf16.mxu1 %v15421_v56 }
 0x1d9   :  { %15446 = vst [vmem:[#allocation23_spill] sm:$0xff] %v14509_v54  ;;  %v5580_v33 = vpack.c.bf16 %v1814_v41, %v1688_v42  ;;  %v2183_v14 = vrot.slane %v11300_v30, %v11521_v34  ;;  %v11350_v30 = vld [vmem:[%s15412_s3 + $0x10] sm:$0xff]  }
 0x1da   :  { %8112 = vmatmul.mubr.bf16.gmra.mrb[12].mxu0 %v5591_v22  ;;  %v1561_v22 = vcombine.low %v1553_v60, %v1560_v6  ;;  %v11302_v6 = vld [vmem:[%s15411_s0 + $0x408] ss:$28 sps:$4 sm:$0xff]  }
 0x1db   :  { %8255 = vmatpush1.bf16.msra.mxu0 %v11271_v8  ;;  %8121 = vmatprep.mubr.bf16.mxu0 %v5606_v43  ;;  %v11296_v43 = vld [vmem:[%s15411_s0 + $0x2b8] ss:$28 sps:$4 sm:$0xff]   ;;  %v11297_v8 = vld [vmem:[%s15411_s0 + $0x2f0] ss:$28 sps:$4 sm:$0xff]  }
 0x1dc   :  { %8256 = vmatprep.subr.bf16.mxu0 %v11280_v24  ;;  %v11299_v24 = vld [vmem:[%s15411_s0 + $0x360] ss:$28 sps:$4 sm:$0xff]   ;;  %v5565_v4 = vpack.c.bf16 %v1561_v22, %v1435_v5  ;;  %v1931_v20 = vrot.slane %v11296_v43, %v11521_v34  ;;  %v1938_v17 = vrot.slane %v11297_v8, %v11521_v34 }
 0x1dd   :  { %v14515_v10 = vpop.f32.mrb[20].mxu1  ;;  %v2064_v55 = vrot.slane %v11299_v24, %v11521_v34  ;;  %v11307_v5 = vld [vmem:[%s15411_s0 + $0x520] ss:$28 sps:$4 sm:$0xff]  }
 0x1de   :  { %v14523_v32 = vpop.f32.mrb[21].mxu1  ;;  %v1940_v3 = vcombine.high %v1931_v20, %v1938_v17  ;;  %v1939_v43 = vcombine.low %v1931_v20, %v1938_v17 }
 0x1df   :  { %8257 = vmatpush1.bf16.msra.mxu0 %v11278_v36  ;;  %v14532_v36 = vpop.f32.mrb[22].mxu1  ;;  %v2066_v60 = vcombine.high %v2057_v39, %v2064_v55  ;;  %v2065_v8 = vcombine.low %v2057_v39, %v2064_v55  ;;  %v2568_v55 = vrot.slane %v11307_v5, %v11521_v34 }
 0x1e0   :  { %8258 = vmatprep.subr.bf16.mxu0 %v11283_v23  ;;  %v14534_v63 = vpop.f32.mrb[23].mxu1  ;;  %v1687_v23 = vcombine.low %v1679_v38, %v1686_v45  ;;  %v2309_v38 = vrot.slane %v11302_v6, %v11521_v34  ;;  %v11304_v45 = vld [vmem:[%s15411_s0 + $0x478] ss:$28 sps:$4 sm:$0xff]  }
 0x1e1   :  { %v5594_v27 = vpack.c.bf16 %v2066_v60, %v1940_v3  ;;  %v11308_v6 = vld [vmem:[%s15411_s0 + $0x558] ss:$28 sps:$4 sm:$0xff]  }
 0x1e2   :  { %8122 = vmatmul.mubr.bf16.gmra.mrb[16].mxu0 %v5605_v16  ;;  %v1813_v16 = vcombine.low %v1805_v29, %v1812_v59  ;;  %v11305_v29 = vld [vmem:[%s15411_s0 + $0x4b0] ss:$28 sps:$4 sm:$0xff]   ;;  %v11306_v59 = vld [vmem:[%s15411_s0 + $0x4e8] ss:$28 sps:$4 sm:$0xff]  }
 0x1e3   :  { %8259 = vmatpush1.bf16.msra.mxu0 %v11281_v50  ;;  %9651 = vmatprep.mubr.msk.bf16.mxu0 %vm7035_vm0, %v5552_v26  ;;  %v11301_v50 = vld [vmem:[%s15411_s0 + $0x3d0] ss:$28 sps:$4 sm:$0xff]   ;;  %v2442_v17 = vrot.slane %v11305_v29, %v11521_v34  ;;  %v2561_v39 = vrot.slane %v11306_v59, %v11521_v34  ;;  %v2687_v59 = vrot.slane %v11308_v6, %v11521_v34 }
 0x1e4   :  { %v5579_v7 = vpack.c.bf16 %v1813_v16, %v1687_v23  ;;  %v5593_v23 = vpack.c.bf16 %v2065_v8, %v1939_v43  ;;  %v2435_v16 = vrot.slane %v11304_v45, %v11521_v34  ;;  %v11351_v45 = vld [vmem:[%s15412_s3 + $0x18] sm:$0xff]  }
 0x1e5   :  { %v14540_v18 = vpop.f32.mrb[24].mxu1 }
 0x1e6   :  { %v14548_v26 = vpop.f32.mrb[25].mxu1 }
 0x1e7   :  { %v14557_v47 = vpop.f32.mrb[26].mxu1 }
 0x1e8   :  { %v14559_v53 = vpop.f32.mrb[27].mxu1 }
 0x1ea   :  { %8275 = vmatmul.mubr.bf16.vlgmr.msra.gmra.mrb[0].mxu0 %v5551_v9  ;;  %v2190_v9 = vrot.slane %v11301_v50, %v11521_v34 }
 0x1eb   :  { %9652 = vmatprep.mubr.msk.bf16.mxu0 %vm7035_vm0, %v5566_v25  ;;  %v2316_v25 = vrot.slane %v11303_v61, %v11521_v34  ;;  %v11309_v61 = vld [vmem:[%s15411_s0 + $0x590] ss:$28 sps:$4 sm:$0xff]  }
 0x1ec   :  { %v2192_v41 = vcombine.high %v2183_v14, %v2190_v9  ;;  %v2191_v3 = vcombine.low %v2183_v14, %v2190_v9  ;;  %v11310_v14 = vld [vmem:[%s15411_s0 + $0x5c8] ss:$28 sps:$4 sm:$0xff]   ;;  %v11311_v9 = vld [vmem:[%s15411_s0 + $0x600] ss:$28 sps:$4 sm:$0xff]   ;;  %v2694_v43 = vrot.slane %v11309_v61, %v11521_v34 }
 0x1ed   :  { %v14583_v22 = vpop.f32.mrb[28].mxu1  ;;  %v2318_v31 = vcombine.high %v2309_v38, %v2316_v25  ;;  %v2317_v60 = vcombine.low %v2309_v38, %v2316_v25  ;;  %v2813_v8 = vrot.slane %v11310_v14, %v11521_v34  ;;  %v11314_v61 = vld [vmem:[%s15411_s0 + $0x6a8] ss:$28 sps:$4 sm:$0xff]  }
 0x1ee   :  { %v14585_v42 = vpop.f32.mrb[29].mxu1  ;;  %v2695_v21 = vcombine.low %v2687_v59, %v2694_v43 }
 0x1ef   :  { %v14588_v24 = vpop.f32.mrb[30].mxu1  ;;  %v5608_v20 = vpack.c.bf16 %v2318_v31, %v2192_v41  ;;  %v5607_v29 = vpack.c.bf16 %v2317_v60, %v2191_v3  ;;  %v2820_v41 = vrot.slane %v11311_v9, %v11521_v34  ;;  %v2696_v60 = vcombine.high %v2687_v59, %v2694_v43  ;;  %v11318_v59 = vld [vmem:[%s15411_s0 + $0x788] ss:$28 sps:$4 sm:$0xff]   ;;  %v11319_v43 = vld [vmem:[%s15411_s0 + $0x7c0] ss:$28 sps:$4 sm:$0xff]  }
 0x1f1   :  { %v2822_v6 = vcombine.high %v2813_v8, %v2820_v41  ;;  %v2821_v54 = vcombine.low %v2813_v8, %v2820_v41  ;;  %v11353_v41 = vld [vmem:[%s15412_s3 + $0x28] sm:$0xff]  }
 0x1f2   :  { %8285 = vmatmul.mubr.bf16.gmra.mrb[4].mxu0 %v5565_v4  ;;  %v11349_v4 = vld [vmem:[%s15412_s3 + $0x8] sm:$0xff]  }
 0x1f3   :  { %9653 = vmatprep.mubr.msk.bf16.mxu0 %vm7035_vm0, %v5580_v33  ;;  %v14593_v33 = vpop.f32.mrb[31].mxu1  ;;  %8702 = vmatpush1.bf16.msra.mxu1 %v11349_v4  ;;  %v2443_v4 = vcombine.low %v2435_v16, %v2442_v17  ;;  %v5636_v14 = vpack.c.bf16 %v2822_v6, %v2696_v60  ;;  %v5635_v6 = vpack.c.bf16 %v2821_v54, %v2695_v21 }
 0x1f4   :  { %8703 = vmatprep.subr.bf16.mxu1 %v15421_v56 }
 0x1f5   :  { %v14603_v50 = vpop.f32.mrb[32].mxu1 }
 0x1f6   :  { %v14611_v11 = vpop.f32.mrb[33].mxu1 }
 0x1f7   :  { %8704 = vmatpush1.bf16.msra.mxu1 %v11350_v30  ;;  %v14621_v38 = vpop.f32.mrb[34].mxu1  ;;  %v11313_v30 = vld [vmem:[%s15411_s0 + $0x670] ss:$28 sps:$4 sm:$0xff]  }
 0x1f8   :  { %8705 = vmatprep.subr.bf16.mxu1 %v15421_v56  ;;  %v14623_v25 = vpop.f32.mrb[35].mxu1  ;;  %v2946_v9 = vrot.slane %v11313_v30, %v11521_v34 }
 0x1fa   :  { %8295 = vmatmul.mubr.bf16.gmra.mrb[8].mxu0 %v5579_v7  ;;  %v2444_v7 = vcombine.high %v2435_v16, %v2442_v17  ;;  %v11315_v16 = vld [vmem:[%s15411_s0 + $0x6e0] ss:$28 sps:$4 sm:$0xff]  }
 0x1fb   :  { %9654 = vmatprep.mubr.msk.bf16.mxu0 %vm7035_vm0, %v5594_v27  ;;  %v2570_v27 = vcombine.high %v2561_v39, %v2568_v55  ;;  %8706 = vmatpush1.bf16.msra.mxu1 %v11351_v45  ;;  %v3065_v45 = vrot.slane %v11314_v61, %v11521_v34 }
 0x1fc   :  { %8707 = vmatprep.subr.bf16.mxu1 %v15421_v56 }
 0x1fd   :  { %v5622_v5 = vpack.c.bf16 %v2570_v27, %v2444_v7  ;;  %v14633_v31 = vpop.f32.mrb[36].mxu1 }
 0x1fe   :  { %v14641_v3 = vpop.f32.mrb[37].mxu1 }
 0x1ff   :  { %v14650_v17 = vpop.f32.mrb[38].mxu1 }
 0x202   :  { %8305 = vmatmul.mubr.bf16.gmra.mrb[12].mxu0 %v5593_v23  ;;  %v2569_v23 = vcombine.low %v2561_v39, %v2568_v55  ;;  %v14652_v39 = vpop.f32.mrb[39].mxu1  ;;  %v11352_v55 = vld [vmem:[%s15412_s3 + $0x20] sm:$0xff]  }
 0x203   :  { %9655 = vmatprep.mubr.msk.bf16.mxu0 %vm7035_vm0, %v5608_v20  ;;  %v11312_v20 = vld [vmem:[%s15411_s0 + $0x638] ss:$28 sps:$4 sm:$0xff]   ;;  %8708 = vmatpush1.bf16.msra.mxu1 %v11352_v55 }
 0x204   :  { %v5621_v7 = vpack.c.bf16 %v2569_v23, %v2443_v4  ;;  %v2939_v27 = vrot.slane %v11312_v20, %v11521_v34  ;;  %8709 = vmatprep.subr.bf16.mxu1 %v15421_v56  ;;  %v11316_v4 = vld [vmem:[%s15411_s0 + $0x718] ss:$28 sps:$4 sm:$0xff]   ;;  %v11317_v23 = vld [vmem:[%s15411_s0 + $0x750] ss:$28 sps:$4 sm:$0xff]   ;;  %v3324_v56 = vrot.slane %v11319_v43, %v11521_v34 }
 0x205   :  { %v3191_v61 = vrot.slane %v11316_v4, %v11521_v34 }
 0x206   :  { %v2948_v20 = vcombine.high %v2939_v27, %v2946_v9  ;;  %v2947_v21 = vcombine.low %v2939_v27, %v2946_v9 }
 0x207   :  { %8710 = vmatpush1.bf16.msra.mxu1 %v11353_v41  ;;  %v11320_v41 = vld [vmem:[%s15411_s0 + $0x7f8] ss:$28 sps:$4 sm:$0xff]  }
 0x208   :  { %8711 = vmatprep.subr.bf16.mxu1 %v15447_v58 }
 0x20a   :  { %8315 = vmatmul.mubr.bf16.gmra.mrb[16].mxu0 %v5607_v29  ;;  %v3072_v29 = vrot.slane %v11315_v16, %v11521_v34  ;;  %v11354_v16 = vld [vmem:[%s15412_s3 + $0x30] sm:$0xff]  }
 0x20b   :  { %9656 = vmatprep.mubr.msk.bf16.mxu0 %vm7035_vm0, %v5622_v5  ;;  %v14662_v5 = vpop.f32.mrb[40].mxu1  ;;  %8712 = vmatpush1.bf16.msra.mxu1 %v11354_v16  ;;  %v11356_v16 = vld [vmem:[%s15412_s3 + $0x40] sm:$0xff]  }
 0x20c   :  { %v14664_v37 = vpop.f32.mrb[41].mxu1  ;;  %v3074_v30 = vcombine.high %v3065_v45, %v3072_v29  ;;  %v3073_v54 = vcombine.low %v3065_v45, %v3072_v29  ;;  %v11322_v45 = vld [vmem:[%s15411_s0 + $0x868] ss:$28 sps:$4 sm:$0xff]   ;;  %v11323_v29 = vld [vmem:[%s15411_s0 + $0x8a0] ss:$28 sps:$4 sm:$0xff]   ;;  %8713 = vmatprep.subr.bf16.mxu1 %v15447_v58 }
 0x20d   :  { %v14673_v60 = vpop.f32.mrb[42].mxu1  ;;  %v3569_v1 = vrot.slane %v11322_v45, %v11521_v34  ;;  %v3576_v62 = vrot.slane %v11323_v29, %v11521_v34 }
 0x20e   :  { %v14681_v8 = vpop.f32.mrb[43].mxu1  ;;  %v5650_v55 = vpack.c.bf16 %v3074_v30, %v2948_v20  ;;  %v11355_v20 = vld [vmem:[%s15412_s3 + $0x38] sm:$0xff]   ;;  %v5649_v43 = vpack.c.bf16 %v3073_v54, %v2947_v21  ;;  %v11325_v54 = vld [vmem:[%s15411_s0 + $0x910] ss:$28 sps:$4 sm:$0xff]  }
 0x20f   :  { %v14694_v46 = vpop.f32.mrb[44].mxu1  ;;  %8714 = vmatpush1.bf16.msra.mxu1 %v11355_v20  ;;  %v11324_v21 = vld [vmem:[%s15411_s0 + $0x8d8] ss:$28 sps:$4 sm:$0xff]   ;;  %v3578_v20 = vcombine.high %v3569_v1, %v3576_v62  ;;  %v3702_v29 = vrot.slane %v11325_v54, %v11521_v34 }
 0x210   :  { %v14696_v4 = vpop.f32.mrb[45].mxu1  ;;  %8715 = vmatprep.subr.bf16.mxu1 %v15447_v58  ;;  %v3695_v45 = vrot.slane %v11324_v21, %v11521_v34 }
 0x211   :  { %v14708_v9 = vpop.f32.mrb[46].mxu1 }
 0x212   :  { %8325 = vmatmul.mubr.bf16.gmra.mrb[64].mxu0 %v5621_v7  ;;  %v3198_v7 = vrot.slane %v11317_v23, %v11521_v34  ;;  %v11321_v23 = vld [vmem:[%s15411_s0 + $0x830] ss:$28 sps:$4 sm:$0xff]   ;;  %v3704_v21 = vcombine.high %v3695_v45, %v3702_v29 }
 0x213   :  { %9657 = vmatprep.mubr.msk.bf16.mxu0 %vm7035_vm0, %v5636_v14  ;;  %v3317_v14 = vrot.slane %v11318_v59, %v11521_v34  ;;  %v14717_v59 = vpop.f32.mrb[47].mxu1  ;;  %v3450_v40 = vrot.slane %v11321_v23, %v11521_v34  ;;  %v11326_v23 = vld [vmem:[%s15411_s0 + $0x948] ss:$28 sps:$4 sm:$0xff]   ;;  %8716 = vmatpush1.bf16.msra.mxu1 %v11356_v16 }
 0x214   :  { %v3200_v30 = vcombine.high %v3191_v61, %v3198_v7  ;;  %v3199_v57 = vcombine.low %v3191_v61, %v3198_v7  ;;  %v11357_v61 = vld [vmem:[%s15412_s3 + $0x48] sm:$0xff]   ;;  %8717 = vmatprep.subr.bf16.mxu1 %v15447_v58 }
 0x215   :  { %v3326_v27 = vcombine.high %v3317_v14, %v3324_v56  ;;  %v3325_v51 = vcombine.low %v3317_v14, %v3324_v56  ;;  %v11327_v56 = vld [vmem:[%s15411_s0 + $0x980] ss:$28 sps:$4 sm:$0xff]  }
 0x216   :  { %v3828_v16 = vrot.slane %v11327_v56, %v11521_v34  ;;  %v11329_v56 = vld [vmem:[%s15411_s0 + $0x9f0] ss:$28 sps:$4 sm:$0xff]  }
 0x217   :  { %8718 = vmatpush1.bf16.msra.mxu1 %v11357_v61 }
 0x218   :  { %8719 = vmatprep.subr.bf16.mxu1 %v15447_v58 }
 0x21a   :  { %8335 = vmatmul.mubr.bf16.gmra.mrb[68].mxu0 %v5635_v6  ;;  %v3443_v6 = vrot.slane %v11320_v41, %v11521_v34 }
 0x21b   :  { %9658 = vmatprep.mubr.msk.bf16.mxu0 %vm7035_vm0, %v5650_v55  ;;  %v5664_v55 = vpack.c.bf16 %v3326_v27, %v3200_v30  ;;  %v14727_v15 = vpop.f32.mrb[48].mxu1  ;;  %v5663_v27 = vpack.c.bf16 %v3325_v51, %v3199_v57  ;;  %v3577_v51 = vcombine.low %v3569_v1, %v3576_v62  ;;  %v11330_v1 = vld [vmem:[%s15411_s0 + $0xa28] ss:$28 sps:$4 sm:$0xff]  }
 0x21c   :  { %v14735_v41 = vpop.f32.mrb[49].mxu1  ;;  %v3452_v14 = vcombine.high %v3443_v6, %v3450_v40  ;;  %v3451_v12 = vcombine.low %v3443_v6, %v3450_v40  ;;  %v11359_v40 = vld [vmem:[%s15412_s3 + $0x58] sm:$0xff]  }
 0x21d   :  { %v14747_v7 = vpop.f32.mrb[50].mxu1  ;;  %v11331_v6 = vld [vmem:[%s15411_s0 + $0xa60] ss:$28 sps:$4 sm:$0xff]  }
 0x21e   :  { %v14750_v30 = vpop.f32.mrb[51].mxu1  ;;  %v5678_v49 = vpack.c.bf16 %v3578_v20, %v3452_v14  ;;  %v5677_v14 = vpack.c.bf16 %v3577_v51, %v3451_v12  ;;  %v4080_v52 = vrot.slane %v11331_v6, %v11521_v34  ;;  %v11333_v12 = vld [vmem:[%s15411_s0 + $0xad0] ss:$28 sps:$4 sm:$0xff]  }
 0x21f   :  { %v14815_v35 = vrot.slane %v11333_v12, %v11521_v34 }
 0x222   :  { %8345 = vmatmul.mubr.bf16.gmra.mrb[72].mxu0 %v5649_v43  ;;  %v3821_v43 = vrot.slane %v11326_v23, %v11521_v34  ;;  %v11328_v23 = vld [vmem:[%s15411_s0 + $0x9b8] ss:$28 sps:$4 sm:$0xff]  }
 0x223   :  { %9659 = vmatprep.mubr.msk.bf16.mxu0 %vm7035_vm0, %v5664_v55  ;;  %v11358_v55 = vld [vmem:[%s15412_s3 + $0x50] sm:$0xff]   ;;  %v14760_v2 = vpop.f32.mrb[52].mxu1 }
 0x224   :  { %v14762_v57 = vpop.f32.mrb[53].mxu1  ;;  %v3830_v54 = vcombine.high %v3821_v43, %v3828_v16  ;;  %8720 = vmatpush1.bf16.msra.mxu1 %v11358_v55  ;;  %v4073_v55 = vrot.slane %v11330_v1, %v11521_v34 }
 0x225   :  { %v14774_v62 = vpop.f32.mrb[54].mxu1  ;;  %8721 = vmatprep.subr.bf16.mxu1 %v15447_v58 }
 0x226   :  { %v14783_v61 = vpop.f32.mrb[55].mxu1  ;;  %v5692_v20 = vpack.c.bf16 %v3830_v54, %v3704_v21  ;;  %v11334_v21 = vld [vmem:[%s15411_s0 + $0xb08] ss:$28 sps:$4 sm:$0xff]   ;;  %v11335_v54 = vld [vmem:[%s15411_s0 + $0xb40] ss:$28 sps:$4 sm:$0xff]   ;;  %v4082_v19 = vcombine.high %v4073_v55, %v4080_v52 }
 0x228   :  { %8722 = vmatpush1.bf16.msra.mxu1 %v11359_v40  ;;  %v3829_v40 = vcombine.low %v3821_v43, %v3828_v16  ;;  %v5973_v16 = vld [vmem:[%s15413_s2] sm:$0x3] }
 0x229   :  { %8723 = vmatprep.subr.bf16.mxu1 %v15447_v58 }
 0x22a   :  { %8355 = vmatmul.mubr.bf16.gmra.mrb[76].mxu0 %v5663_v27  ;;  %v3947_v27 = vrot.slane %v11328_v23, %v11521_v34 }
 0x22b   :  { %9660 = vmatprep.mubr.msk.bf16.mxu0 %vm7035_vm0, %v5678_v49  ;;  %v3954_v49 = vrot.slane %v11329_v56, %v11521_v34  ;;  %v14796_v51 = vpop.f32.mrb[56].mxu1  ;;  %v3703_v56 = vcombine.low %v3695_v45, %v3702_v29  ;;  %v14821_v45 = vrot.slane %v11335_v54, %v11521_v34  ;;  %v15423_v29 = vsub.s32 0, %v11503_v28 }
 0x22c   :  { %15448 = vst [vmem:[#allocation24_spill] sm:$0xff] %v14796_v51  ;;  %v14804_v23 = vpop.f32.mrb[57].mxu1 }
 0x22d   :  { %15449 = vst [vmem:[#allocation25_spill] sm:$0xff] %v14804_v23  ;;  %v14806_v1 = vpop.f32.mrb[58].mxu1  ;;  %v3956_v6 = vcombine.high %v3947_v27, %v3954_v49  ;;  %v5691_v43 = vpack.c.bf16 %v3829_v40, %v3703_v56  ;;  %v3955_v12 = vcombine.low %v3947_v27, %v3954_v49  ;;  %v14836_v56 = vrot.slane %v5973_v16, %v15423_v29 }
 0x22e   :  { %15450 = vst [vmem:[#allocation26_spill] sm:$0xff] %v14806_v1  ;;  %v14809_v48 = vpop.f32.mrb[59].mxu1 }
 0x22f   :  { %15451 = vst [vmem:[#allocation27_spill] sm:$0xff] %v14809_v48  ;;  %v5706_v13 = vpack.c.bf16 %v4082_v19, %v3956_v6  ;;  %v4081_v48 = vcombine.low %v4073_v55, %v4080_v52  ;;  %v11336_v19 = vld [vmem:[%s15411_s0 + $0xb78] ss:$28 sps:$4 sm:$0xff]   ;;  %v11337_v52 = vld [vmem:[%s15411_s0 + $0xbb0] ss:$28 sps:$4 sm:$0xff]  }
 0x230   :  { %v11338_v55 = vld [vmem:[%s15411_s0 + $0xbe8] ss:$28 sps:$4 sm:$0xff]   ;;  %v11339_v6 = vld [vmem:[%s15411_s0 + $0xc20] ss:$28 sps:$4 sm:$0xff]   ;;  %v14866_v1 = vrot.slane %v11336_v19, %v11521_v34  ;;  %v14869_v23 = vrot.slane %v11337_v52, %v11521_v34 }
 0x232   :  { %8365 = vmatmul.mubr.bf16.gmra.mrb[80].mxu0 %v5677_v14  ;;  %v14818_v14 = vrot.slane %v11334_v21, %v11521_v34  ;;  %v4208_v21 = vcombine.high %v14812_v0, %v14815_v35 }
 0x233   :  { %9661 = vmatprep.mubr.msk.bf16.mxu0 %vm7035_vm0, %v5692_v20  ;;  %v5981_v20 = vsub.s32 1, %v11503_v28  ;;  %v14828_v44 = vpop.f32.mrb[60].mxu1  ;;  %v5705_v28 = vpack.c.bf16 %v4081_v48, %v3955_v12  ;;  %v14877_v48 = vrot.slane %v11339_v6, %v11521_v34 }
 0x234   :  { %15452 = vst [vmem:[#allocation28_spill] sm:$0xff] %v14828_v44  ;;  %v4334_v54 = vcombine.high %v14818_v14, %v14821_v45  ;;  %v14838_v40 = vpop.f32.mrb[61].mxu1 }
 0x235   :  { %15453 = vst [vmem:[#allocation29_spill] sm:$0xff] %v14838_v40  ;;  %v14846_v27 = vrot.slane %v5973_v16, %v5981_v20  ;;  %v14848_v49 = vpop.f32.mrb[62].mxu1 }
 0x236   :  { %15454 = vst [vmem:[#allocation30_spill] sm:$0xff] %v14848_v49  ;;  %v14859_v29 = vpop.f32.mrb[63].mxu1  ;;  %v5720_v49 = vpack.c.bf16 %v4334_v54, %v4208_v21  ;;  %v11341_v54 = vld [vmem:[%s15411_s0 + $0xc90] ss:$28 sps:$4 sm:$0xff]  }
 0x237   :  { %15455 = vst [vmem:[#allocation31_spill] sm:$0xff] %v14859_v29  ;;  %v9984_v16 = vadd.f32 %v14523_v32, %v14846_v27  ;;  %v14874_v32 = vrot.slane %v11338_v55, %v11521_v34  ;;  %v4207_v55 = vcombine.low %v14812_v0, %v14815_v35 }
 0x239   :  { %v4586_v35 = vcombine.high %v14874_v32, %v14877_v48 }
 0x23a   :  { %8375 = vmatmul.mubr.bf16.gmra.mrb[84].mxu0 %v5691_v43  ;;  %v9980_v43 = vadd.f32 %v14515_v10, %v14836_v56  ;;  %v9992_v10 = vadd.f32 %v14534_v63, %v14846_v27  ;;  %v11360_v63 = vld [vmem:[%s15412_s3 + $0x60] sm:$0xff]  }
 0x23b   :  { %9662 = vmatprep.mubr.msk.bf16.mxu0 %vm7035_vm0, %v5706_v13  ;;  %v9988_v13 = vadd.f32 %v14532_v36, %v14836_v56  ;;  %v11340_v36 = vld [vmem:[%s15411_s0 + $0xc58] ss:$28 sps:$4 sm:$0xff]   ;;  %v8133_v19 = vpop.f32.mrb[64].mxu1  ;;  %8724 = vmatpush1.bf16.msra.mxu1 %v11360_v63 }
 0x23c   :  { %v14908_v0 = vrot.slane %v11340_v36, %v11521_v34  ;;  %8725 = vmatprep.subr.bf16.mxu1 %v15447_v58  ;;  %v10000_v36 = vadd.f32 %v14548_v26, %v14846_v27 }
 0x23d   :  { %v7940_v20 = vpop.f32.mrb[20].mxu0 }
 0x23e   :  { %v9981_v40 = vadd.f32 %v9980_v43, %v7940_v20  ;;  %v7942_v44 = vpop.f32.mrb[21].mxu0  ;;  %v8135_v43 = vpop.f32.mrb[65].mxu1  ;;  %v4460_v20 = vcombine.high %v14866_v1, %v14869_v23 }
 0x23f   :  { %v9985_v29 = vadd.f32 %v9984_v16, %v7942_v44  ;;  %v7944_v51 = vpop.f32.mrb[22].mxu0  ;;  %v11342_v44 = vld [vmem:[%s15411_s0 + $0xcc8] ss:$28 sps:$4 sm:$0xff]   ;;  %v4333_v16 = vcombine.low %v14818_v14, %v14821_v45 }
 0x240   :  { %v9989_v12 = vadd.f32 %v9988_v13, %v7944_v51  ;;  %v7946_v21 = vpop.f32.mrb[23].mxu0  ;;  %v11343_v51 = vld [vmem:[%s15411_s0 + $0xd00] ss:$28 sps:$4 sm:$0xff]   ;;  %v14896_v6 = vadd.f32 %v9981_v40, %v8133_v19  ;;  %v14919_v40 = vrot.slane %v11342_v44, %v11521_v34  ;;  %v5734_v26 = vpack.c.bf16 %v4586_v35, %v4460_v20  ;;  %v11344_v35 = vld [vmem:[%s15411_s0 + $0xd38] ss:$28 sps:$4 sm:$0xff]  }
 0x241   :  { %v9993_v52 = vadd.f32 %v9992_v10, %v7946_v21  ;;  %v14902_v13 = vadd.f32 %v9985_v29, %v8135_v43  ;;  %v8137_v10 = vpop.f32.mrb[66].mxu1  ;;  %v14916_v29 = vrot.slane %v11341_v54, %v11521_v34  ;;  %v5719_v63 = vpack.c.bf16 %v4333_v16, %v4207_v55 }
 0x242   :  { %8385 = vmatmul.mubr.bf16.gmra.mrb[88].mxu0 %v5705_v28  ;;  %v9996_v28 = vadd.f32 %v14540_v18, %v14836_v56  ;;  %v14913_v14 = vadd.f32 %v9989_v12, %v8137_v10  ;;  %v8139_v45 = vpop.f32.mrb[67].mxu1  ;;  %v14929_v18 = vrot.slane %v11343_v51, %v11521_v34  ;;  %v10004_v12 = vadd.f32 %v14557_v47, %v14836_v56 }
 0x243   :  { %15456 = vst [vmem:[#allocation32_spill] sm:$0xff] %v14902_v13  ;;  %9663 = vmatprep.mubr.msk.bf16.mxu0 %vm7035_vm0, %v5720_v49  ;;  %v11361_v49 = vld [vmem:[%s15412_s3 + $0x68] ss:$0 sps:$4 sm:$0xff]   ;;  %v14926_v58 = vadd.f32 %v9993_v52, %v8139_v45  ;;  %v10008_v43 = vadd.f32 %v14559_v53, %v14846_v27  ;;  %v4459_v51 = vcombine.low %v14866_v1, %v14869_v23  ;;  %v11345_v23 = vld [vmem:[%s15411_s0 + $0xd70] ss:$28 sps:$4 sm:$0xff]  }
 0x244   :  { %15457 = vst [vmem:[#allocation33_spill] sm:$0xff] %v14913_v14  ;;  %v8697_v19 = vsel %vm8695_vm1, %v11361_v49, 0  ;;  %v4585_v47 = vcombine.low %v14874_v32, %v14877_v48  ;;  %v4712_v55 = vcombine.high %v14908_v0, %v14916_v29  ;;  %v4838_v53 = vcombine.high %v14919_v40, %v14929_v18  ;;  %v11346_v48 = vld [vmem:[%s15411_s0 + $0xda8] ss:$28 sps:$4 sm:$0xff]  }
 0x245   :  { %15458 = vst [vmem:[#allocation34_spill] sm:$0xff] %v14926_v58  ;;  %v7950_v21 = vpop.f32.mrb[24].mxu0  ;;  %8726 = vmatpush1.bf16.msra.mxu1 %v8697_v19  ;;  %v8143_v58 = vpop.f32.mrb[68].mxu1 }
 0x246   :  { %v9997_v54 = vadd.f32 %v9996_v28, %v7950_v21  ;;  %v7952_v44 = vpop.f32.mrb[25].mxu0  ;;  %v8145_v20 = vpop.f32.mrb[69].mxu1  ;;  %v11347_v28 = vld [vmem:[%s15411_s0 + $0xde0] ss:$28 sps:$4 sm:$0xff]  }
 0x247   :  { %v10001_v10 = vadd.f32 %v10000_v36, %v7952_v44  ;;  %v7954_v14 = vpop.f32.mrb[26].mxu0  ;;  %v8147_v32 = vpop.f32.mrb[70].mxu1  ;;  %v5748_v44 = vpack.c.bf16 %v4838_v53, %v4712_v55 }
 0x248   :  { %v10005_v52 = vadd.f32 %v10004_v12, %v7954_v14  ;;  %v7956_v45 = vpop.f32.mrb[27].mxu0  ;;  %v14943_v16 = vadd.f32 %v9997_v54, %v8143_v58  ;;  %v10012_v14 = vadd.f32 %v14583_v22, %v14836_v56  ;;  %v8149_v36 = vpop.f32.mrb[71].mxu1  ;;  %v10016_v58 = vadd.f32 %v14585_v42, %v14846_v27 }
 0x249   :  { %v10009_v13 = vadd.f32 %v10008_v43, %v7956_v45  ;;  %v14951_v1 = vadd.f32 %v10001_v10, %v8145_v20  ;;  %v5733_v54 = vpack.c.bf16 %v4585_v47, %v4459_v51  ;;  %v4955_v10 = vrot.slane %v11344_v35, %v11521_v34 }
 0x24a   :  { %8395 = vmatmul.mubr.bf16.gmra.mrb[92].mxu0 %v5719_v63  ;;  %v14962_v49 = vadd.f32 %v10005_v52, %v8147_v32  ;;  %v10020_v63 = vadd.f32 %v14588_v24, %v14836_v56  ;;  %v4962_v22 = vrot.slane %v11345_v23, %v11521_v34  ;;  %v5081_v42 = vrot.slane %v11346_v48, %v11521_v34 }
 0x24b   :  { %9664 = vmatprep.mubr.msk.bf16.mxu0 %vm7035_vm0, %v5734_v26  ;;  %v14966_v21 = vadd.f32 %v10009_v13, %v8149_v36  ;;  %v10024_v26 = vadd.f32 %v14593_v33, %v14846_v27  ;;  %v5088_v13 = vrot.slane %v11347_v28, %v11521_v34  ;;  %v8153_v55 = vpop.f32.mrb[72].mxu1  ;;  %v4711_v35 = vcombine.low %v14908_v0, %v14916_v29 }
 0x24c   :  { %v8155_v20 = vpop.f32.mrb[73].mxu1  ;;  %v4837_v33 = vcombine.low %v14919_v40, %v14929_v18  ;;  %v4964_v34 = vcombine.high %v4955_v10, %v4962_v22  ;;  %v10028_v28 = vadd.f32 %v14603_v50, %v14836_v56  ;;  %v10036_v40 = vadd.f32 %v14621_v38, %v14836_v56 }
 0x24d   :  { %v7960_v12 = vpop.f32.mrb[28].mxu0  ;;  %v8157_v32 = vpop.f32.mrb[74].mxu1  ;;  %v5090_v48 = vcombine.high %v5081_v42, %v5088_v13 }
 0x24e   :  { %v10013_v19 = vadd.f32 %v10012_v14, %v7960_v12  ;;  %v7962_v43 = vpop.f32.mrb[29].mxu0  ;;  %v8159_v36 = vpop.f32.mrb[75].mxu1 }
 0x24f   :  { %v10017_v52 = vadd.f32 %v10016_v58, %v7962_v43  ;;  %v7964_v45 = vpop.f32.mrb[30].mxu0  ;;  %v10032_v58 = vadd.f32 %v14611_v11, %v14846_v27 }
 0x250   :  { %v10021_v51 = vadd.f32 %v10020_v63, %v7964_v45  ;;  %v7966_v47 = vpop.f32.mrb[31].mxu0  ;;  %v14976_v24 = vadd.f32 %v10013_v19, %v8153_v55  ;;  %v5762_v19 = vpack.c.bf16 %v5090_v48, %v4964_v34  ;;  %v5089_v55 = vcombine.low %v5081_v42, %v5088_v13 }
 0x251   :  { %v10025_v53 = vadd.f32 %v10024_v26, %v7966_v47  ;;  %v14982_v23 = vadd.f32 %v10017_v52, %v8155_v20  ;;  %v4963_v47 = vcombine.low %v4955_v10, %v4962_v22  ;;  %v10052_v10 = vadd.f32 %v14650_v17, %v14836_v56 }
 0x252   :  { %8405 = vmatmul.mubr.bf16.gmra.mrb[96].mxu0 %v5733_v54  ;;  %v14987_v14 = vadd.f32 %v10021_v51, %v8157_v32  ;;  %v5747_v54 = vpack.c.bf16 %v4837_v33, %v4711_v35  ;;  %v10048_v33 = vadd.f32 %v14641_v3, %v14846_v27  ;;  %v10056_v48 = vadd.f32 %v14652_v39, %v14846_v27 }
 0x253   :  { %9665 = vmatprep.mubr.msk.bf16.mxu0 %vm7035_vm0, %v5748_v44  ;;  %v14991_v0 = vadd.f32 %v10025_v53, %v8159_v36  ;;  %v10040_v44 = vadd.f32 %v14623_v25, %v14846_v27  ;;  %v8163_v52 = vpop.f32.mrb[76].mxu1  ;;  %v10044_v25 = vadd.f32 %v14633_v31, %v14836_v56  ;;  %v5761_v13 = vpack.c.bf16 %v5089_v55, %v4963_v47 }
 0x254   :  { %v8165_v51 = vpop.f32.mrb[77].mxu1  ;;  %v10060_v17 = vadd.f32 %v14662_v5, %v14836_v56  ;;  %v10064_v39 = vadd.f32 %v14664_v37, %v14846_v27 }
 0x255   :  { %v7970_v29 = vpop.f32.mrb[32].mxu0  ;;  %v8167_v53 = vpop.f32.mrb[78].mxu1 }
 0x256   :  { %v10029_v18 = vadd.f32 %v10028_v28, %v7970_v29  ;;  %v7972_v12 = vpop.f32.mrb[33].mxu0  ;;  %v8169_v35 = vpop.f32.mrb[79].mxu1 }
 0x257   :  { %v10033_v63 = vadd.f32 %v10032_v58, %v7972_v12  ;;  %v7974_v50 = vpop.f32.mrb[34].mxu0 }
 0x258   :  { %v10037_v43 = vadd.f32 %v10036_v40, %v7974_v50  ;;  %v7976_v26 = vpop.f32.mrb[35].mxu0  ;;  %v14997_v11 = vadd.f32 %v10029_v18, %v8163_v52 }
 0x259   :  { %v10041_v45 = vadd.f32 %v10040_v44, %v7976_v26  ;;  %v14999_v38 = vadd.f32 %v10033_v63, %v8165_v51 }
 0x25a   :  { %8415 = vmatmul.mubr.bf16.gmra.mrb[100].mxu0 %v5747_v54  ;;  %v15004_v20 = vadd.f32 %v10037_v43, %v8167_v53  ;;  %v10068_v43 = vadd.f32 %v14673_v60, %v14836_v56  ;;  %v10076_v60 = vadd.f32 %v14694_v46, %v14836_v56 }
 0x25b   :  { %9666 = vmatprep.mubr.msk.bf16.mxu0 %vm7035_vm0, %v5762_v19  ;;  %v15008_v32 = vadd.f32 %v10041_v45, %v8169_v35  ;;  %v8173_v29 = vpop.f32.mrb[80].mxu1  ;;  %v10072_v45 = vadd.f32 %v14681_v8, %v14846_v27  ;;  %v10080_v8 = vadd.f32 %v14696_v4, %v14846_v27 }
 0x25c   :  { %v8175_v3 = vpop.f32.mrb[81].mxu1 }
 0x25d   :  { %v7980_v34 = vpop.f32.mrb[36].mxu0  ;;  %v8177_v54 = vpop.f32.mrb[82].mxu1 }
 0x25e   :  { %v10045_v22 = vadd.f32 %v10044_v25, %v7980_v34  ;;  %v7982_v42 = vpop.f32.mrb[37].mxu0  ;;  %v8179_v63 = vpop.f32.mrb[83].mxu1 }
 0x25f   :  { %v10049_v28 = vadd.f32 %v10048_v33, %v7982_v42  ;;  %v7984_v31 = vpop.f32.mrb[38].mxu0 }
 0x260   :  { %v10053_v36 = vadd.f32 %v10052_v10, %v7984_v31  ;;  %v7986_v58 = vpop.f32.mrb[39].mxu0  ;;  %v15014_v18 = vadd.f32 %v10045_v22, %v8173_v29 }
 0x261   :  { %v10057_v40 = vadd.f32 %v10056_v48, %v7986_v58  ;;  %v15016_v12 = vadd.f32 %v10049_v28, %v8175_v3  ;;  %v10084_v48 = vadd.f32 %v14708_v9, %v14836_v56  ;;  %v10092_v9 = vadd.f32 %v14727_v15, %v14836_v56 }
 0x262   :  { %8425 = vmatmul.mubr.bf16.gmra.mrb[104].mxu0 %v5761_v13  ;;  %v15020_v44 = vadd.f32 %v10053_v36, %v8177_v54  ;;  %v10088_v36 = vadd.f32 %v14717_v59, %v14846_v27  ;;  %v10096_v59 = vadd.f32 %v14735_v41, %v14846_v27 }
 0x263   :  { %v15024_v50 = vadd.f32 %v10057_v40, %v8179_v63  ;;  %v8183_v53 = vpop.f32.mrb[84].mxu1 }
 0x264   :  { %v8185_v37 = vpop.f32.mrb[85].mxu1 }
 0x265   :  { %v7990_v19 = vpop.f32.mrb[40].mxu0  ;;  %v8187_v34 = vpop.f32.mrb[86].mxu1 }
 0x266   :  { %v10061_v26 = vadd.f32 %v10060_v17, %v7990_v19  ;;  %v7992_v52 = vpop.f32.mrb[41].mxu0  ;;  %v8189_v22 = vpop.f32.mrb[87].mxu1 }
 0x267   :  { %v10065_v51 = vadd.f32 %v10064_v39, %v7992_v52  ;;  %v7994_v47 = vpop.f32.mrb[42].mxu0 }
 0x268   :  { %v10069_v5 = vadd.f32 %v10068_v43, %v7994_v47  ;;  %v7996_v55 = vpop.f32.mrb[43].mxu0  ;;  %v15030_v35 = vadd.f32 %v10061_v26, %v8183_v53 }
 0x269   :  { %v10073_v25 = vadd.f32 %v10072_v45, %v7996_v55  ;;  %v15032_v33 = vadd.f32 %v10065_v51, %v8185_v37  ;;  %v10100_v45 = vadd.f32 %v14747_v7, %v14836_v56  ;;  %v10108_v7 = vadd.f32 %v14760_v2, %v14836_v56 }
 0x26a   :  { %v15036_v10 = vadd.f32 %v10069_v5, %v8187_v34  ;;  %v10104_v5 = vadd.f32 %v14750_v30, %v14846_v27  ;;  %v10112_v30 = vadd.f32 %v14762_v57, %v14846_v27 }
 0x26b   :  { %v15040_v42 = vadd.f32 %v10073_v25, %v8189_v22  ;;  %v8193_v3 = vpop.f32.mrb[88].mxu1 }
 0x26c   :  { %v8195_v4 = vpop.f32.mrb[89].mxu1 }
 0x26d   :  { %v8000_v13 = vpop.f32.mrb[44].mxu0  ;;  %v8197_v39 = vpop.f32.mrb[90].mxu1 }
 0x26e   :  { %v10077_v28 = vadd.f32 %v10076_v60, %v8000_v13  ;;  %v8002_v31 = vpop.f32.mrb[45].mxu0  ;;  %v8199_v43 = vpop.f32.mrb[91].mxu1 }
 0x26f   :  { %v10081_v58 = vadd.f32 %v10080_v8, %v8002_v31  ;;  %v8004_v29 = vpop.f32.mrb[46].mxu0 }
 0x270   :  { %v10085_v46 = vadd.f32 %v10084_v48, %v8004_v29  ;;  %v8006_v40 = vpop.f32.mrb[47].mxu0  ;;  %v15046_v17 = vadd.f32 %v10077_v28, %v8193_v3 }
 0x271   :  { %v10089_v54 = vadd.f32 %v10088_v36, %v8006_v40  ;;  %v15048_v63 = vadd.f32 %v10081_v58, %v8195_v4  ;;  %v10116_v36 = vadd.f32 %v14774_v62, %v14836_v56 }
 0x272   :  { %v15052_v19 = vadd.f32 %v10085_v46, %v8197_v39  ;;  %v10120_v46 = vadd.f32 %v14783_v61, %v14846_v27  ;;  %v15460_v61 = vld [vmem:[#allocation25_spill] sm:$0xff] }
 0x273   :  { %v15056_v26 = vadd.f32 %v10089_v54, %v8199_v43  ;;  %v8203_v37 = vpop.f32.mrb[92].mxu1 }
 0x274   :  { %v8205_v41 = vpop.f32.mrb[93].mxu1 }
 0x275   :  { %v8010_v52 = vpop.f32.mrb[48].mxu0  ;;  %v8207_v8 = vpop.f32.mrb[94].mxu1 }
 0x276   :  { %v10093_v51 = vadd.f32 %v10092_v9, %v8010_v52  ;;  %v8012_v47 = vpop.f32.mrb[49].mxu0  ;;  %v8209_v48 = vpop.f32.mrb[95].mxu1  ;;  %v15459_v52 = vld [vmem:[#allocation24_spill] sm:$0xff] }
 0x277   :  { %v10097_v55 = vadd.f32 %v10096_v59, %v8012_v47  ;;  %v8014_v53 = vpop.f32.mrb[50].mxu0  ;;  %v10124_v62 = vadd.f32 %v15459_v52, %v14836_v56  ;;  %v10128_v47 = vadd.f32 %v15460_v61, %v14846_v27 }
 0x278   :  { %v10101_v15 = vadd.f32 %v10100_v45, %v8014_v53  ;;  %v8016_v25 = vpop.f32.mrb[51].mxu0  ;;  %v15062_v60 = vadd.f32 %v10093_v51, %v8203_v37  ;;  %v15461_v53 = vld [vmem:[#allocation26_spill] sm:$0xff] }
 0x279   :  { %v10105_v34 = vadd.f32 %v10104_v5, %v8016_v25  ;;  %v15064_v22 = vadd.f32 %v10097_v55, %v8205_v41 }
 0x27a   :  { %v15068_v13 = vadd.f32 %v10101_v15, %v8207_v8  ;;  %v10132_v15 = vadd.f32 %v15461_v53, %v14836_v56 }
 0x27b   :  { %v15072_v28 = vadd.f32 %v10105_v34, %v8209_v48  ;;  %v8213_v4 = vpop.f32.mrb[96].mxu1  ;;  %v15462_v34 = vld [vmem:[#allocation27_spill] sm:$0xff] }
 0x27c   :  { %v8215_v57 = vpop.f32.mrb[97].mxu1  ;;  %v10136_v41 = vadd.f32 %v15462_v34, %v14846_v27 }
 0x27d   :  { %v8020_v31 = vpop.f32.mrb[52].mxu0  ;;  %v8217_v59 = vpop.f32.mrb[98].mxu1 }
 0x27e   :  { %v10109_v58 = vadd.f32 %v10108_v7, %v8020_v31  ;;  %v8022_v29 = vpop.f32.mrb[53].mxu0  ;;  %v8219_v51 = vpop.f32.mrb[99].mxu1 }
 0x27f   :  { %v10113_v40 = vadd.f32 %v10112_v30, %v8022_v29  ;;  %v8024_v3 = vpop.f32.mrb[54].mxu0 }
 0x280   :  { %v10117_v2 = vadd.f32 %v10116_v36, %v8024_v3  ;;  %v8026_v54 = vpop.f32.mrb[55].mxu0  ;;  %v15078_v9 = vadd.f32 %v10109_v58, %v8213_v4  ;;  %v15463_v3 = vld [vmem:[#allocation28_spill] sm:$0xff] }
 0x281   :  { %v10121_v39 = vadd.f32 %v10120_v46, %v8026_v54  ;;  %v15080_v43 = vadd.f32 %v10113_v40, %v8215_v57 }
 0x282   :  { %v15084_v45 = vadd.f32 %v10117_v2, %v8217_v59  ;;  %v10140_v2 = vadd.f32 %v15463_v3, %v14836_v56  ;;  %v15468_v3 = vld [vmem:[#allocation4_spill] sm:$0xff] }
 0x283   :  { %v15088_v5 = vadd.f32 %v10121_v39, %v8219_v51  ;;  %v8223_v31 = vpop.f32.mrb[100].mxu1  ;;  %v15464_v39 = vld [vmem:[#allocation29_spill] sm:$0xff] }
 0x284   :  { %v8225_v29 = vpop.f32.mrb[101].mxu1  ;;  %v10144_v57 = vadd.f32 %v15464_v39, %v14846_v27 }
 0x285   :  { %v8030_v55 = vpop.f32.mrb[56].mxu0  ;;  %v8227_v40 = vpop.f32.mrb[102].mxu1 }
 0x286   :  { %v10125_v25 = vadd.f32 %v10124_v62, %v8030_v55  ;;  %v8032_v37 = vpop.f32.mrb[57].mxu0  ;;  %v8229_v4 = vpop.f32.mrb[103].mxu1  ;;  %v15465_v62 = vld [vmem:[#allocation30_spill] sm:$0xff]  ;;  %v15466_v55 = vld [vmem:[#allocation31_spill] sm:$0xff] }
 0x287   :  { %v10129_v8 = vadd.f32 %v10128_v47, %v8032_v37  ;;  %v8034_v7 = vpop.f32.mrb[58].mxu0  ;;  %v10148_v51 = vadd.f32 %v15465_v62, %v14836_v56  ;;  %v10152_v53 = vadd.f32 %v15466_v55, %v14846_v27 }
 0x288   :  { %v10133_v48 = vadd.f32 %v10132_v15, %v8034_v7  ;;  %v8036_v30 = vpop.f32.mrb[59].mxu0  ;;  %v15094_v58 = vadd.f32 %v10125_v25, %v8223_v31 }
 0x289   :  { %v10137_v36 = vadd.f32 %v10136_v41, %v8036_v30  ;;  %v15096_v46 = vadd.f32 %v10129_v8, %v8225_v29 }
 0x28a   :  { %v15100_v54 = vadd.f32 %v10133_v48, %v8227_v40 }
 0x28b   :  { %v15104_v59 = vadd.f32 %v10137_v36, %v8229_v4  ;;  %v8233_v41 = vpop.f32.mrb[104].mxu1  ;;  %v15469_v4 = vld [vmem:[#allocation5_spill] sm:$0xff] }
 0x28c   :  { %v8235_v48 = vpop.f32.mrb[105].mxu1  ;;  %v9942_v39 = vadd.f32 %v15469_v4, %v14846_v27 }
 0x28d   :  { %v8040_v52 = vpop.f32.mrb[60].mxu0  ;;  %v8237_v31 = vpop.f32.mrb[106].mxu1 }
 0x28e   :  { %v10141_v61 = vadd.f32 %v10140_v2, %v8040_v52  ;;  %v8042_v47 = vpop.f32.mrb[61].mxu0  ;;  %v8239_v29 = vpop.f32.mrb[107].mxu1  ;;  %v9940_v2 = vadd.f32 %v15468_v3, %v14836_v56  ;;  %v15470_v52 = vld [vmem:[#allocation6_spill] sm:$0xff]  ;;  %v15472_v3 = vld [vmem:[#allocation8_spill] sm:$0xff] }
 0x28f   :  { %v10145_v15 = vadd.f32 %v10144_v57, %v8042_v47  ;;  %v8044_v25 = vpop.f32.mrb[62].mxu0  ;;  %v9944_v62 = vadd.f32 %v15470_v52, %v14836_v56  ;;  %v15471_v47 = vld [vmem:[#allocation7_spill] sm:$0xff] }
 0x290   :  { %v10149_v37 = vadd.f32 %v10148_v51, %v8044_v25  ;;  %v8046_v34 = vpop.f32.mrb[63].mxu0  ;;  %v15110_v7 = vadd.f32 %v10141_v61, %v8233_v41  ;;  %v9946_v55 = vadd.f32 %v15471_v47, %v14846_v27  ;;  %v11362_v41 = vld [vmem:[%s15414_s5] sm:$0xff]  }
 0x291   :  { %v10153_v8 = vadd.f32 %v10152_v53, %v8046_v34  ;;  %v15112_v30 = vadd.f32 %v10145_v15, %v8235_v48  ;;  %9814 = vmatprep.subr.bf16.mxu1 %v11362_v41 }
 0x292   :  { %v15114_v36 = vadd.f32 %v10149_v37, %v8237_v31 }
 0x293   :  { %v15116_v40 = vadd.f32 %v10153_v8, %v8239_v29 }
 0x295   :  { %15467 = vst [vmem:[#allocation24_spill] sm:$0xff] %v15116_v40  ;;  %v15485_v40 = vld [vmem:[#allocation21_spill] sm:$0xff] }
 0x2bd   :  { %v8276_v57 = vpop.f32.mrb[0].mxu0 }
 0x2be   :  { %v9941_v51 = vadd.f32 %v9940_v2, %v8276_v57  ;;  %v8278_v61 = vpop.f32.mrb[1].mxu0  ;;  %v9948_v2 = vadd.f32 %v15472_v3, %v14836_v56 }
 0x2bf   :  { %v9943_v53 = vadd.f32 %v9942_v39, %v8278_v61  ;;  %v8280_v15 = vpop.f32.mrb[2].mxu0  ;;  %v15473_v39 = vld [vmem:[#allocation9_spill] sm:$0xff]  ;;  %v15474_v61 = vld [vmem:[#allocation10_spill] sm:$0xff] }
 0x2c0   :  { %v9945_v25 = vadd.f32 %v9944_v62, %v8280_v15  ;;  %v8282_v37 = vpop.f32.mrb[3].mxu0  ;;  %v8435_v8 = vmax.f32 %v9941_v51, 0.0  ;;  %v9950_v57 = vadd.f32 %v15473_v39, %v14846_v27  ;;  %v9952_v47 = vadd.f32 %v15474_v61, %v14836_v56  ;;  %v11363_v51 = vld [vmem:[%s15414_s5 + $0x8] sm:$0xff]  }
 0x2c1   :  { %v9947_v34 = vadd.f32 %v9946_v55, %v8282_v37  ;;  %v8436_v31 = vmax.f32 %v9943_v53, 0.0  ;;  %v15475_v53 = vld [vmem:[#allocation11_spill] sm:$0xff]  ;;  %v15476_v61 = vld [vmem:[#allocation12_spill] sm:$0xff] }
 0x2c2   :  { %v8437_v48 = vmax.f32 %v9945_v25, 0.0  ;;  %v9954_v25 = vadd.f32 %v15475_v53, %v14846_v27 }
 0x2c3   :  { %v8438_v29 = vmax.f32 %v9947_v34, 0.0 }
 0x2c4   :  { %v8499_v4 = vpack.c.bf16 %v8437_v48, %v8435_v8 }
 0x2c5   :  { %v8500_v52 = vpack.c.bf16 %v8438_v29, %v8436_v31  ;;  %v8286_v62 = vpop.f32.mrb[4].mxu0 }
 0x2c6   :  { %v9949_v55 = vadd.f32 %v9948_v2, %v8286_v62  ;;  %v8288_v15 = vpop.f32.mrb[5].mxu0  ;;  %v11364_v2 = vld [vmem:[%s15414_s5 + $0x10] sm:$0xff]  }
 0x2c7   :  { %v9951_v37 = vadd.f32 %v9950_v57, %v8288_v15  ;;  %v8290_v34 = vpop.f32.mrb[6].mxu0  ;;  %9682 = vmatprep.mubr.msk.bf16.mxu1 %vm8646_vm2, %v8500_v52  ;;  %v9956_v57 = vadd.f32 %v15476_v61, %v14836_v56  ;;  %v15477_v52 = vld [vmem:[#allocation13_spill] sm:$0xff] }
 0x2c8   :  { %v9953_v8 = vadd.f32 %v9952_v47, %v8290_v34  ;;  %v8292_v48 = vpop.f32.mrb[7].mxu0  ;;  %8732 = vmatmul.mubr.bf16.vlgmr.msra.gmra.mrb[108].mxu1 %v8499_v4  ;;  %v8439_v29 = vmax.f32 %v9949_v55, 0.0  ;;  %v9958_v47 = vadd.f32 %v15477_v52, %v14846_v27 }
 0x2c9   :  { %v9955_v31 = vadd.f32 %v9954_v25, %v8292_v48  ;;  %9815 = vmatpush3.bf16.msra.mxu1 %v11362_v41  ;;  %v8440_v39 = vmax.f32 %v9951_v37, 0.0  ;;  %v15478_v41 = vld [vmem:[#allocation14_spill] sm:$0xff] }
 0x2ca   :  { %v8441_v3 = vmax.f32 %v9953_v8, 0.0  ;;  %9816 = vmatprep.subr.bf16.mxu1 %v11363_v51  ;;  %v9960_v55 = vadd.f32 %v15478_v41, %v14836_v56  ;;  %v11365_v37 = vld [vmem:[%s15414_s5 + $0x18] sm:$0xff]   ;;  %v15479_v8 = vld [vmem:[#allocation15_spill] sm:$0xff]  ;;  %v15480_v41 = vld [vmem:[#allocation16_spill] sm:$0xff] }
 0x2cb   :  { %v8442_v62 = vmax.f32 %v9955_v31, 0.0  ;;  %v9962_v48 = vadd.f32 %v15479_v8, %v14846_v27 }
 0x2cc   :  { %v8501_v15 = vpack.c.bf16 %v8441_v3, %v8439_v29 }
 0x2cd   :  { %v8502_v53 = vpack.c.bf16 %v8442_v62, %v8440_v39  ;;  %v8296_v4 = vpop.f32.mrb[8].mxu0  ;;  %9817 = vmatpush3.bf16.msra.mxu1 %v11363_v51 }
 0x2ce   :  { %v9957_v25 = vadd.f32 %v9956_v57, %v8296_v4  ;;  %v8298_v34 = vpop.f32.mrb[9].mxu0  ;;  %9818 = vmatprep.subr.bf16.mxu1 %v11364_v2  ;;  %v11366_v57 = vld [vmem:[%s15414_s5 + $0x20] sm:$0xff]  }
 0x2cf   :  { %v9959_v31 = vadd.f32 %v9958_v47, %v8298_v34  ;;  %v8300_v29 = vpop.f32.mrb[10].mxu0  ;;  %9683 = vmatprep.mubr.msk.bf16.mxu1 %vm8646_vm2, %v8502_v53  ;;  %v9964_v47 = vadd.f32 %v15480_v41, %v14836_v56  ;;  %v15481_v53 = vld [vmem:[#allocation17_spill] sm:$0xff] }
 0x2d0   :  { %v9961_v3 = vadd.f32 %v9960_v55, %v8300_v29  ;;  %v8302_v39 = vpop.f32.mrb[11].mxu0  ;;  %8740 = vmatmul.mubr.bf16.gmra.mrb[112].mxu1 %v8501_v15  ;;  %v8443_v62 = vmax.f32 %v9957_v25, 0.0  ;;  %v9966_v55 = vadd.f32 %v15481_v53, %v14846_v27 }
 0x2d1   :  { %v9963_v51 = vadd.f32 %v9962_v48, %v8302_v39  ;;  %9819 = vmatpush3.bf16.msra.mxu1 %v11364_v2  ;;  %v8444_v52 = vmax.f32 %v9959_v31, 0.0  ;;  %v15482_v2 = vld [vmem:[#allocation18_spill] sm:$0xff] }
 0x2d2   :  { %v8445_v61 = vmax.f32 %v9961_v3, 0.0  ;;  %9820 = vmatprep.subr.bf16.mxu1 %v11365_v37  ;;  %v9968_v25 = vadd.f32 %v15482_v2, %v14836_v56  ;;  %v15483_v3 = vld [vmem:[#allocation19_spill] sm:$0xff] }
 0x2d3   :  { %v8446_v4 = vmax.f32 %v9963_v51, 0.0  ;;  %v9970_v31 = vadd.f32 %v15483_v3, %v14846_v27  ;;  %v9974_v3 = vadd.f32 %v15485_v40, %v14846_v27 }
 0x2d4   :  { %v8503_v34 = vpack.c.bf16 %v8445_v61, %v8443_v62 }
 0x2d5   :  { %v8504_v8 = vpack.c.bf16 %v8446_v4, %v8444_v52  ;;  %v8306_v15 = vpop.f32.mrb[12].mxu0  ;;  %9821 = vmatpush3.bf16.msra.mxu1 %v11365_v37 }
 0x2d6   :  { %v9965_v48 = vadd.f32 %v9964_v47, %v8306_v15  ;;  %v8308_v29 = vpop.f32.mrb[13].mxu0  ;;  %9822 = vmatprep.subr.bf16.mxu1 %v11366_v57  ;;  %v15484_v47 = vld [vmem:[#allocation20_spill] sm:$0xff] }
 0x2d7   :  { %v9967_v39 = vadd.f32 %v9966_v55, %v8308_v29  ;;  %v8310_v51 = vpop.f32.mrb[14].mxu0  ;;  %9684 = vmatprep.mubr.msk.bf16.mxu1 %vm8646_vm2, %v8504_v8  ;;  %v9972_v15 = vadd.f32 %v15484_v47, %v14836_v56  ;;  %v15486_v8 = vld [vmem:[#allocation22_spill] sm:$0xff] }
 0x2d8   :  { %v9969_v62 = vadd.f32 %v9968_v25, %v8310_v51  ;;  %v8312_v61 = vpop.f32.mrb[15].mxu0  ;;  %8748 = vmatmul.mubr.bf16.gmra.mrb[116].mxu1 %v8503_v34  ;;  %v8447_v52 = vmax.f32 %v9965_v48, 0.0  ;;  %v9976_v25 = vadd.f32 %v15486_v8, %v14836_v56  ;;  %v15488_v8 = vld [vmem:[#allocation32_spill] sm:$0xff] }
 0x2d9   :  { %v9971_v41 = vadd.f32 %v9970_v31, %v8312_v61  ;;  %9823 = vmatpush3.bf16.msra.mxu1 %v11366_v57  ;;  %v8448_v4 = vmax.f32 %v9967_v39, 0.0  ;;  %v15487_v57 = vld [vmem:[#allocation23_spill] sm:$0xff] }
 0x2da   :  { %v8449_v37 = vmax.f32 %v9969_v62, 0.0  ;;  %v9978_v48 = vadd.f32 %v15487_v57, %v14846_v27 }
 0x2db   :  { %v8450_v53 = vmax.f32 %v9971_v41, 0.0 }
 0x2dc   :  { %v8505_v2 = vpack.c.bf16 %v8449_v37, %v8447_v52 }
 0x2dd   :  { %v8506_v55 = vpack.c.bf16 %v8450_v53, %v8448_v4  ;;  %v8316_v29 = vpop.f32.mrb[16].mxu0 }
 0x2de   :  { %v9973_v51 = vadd.f32 %v9972_v15, %v8316_v29  ;;  %v8318_v34 = vpop.f32.mrb[17].mxu0 }
 0x2df   :  { %v9975_v31 = vadd.f32 %v9974_v3, %v8318_v34  ;;  %v8320_v39 = vpop.f32.mrb[18].mxu0  ;;  %9685 = vmatprep.mubr.msk.bf16.mxu1 %vm8646_vm2, %v8506_v55  ;;  %v15489_v55 = vld [vmem:[#allocation33_spill] sm:$0xff] }
 0x2e0   :  { %v9977_v62 = vadd.f32 %v9976_v25, %v8320_v39  ;;  %v8322_v61 = vpop.f32.mrb[19].mxu0  ;;  %8756 = vmatmul.mubr.bf16.gmra.mrb[120].mxu1 %v8505_v2  ;;  %v8451_v52 = vmax.f32 %v9973_v51, 0.0  ;;  %v15490_v2 = vld [vmem:[#allocation34_spill] sm:$0xff] }
 0x2e1   :  { %v9979_v41 = vadd.f32 %v9978_v48, %v8322_v61  ;;  %v8452_v37 = vmax.f32 %v9975_v31, 0.0 }
 0x2e2   :  { %v8453_v40 = vmax.f32 %v9977_v62, 0.0 }
 0x2e3   :  { %v8454_v4 = vmax.f32 %v9979_v41, 0.0 }
 0x2e4   :  { %v8507_v53 = vpack.c.bf16 %v8453_v40, %v8451_v52 }
 0x2e5   :  { %v8508_v47 = vpack.c.bf16 %v8454_v4, %v8452_v37  ;;  %v8326_v56 = vpop.f32.mrb[64].mxu0 }
 0x2e6   :  { %v9983_v15 = vadd.f32 %v14896_v6, %v8326_v56  ;;  %v8328_v29 = vpop.f32.mrb[65].mxu0 }
 0x2e7   :  { %v9987_v27 = vadd.f32 %v15488_v8, %v8328_v29  ;;  %v8330_v3 = vpop.f32.mrb[66].mxu0  ;;  %9686 = vmatprep.mubr.msk.bf16.mxu1 %vm8646_vm2, %v8508_v47 }
 0x2e8   :  { %v9991_v25 = vadd.f32 %v15489_v55, %v8330_v3  ;;  %v8332_v34 = vpop.f32.mrb[67].mxu0  ;;  %8764 = vmatmul.mubr.bf16.gmra.mrb[124].mxu1 %v8507_v53  ;;  %v8455_v57 = vmax.f32 %v9983_v15, 0.0 }
 0x2e9   :  { %v9995_v51 = vadd.f32 %v15490_v2, %v8332_v34  ;;  %v8456_v31 = vmax.f32 %v9987_v27, 0.0 }
 0x2ea   :  { %v8457_v48 = vmax.f32 %v9991_v25, 0.0 }
 0x2eb   :  { %v8458_v39 = vmax.f32 %v9995_v51, 0.0 }
 0x2ec   :  { %v8509_v62 = vpack.c.bf16 %v8457_v48, %v8455_v57 }
 0x2ed   :  { %v8510_v61 = vpack.c.bf16 %v8458_v39, %v8456_v31  ;;  %v8336_v41 = vpop.f32.mrb[68].mxu0 }
 0x2ee   :  { %v9999_v6 = vadd.f32 %v14943_v16, %v8336_v41  ;;  %v8338_v52 = vpop.f32.mrb[69].mxu0 }
 0x2ef   :  { %v10003_v40 = vadd.f32 %v14951_v1, %v8338_v52  ;;  %v8340_v37 = vpop.f32.mrb[70].mxu0  ;;  %9687 = vmatprep.mubr.msk.bf16.mxu1 %vm8646_vm2, %v8510_v61 }
 0x2f0   :  { %v10007_v4 = vadd.f32 %v14962_v49, %v8340_v37  ;;  %v8342_v53 = vpop.f32.mrb[71].mxu0  ;;  %8772 = vmatmul.mubr.bf16.gmra.mrb[128].mxu1 %v8509_v62  ;;  %v8459_v56 = vmax.f32 %v9999_v6, 0.0 }
 0x2f1   :  { %v10011_v47 = vadd.f32 %v14966_v21, %v8342_v53  ;;  %v8460_v29 = vmax.f32 %v10003_v40, 0.0 }
 0x2f2   :  { %v8461_v15 = vmax.f32 %v10007_v4, 0.0 }
 0x2f3   :  { %v8462_v8 = vmax.f32 %v10011_v47, 0.0 }
 0x2f4   :  { %v8511_v27 = vpack.c.bf16 %v8461_v15, %v8459_v56 }
 0x2f5   :  { %v8512_v3 = vpack.c.bf16 %v8462_v8, %v8460_v29  ;;  %v8346_v55 = vpop.f32.mrb[72].mxu0 }
 0x2f6   :  { %v10015_v16 = vadd.f32 %v14976_v24, %v8346_v55  ;;  %v8348_v25 = vpop.f32.mrb[73].mxu0 }
 0x2f7   :  { %v10019_v1 = vadd.f32 %v14982_v23, %v8348_v25  ;;  %v8350_v34 = vpop.f32.mrb[74].mxu0  ;;  %9688 = vmatprep.mubr.msk.bf16.mxu1 %vm8646_vm2, %v8512_v3 }
 0x2f8   :  { %v10023_v49 = vadd.f32 %v14987_v14, %v8350_v34  ;;  %v8352_v2 = vpop.f32.mrb[75].mxu0  ;;  %8780 = vmatmul.mubr.bf16.gmra.mrb[132].mxu1 %v8511_v27  ;;  %v8463_v51 = vmax.f32 %v10015_v16, 0.0 }
 0x2f9   :  { %v10027_v21 = vadd.f32 %v14991_v0, %v8352_v2  ;;  %v8464_v48 = vmax.f32 %v10019_v1, 0.0 }
 0x2fa   :  { %v8465_v57 = vmax.f32 %v10023_v49, 0.0 }
 0x2fb   :  { %v8466_v31 = vmax.f32 %v10027_v21, 0.0 }
 0x2fc   :  { %v8513_v39 = vpack.c.bf16 %v8465_v57, %v8463_v51 }
 0x2fd   :  { %v8514_v62 = vpack.c.bf16 %v8466_v31, %v8464_v48  ;;  %v8356_v61 = vpop.f32.mrb[76].mxu0 }
 0x2fe   :  { %v10031_v24 = vadd.f32 %v14997_v11, %v8356_v61  ;;  %v8358_v41 = vpop.f32.mrb[77].mxu0 }
 0x2ff   :  { %v10035_v23 = vadd.f32 %v14999_v38, %v8358_v41  ;;  %v8360_v6 = vpop.f32.mrb[78].mxu0  ;;  %9689 = vmatprep.mubr.msk.bf16.mxu1 %vm8646_vm2, %v8514_v62 }
 0x300   :  { %v10039_v14 = vadd.f32 %v15004_v20, %v8360_v6  ;;  %v8362_v52 = vpop.f32.mrb[79].mxu0  ;;  %8788 = vmatmul.mubr.bf16.gmra.mrb[136].mxu1 %v8513_v39  ;;  %v8467_v40 = vmax.f32 %v10031_v24, 0.0 }
 0x301   :  { %v10043_v0 = vadd.f32 %v15008_v32, %v8362_v52  ;;  %v8468_v4 = vmax.f32 %v10035_v23, 0.0 }
 0x302   :  { %v8469_v37 = vmax.f32 %v10039_v14, 0.0 }
 0x303   :  { %v8470_v53 = vmax.f32 %v10043_v0, 0.0 }
 0x304   :  { %v8515_v47 = vpack.c.bf16 %v8469_v37, %v8467_v40 }
 0x305   :  { %v8516_v56 = vpack.c.bf16 %v8470_v53, %v8468_v4  ;;  %v8366_v15 = vpop.f32.mrb[80].mxu0 }
 0x306   :  { %v10047_v11 = vadd.f32 %v15014_v18, %v8366_v15  ;;  %v8368_v29 = vpop.f32.mrb[81].mxu0 }
 0x307   :  { %v10051_v38 = vadd.f32 %v15016_v12, %v8368_v29  ;;  %v8370_v8 = vpop.f32.mrb[82].mxu0  ;;  %9690 = vmatprep.mubr.msk.bf16.mxu1 %vm8646_vm2, %v8516_v56 }
 0x308   :  { %v10055_v20 = vadd.f32 %v15020_v44, %v8370_v8  ;;  %v8372_v27 = vpop.f32.mrb[83].mxu0  ;;  %8796 = vmatmul.mubr.bf16.gmra.mrb[140].mxu1 %v8515_v47  ;;  %v8471_v3 = vmax.f32 %v10047_v11, 0.0 }
 0x309   :  { %v10059_v32 = vadd.f32 %v15024_v50, %v8372_v27  ;;  %v8472_v16 = vmax.f32 %v10051_v38, 0.0 }
 0x30a   :  { %v8473_v55 = vmax.f32 %v10055_v20, 0.0 }
 0x30b   :  { %v8474_v25 = vmax.f32 %v10059_v32, 0.0 }
 0x30c   :  { %v8517_v1 = vpack.c.bf16 %v8473_v55, %v8471_v3 }
 0x30d   :  { %v8518_v34 = vpack.c.bf16 %v8474_v25, %v8472_v16  ;;  %v8376_v49 = vpop.f32.mrb[84].mxu0  ;;  %v11368_v25 = vld [vmem:[%s15414_s5 + $0x30] sm:$0x3f]  }
 0x30e   :  { %v10063_v18 = vadd.f32 %v15030_v35, %v8376_v49  ;;  %v8378_v2 = vpop.f32.mrb[85].mxu0  ;;  %v9021_v49 = vsel %vm9019_vm3, %v11368_v25, 0 }
 0x30f   :  { %v10067_v12 = vadd.f32 %v15032_v33, %v8378_v2  ;;  %v8380_v21 = vpop.f32.mrb[86].mxu0  ;;  %9691 = vmatprep.mubr.msk.bf16.mxu1 %vm8646_vm2, %v8518_v34 }
 0x310   :  { %v10071_v44 = vadd.f32 %v15036_v10, %v8380_v21  ;;  %v8382_v51 = vpop.f32.mrb[87].mxu0  ;;  %8804 = vmatmul.mubr.bf16.gmra.mrb[144].mxu1 %v8517_v1  ;;  %v8475_v57 = vmax.f32 %v10063_v18, 0.0 }
 0x311   :  { %v10075_v50 = vadd.f32 %v15040_v42, %v8382_v51  ;;  %v8476_v31 = vmax.f32 %v10067_v12, 0.0 }
 0x312   :  { %v8477_v48 = vmax.f32 %v10071_v44, 0.0 }
 0x313   :  { %v8478_v39 = vmax.f32 %v10075_v50, 0.0 }
 0x314   :  { %v8519_v62 = vpack.c.bf16 %v8477_v48, %v8475_v57 }
 0x315   :  { %v8520_v61 = vpack.c.bf16 %v8478_v39, %v8476_v31  ;;  %v8386_v24 = vpop.f32.mrb[88].mxu0 }
 0x316   :  { %v10079_v35 = vadd.f32 %v15046_v17, %v8386_v24  ;;  %v8388_v41 = vpop.f32.mrb[89].mxu0 }
 0x317   :  { %v10083_v33 = vadd.f32 %v15048_v63, %v8388_v41  ;;  %v8390_v23 = vpop.f32.mrb[90].mxu0  ;;  %9692 = vmatprep.mubr.msk.bf16.mxu1 %vm8646_vm2, %v8520_v61 }
 0x318   :  { %v10087_v10 = vadd.f32 %v15052_v19, %v8390_v23  ;;  %v8392_v6 = vpop.f32.mrb[91].mxu0  ;;  %8812 = vmatmul.mubr.bf16.gmra.mrb[148].mxu1 %v8519_v62  ;;  %v8479_v14 = vmax.f32 %v10079_v35, 0.0 }
 0x319   :  { %v10091_v42 = vadd.f32 %v15056_v26, %v8392_v6  ;;  %v8480_v0 = vmax.f32 %v10083_v33, 0.0 }
 0x31a   :  { %v8481_v52 = vmax.f32 %v10087_v10, 0.0 }
 0x31b   :  { %v8482_v40 = vmax.f32 %v10091_v42, 0.0 }
 0x31c   :  { %v8521_v37 = vpack.c.bf16 %v8481_v52, %v8479_v14 }
 0x31d   :  { %v8522_v4 = vpack.c.bf16 %v8482_v40, %v8480_v0  ;;  %v8396_v53 = vpop.f32.mrb[92].mxu0 }
 0x31e   :  { %v10095_v17 = vadd.f32 %v15062_v60, %v8396_v53  ;;  %v8398_v47 = vpop.f32.mrb[93].mxu0  ;;  %v11367_v60 = vld [vmem:[%s15414_s5 + $0x28] sm:$0xff]  }
 0x31f   :  { %v10099_v63 = vadd.f32 %v15064_v22, %v8398_v47  ;;  %v8400_v56 = vpop.f32.mrb[94].mxu0  ;;  %9693 = vmatprep.mubr.msk.bf16.mxu1 %vm8646_vm2, %v8522_v4  ;;  %9824 = vmatprep.subr.bf16.mxu1 %v11367_v60 }
 0x320   :  { %v10103_v19 = vadd.f32 %v15068_v13, %v8400_v56  ;;  %v8402_v15 = vpop.f32.mrb[95].mxu0  ;;  %8820 = vmatmul.mubr.bf16.gmra.mrb[152].mxu1 %v8521_v37  ;;  %v8483_v11 = vmax.f32 %v10095_v17, 0.0 }
 0x321   :  { %v10107_v26 = vadd.f32 %v15072_v28, %v8402_v15  ;;  %v8484_v38 = vmax.f32 %v10099_v63, 0.0  ;;  %9825 = vmatpush3.bf16.msra.mxu1 %v11367_v60 }
 0x322   :  { %v8485_v29 = vmax.f32 %v10103_v19, 0.0  ;;  %10388 = vmatprep.subr.msk.bf16.mxu1 %vm9019_vm3, %v11368_v25 }
 0x323   :  { %v8486_v8 = vmax.f32 %v10107_v26, 0.0 }
 0x324   :  { %v8523_v20 = vpack.c.bf16 %v8485_v29, %v8483_v11 }
 0x325   :  { %v8524_v27 = vpack.c.bf16 %v8486_v8, %v8484_v38  ;;  %v8406_v22 = vpop.f32.mrb[96].mxu0  ;;  %9827 = vmatpush3.bf16.msra.mxu1 %v9021_v49 }
 0x326   :  { %v10111_v32 = vadd.f32 %v15078_v9, %v8406_v22  ;;  %v8408_v3 = vpop.f32.mrb[97].mxu0 }
 0x327   :  { %v10115_v13 = vadd.f32 %v15080_v43, %v8408_v3  ;;  %v8410_v55 = vpop.f32.mrb[98].mxu0  ;;  %9694 = vmatprep.mubr.msk.bf16.mxu1 %vm8646_vm2, %v8524_v27 }
 0x328   :  { %v10119_v28 = vadd.f32 %v15084_v45, %v8410_v55  ;;  %v8412_v16 = vpop.f32.mrb[99].mxu0  ;;  %8828 = vmatmul.mubr.bf16.gmra.mrb[156].mxu1 %v8523_v20  ;;  %v8487_v9 = vmax.f32 %v10111_v32, 0.0 }
 0x329   :  { %v10123_v1 = vadd.f32 %v15088_v5, %v8412_v16  ;;  %v8488_v43 = vmax.f32 %v10115_v13, 0.0 }
 0x32a   :  { %v8489_v34 = vmax.f32 %v10119_v28, 0.0 }
 0x32b   :  { %v8490_v18 = vmax.f32 %v10123_v1, 0.0 }
 0x32c   :  { %v8525_v2 = vpack.c.bf16 %v8489_v34, %v8487_v9 }
 0x32d   :  { %v8526_v12 = vpack.c.bf16 %v8490_v18, %v8488_v43  ;;  %v8416_v21 = vpop.f32.mrb[100].mxu0 }
 0x32e   :  { %v10127_v45 = vadd.f32 %v15094_v58, %v8416_v21  ;;  %v8418_v44 = vpop.f32.mrb[101].mxu0 }
 0x32f   :  { %v10131_v51 = vadd.f32 %v15096_v46, %v8418_v44  ;;  %v8420_v50 = vpop.f32.mrb[102].mxu0  ;;  %9695 = vmatprep.mubr.msk.bf16.mxu1 %vm8646_vm2, %v8526_v12 }
 0x330   :  { %v10135_v5 = vadd.f32 %v15100_v54, %v8420_v50  ;;  %v8422_v57 = vpop.f32.mrb[103].mxu0  ;;  %8836 = vmatmul.mubr.bf16.gmra.mrb[160].mxu1 %v8525_v2  ;;  %v8491_v31 = vmax.f32 %v10127_v45, 0.0 }
 0x331   :  { %v10139_v48 = vadd.f32 %v15104_v59, %v8422_v57  ;;  %v8492_v62 = vmax.f32 %v10131_v51, 0.0  ;;  %v15491_v59 = vld [vmem:[#allocation24_spill] sm:$0xff] }
 0x332   :  { %v8493_v39 = vmax.f32 %v10135_v5, 0.0 }
 0x333   :  { %v8494_v61 = vmax.f32 %v10139_v48, 0.0 }
 0x334   :  { %v8527_v24 = vpack.c.bf16 %v8493_v39, %v8491_v31 }
 0x335   :  { %v8528_v35 = vpack.c.bf16 %v8494_v61, %v8492_v62  ;;  %v8426_v41 = vpop.f32.mrb[104].mxu0 }
 0x336   :  { %v10143_v58 = vadd.f32 %v15110_v7, %v8426_v41  ;;  %v8428_v33 = vpop.f32.mrb[105].mxu0  ;;  %v15242_v7 = vld [vmem:[%s15415_s4] ss:$0 sm:$0xff] }
 0x337   :  { %v10147_v46 = vadd.f32 %v15112_v30, %v8428_v33  ;;  %v8430_v23 = vpop.f32.mrb[106].mxu0  ;;  %9696 = vmatprep.mubr.msk.bf16.mxu1 %vm8646_vm2, %v8528_v35 }
 0x338   :  { %v10151_v54 = vadd.f32 %v15114_v36, %v8430_v23  ;;  %v8432_v10 = vpop.f32.mrb[107].mxu0  ;;  %8844 = vmatmul.mubr.bf16.gmra.mrb[164].mxu1 %v8527_v24  ;;  %v8495_v42 = vmax.f32 %v10143_v58, 0.0 }
 0x339   :  { %v10155_v6 = vadd.f32 %v15491_v59, %v8432_v10  ;;  %v8496_v52 = vmax.f32 %v10147_v46, 0.0 }
 0x33a   :  { %v8497_v14 = vmax.f32 %v10151_v54, 0.0 }
 0x33b   :  { %v8498_v0 = vmax.f32 %v10155_v6, 0.0 }
 0x33c   :  { %v8529_v40 = vpack.c.bf16 %v8497_v14, %v8495_v42 }
 0x33d   :  { %v8530_v37 = vpack.c.bf16 %v8498_v0, %v8496_v52 }
 0x33f   :  { %9697 = vmatprep.mubr.msk.bf16.mxu1 %vm8646_vm2, %v8530_v37 }
 0x340   :  { %8852 = vmatmul.mubr.bf16.gmra.mrb[168].mxu1 %v8529_v40 }
 0x39b   :  { %v8733_v30 = vpop.f32.mrb[108].mxu1 }
 0x39c   :  { %v8734_v36 = vadd.f32 %v15242_v7, %v8733_v30  ;;  %v8735_v4 = vpop.f32.mrb[109].mxu1 }
 0x39d   :  { %v8736_v53 = vpop.f32.mrb[110].mxu1 }
 0x39e   :  { %v8737_v17 = vadd.f32 %v15242_v7, %v8736_v53  ;;  %v8738_v47 = vpop.f32.mrb[111].mxu1  ;;  %v8860_v63 = vmax.f32 %v8734_v36, 0.0 }
 0x3a0   :  { %v8861_v56 = vmax.f32 %v8737_v17, 0.0 }
 0x3a2   :  { %v8892_v19 = vpack.c.bf16 %v8861_v56, %v8860_v63 }
 0x3a3   :  { %v8741_v15 = vpop.f32.mrb[112].mxu1 }
 0x3a4   :  { %v8742_v26 = vadd.f32 %v15242_v7, %v8741_v15  ;;  %v8743_v11 = vpop.f32.mrb[113].mxu1  ;;  %9828 = vmatprep.mubr.msk.bf16.mxu1 %vm8970_vm4, %v8892_v19 }
 0x3a5   :  { %v8744_v29 = vpop.f32.mrb[114].mxu1 }
 0x3a6   :  { %v8745_v38 = vadd.f32 %v15242_v7, %v8744_v29  ;;  %v8746_v8 = vpop.f32.mrb[115].mxu1  ;;  %v8862_v20 = vmax.f32 %v8742_v26, 0.0 }
 0x3a8   :  { %v8863_v60 = vmax.f32 %v8745_v38, 0.0 }
 0x3aa   :  { %v8893_v27 = vpack.c.bf16 %v8863_v60, %v8862_v20 }
 0x3ab   :  { %v8749_v22 = vpop.f32.mrb[116].mxu1 }
 0x3ac   :  { %v8750_v32 = vadd.f32 %v15242_v7, %v8749_v22  ;;  %v8751_v3 = vpop.f32.mrb[117].mxu1  ;;  %9829 = vmatmul.mubr.msk.bf16.vlgmr.msra.gmra.mrb[172].mxu1 %vm8970_vm4, %v8893_v27 }
 0x3ad   :  { %v8752_v13 = vpop.f32.mrb[118].mxu1 }
 0x3ae   :  { %v8753_v55 = vadd.f32 %v15242_v7, %v8752_v13  ;;  %v8754_v28 = vpop.f32.mrb[119].mxu1  ;;  %v8864_v16 = vmax.f32 %v8750_v32, 0.0 }
 0x3b0   :  { %v8865_v25 = vmax.f32 %v8753_v55, 0.0 }
 0x3b2   :  { %v8894_v1 = vpack.c.bf16 %v8865_v25, %v8864_v16 }
 0x3b3   :  { %v8757_v9 = vpop.f32.mrb[120].mxu1 }
 0x3b4   :  { %v8758_v34 = vadd.f32 %v15242_v7, %v8757_v9  ;;  %v8759_v49 = vpop.f32.mrb[121].mxu1  ;;  %9832 = vmatprep.mubr.msk.bf16.mxu1 %vm8970_vm4, %v8894_v1 }
 0x3b5   :  { %v8760_v43 = vpop.f32.mrb[122].mxu1 }
 0x3b6   :  { %v8761_v18 = vadd.f32 %v15242_v7, %v8760_v43  ;;  %v8762_v2 = vpop.f32.mrb[123].mxu1  ;;  %v8866_v12 = vmax.f32 %v8758_v34, 0.0 }
 0x3b8   :  { %v8867_v21 = vmax.f32 %v8761_v18, 0.0 }
 0x3ba   :  { %v8895_v45 = vpack.c.bf16 %v8867_v21, %v8866_v12 }
 0x3bb   :  { %v8765_v44 = vpop.f32.mrb[124].mxu1 }
 0x3bc   :  { %v8766_v51 = vadd.f32 %v15242_v7, %v8765_v44  ;;  %v8767_v50 = vpop.f32.mrb[125].mxu1  ;;  %9833 = vmatmul.mubr.msk.bf16.gmra.mrb[176].mxu1 %vm8970_vm4, %v8895_v45 }
 0x3bd   :  { %v8768_v5 = vpop.f32.mrb[126].mxu1 }
 0x3be   :  { %v8769_v57 = vadd.f32 %v15242_v7, %v8768_v5  ;;  %v8770_v48 = vpop.f32.mrb[127].mxu1  ;;  %v8868_v31 = vmax.f32 %v8766_v51, 0.0 }
 0x3c0   :  { %v8869_v39 = vmax.f32 %v8769_v57, 0.0 }
 0x3c2   :  { %v8896_v62 = vpack.c.bf16 %v8869_v39, %v8868_v31 }
 0x3c3   :  { %v8773_v61 = vpop.f32.mrb[128].mxu1 }
 0x3c4   :  { %v8774_v24 = vadd.f32 %v15242_v7, %v8773_v61  ;;  %v8775_v35 = vpop.f32.mrb[129].mxu1  ;;  %9836 = vmatprep.mubr.msk.bf16.mxu1 %vm8970_vm4, %v8896_v62 }
 0x3c5   :  { %v8776_v41 = vpop.f32.mrb[130].mxu1 }
 0x3c6   :  { %v8777_v58 = vadd.f32 %v15242_v7, %v8776_v41  ;;  %v8778_v33 = vpop.f32.mrb[131].mxu1  ;;  %v8870_v46 = vmax.f32 %v8774_v24, 0.0 }
 0x3c8   :  { %v8871_v23 = vmax.f32 %v8777_v58, 0.0 }
 0x3ca   :  { %v8897_v54 = vpack.c.bf16 %v8871_v23, %v8870_v46 }
 0x3cb   :  { %v8781_v10 = vpop.f32.mrb[132].mxu1 }
 0x3cc   :  { %v8782_v59 = vadd.f32 %v15242_v7, %v8781_v10  ;;  %v8783_v6 = vpop.f32.mrb[133].mxu1  ;;  %9837 = vmatmul.mubr.msk.bf16.gmra.mrb[180].mxu1 %vm8970_vm4, %v8897_v54 }
 0x3cd   :  { %v8784_v42 = vpop.f32.mrb[134].mxu1 }
 0x3ce   :  { %v8785_v14 = vadd.f32 %v15242_v7, %v8784_v42  ;;  %v8786_v52 = vpop.f32.mrb[135].mxu1  ;;  %v8872_v0 = vmax.f32 %v8782_v59, 0.0 }
 0x3d0   :  { %v8873_v40 = vmax.f32 %v8785_v14, 0.0 }
 0x3d2   :  { %v8898_v37 = vpack.c.bf16 %v8873_v40, %v8872_v0 }
 0x3d3   :  { %v8789_v30 = vpop.f32.mrb[136].mxu1 }
 0x3d4   :  { %v8790_v36 = vadd.f32 %v15242_v7, %v8789_v30  ;;  %v8791_v4 = vpop.f32.mrb[137].mxu1  ;;  %9840 = vmatprep.mubr.msk.bf16.mxu1 %vm8970_vm4, %v8898_v37 }
 0x3d5   :  { %v8792_v53 = vpop.f32.mrb[138].mxu1 }
 0x3d6   :  { %v8793_v17 = vadd.f32 %v15242_v7, %v8792_v53  ;;  %v8794_v47 = vpop.f32.mrb[139].mxu1  ;;  %v8874_v63 = vmax.f32 %v8790_v36, 0.0 }
 0x3d8   :  { %v8875_v56 = vmax.f32 %v8793_v17, 0.0 }
 0x3da   :  { %v8899_v19 = vpack.c.bf16 %v8875_v56, %v8874_v63 }
 0x3db   :  { %v8797_v15 = vpop.f32.mrb[140].mxu1 }
 0x3dc   :  { %v8798_v26 = vadd.f32 %v15242_v7, %v8797_v15  ;;  %v8799_v11 = vpop.f32.mrb[141].mxu1  ;;  %9841 = vmatmul.mubr.msk.bf16.gmra.mrb[184].mxu1 %vm8970_vm4, %v8899_v19 }
 0x3dd   :  { %v8800_v29 = vpop.f32.mrb[142].mxu1 }
 0x3de   :  { %v8801_v38 = vadd.f32 %v15242_v7, %v8800_v29  ;;  %v8802_v8 = vpop.f32.mrb[143].mxu1  ;;  %v8876_v20 = vmax.f32 %v8798_v26, 0.0 }
 0x3e0   :  { %v8877_v60 = vmax.f32 %v8801_v38, 0.0 }
 0x3e2   :  { %v8900_v27 = vpack.c.bf16 %v8877_v60, %v8876_v20 }
 0x3e3   :  { %v8805_v22 = vpop.f32.mrb[144].mxu1 }
 0x3e4   :  { %v8806_v32 = vadd.f32 %v15242_v7, %v8805_v22  ;;  %v8807_v3 = vpop.f32.mrb[145].mxu1  ;;  %9844 = vmatprep.mubr.msk.bf16.mxu1 %vm8970_vm4, %v8900_v27  ;;  %v15295_v22 = vld [vmem:[%s15416_s6] ss:$0 sm:$0xff] }
 0x3e5   :  { %v8808_v13 = vpop.f32.mrb[146].mxu1 }
 0x3e6   :  { %v8809_v55 = vadd.f32 %v15242_v7, %v8808_v13  ;;  %v8810_v28 = vpop.f32.mrb[147].mxu1  ;;  %v8878_v16 = vmax.f32 %v8806_v32, 0.0 }
 0x3e8   :  { %v8879_v25 = vmax.f32 %v8809_v55, 0.0 }
 0x3ea   :  { %v8901_v1 = vpack.c.bf16 %v8879_v25, %v8878_v16 }
 0x3eb   :  { %v8813_v9 = vpop.f32.mrb[148].mxu1 }
 0x3ec   :  { %v8814_v34 = vadd.f32 %v15242_v7, %v8813_v9  ;;  %v8815_v49 = vpop.f32.mrb[149].mxu1  ;;  %9845 = vmatmul.mubr.msk.bf16.gmra.mrb[188].mxu1 %vm8970_vm4, %v8901_v1  ;;  %v15304_v1 = vld [vmem:[%s15417_s7] sm:$0x1] }
 0x3ed   :  { %v8816_v43 = vpop.f32.mrb[150].mxu1 }
 0x3ee   :  { %v8817_v18 = vadd.f32 %v15242_v7, %v8816_v43  ;;  %v8818_v2 = vpop.f32.mrb[151].mxu1  ;;  %v8880_v12 = vmax.f32 %v8814_v34, 0.0 }
 0x3f0   :  { %v8881_v21 = vmax.f32 %v8817_v18, 0.0 }
 0x3f2   :  { %v8902_v45 = vpack.c.bf16 %v8881_v21, %v8880_v12  ;;  %v14_v12 = vstv %s15418_s8 }
 0x3f3   :  { %v8821_v44 = vpop.f32.mrb[152].mxu1  ;;  %15 = vst [vmem:[#allocation2] sm:$0x1] %v14_v12 }
 0x3f4   :  { %v8822_v51 = vadd.f32 %v15242_v7, %v8821_v44  ;;  %v8823_v50 = vpop.f32.mrb[153].mxu1  ;;  %9848 = vmatprep.mubr.msk.bf16.mxu1 %vm8970_vm4, %v8902_v45 }
 0x3f5   :  { %v8824_v5 = vpop.f32.mrb[154].mxu1 }
 0x3f6   :  { %v8825_v57 = vadd.f32 %v15242_v7, %v8824_v5  ;;  %v8826_v48 = vpop.f32.mrb[155].mxu1  ;;  %v8882_v31 = vmax.f32 %v8822_v51, 0.0 }
 0x3f8   :  { %v8883_v39 = vmax.f32 %v8825_v57, 0.0 }
 0x3fa   :  { %v8903_v62 = vpack.c.bf16 %v8883_v39, %v8882_v31  ;;  %v9217_v48 = vld [vmem:[#allocation2] sm:$0x1] }
 0x3fb   :  { %v8829_v61 = vpop.f32.mrb[156].mxu1  ;;  %9220 = vperm.xlu0 %10392, %v9217_v48  }
 0x3fc   :  { %v8830_v24 = vadd.f32 %v15242_v7, %v8829_v61  ;;  %v8831_v35 = vpop.f32.mrb[157].mxu1  ;;  %9849 = vmatmul.mubr.msk.bf16.gmra.mrb[192].mxu1 %vm8970_vm4, %v8903_v62 }
 0x3fd   :  { %v8832_v41 = vpop.f32.mrb[158].mxu1 }
 0x3fe   :  { %v8833_v58 = vadd.f32 %v15242_v7, %v8832_v41  ;;  %v8834_v33 = vpop.f32.mrb[159].mxu1  ;;  %v8884_v46 = vmax.f32 %v8830_v24, 0.0 }
 0x400   :  { %v8885_v23 = vmax.f32 %v8833_v58, 0.0 }
 0x402   :  { %v8904_v54 = vpack.c.bf16 %v8885_v23, %v8884_v46 }
 0x403   :  { %v8837_v10 = vpop.f32.mrb[160].mxu1 }
 0x404   :  { %v8838_v59 = vadd.f32 %v15242_v7, %v8837_v10  ;;  %v8839_v6 = vpop.f32.mrb[161].mxu1  ;;  %9852 = vmatprep.mubr.msk.bf16.mxu1 %vm8970_vm4, %v8904_v54 }
 0x405   :  { %v8840_v42 = vpop.f32.mrb[162].mxu1 }
 0x406   :  { %v8841_v14 = vadd.f32 %v15242_v7, %v8840_v42  ;;  %v8842_v52 = vpop.f32.mrb[163].mxu1  ;;  %v8886_v0 = vmax.f32 %v8838_v59, 0.0 }
 0x408   :  { %v8887_v40 = vmax.f32 %v8841_v14, 0.0 }
 0x40a   :  { %v8905_v37 = vpack.c.bf16 %v8887_v40, %v8886_v0 }
 0x40b   :  { %v8845_v30 = vpop.f32.mrb[164].mxu1 }
 0x40c   :  { %v8846_v36 = vadd.f32 %v15242_v7, %v8845_v30  ;;  %v8847_v4 = vpop.f32.mrb[165].mxu1  ;;  %9853 = vmatmul.mubr.msk.bf16.gmra.mrb[196].mxu1 %vm8970_vm4, %v8905_v37 }
 0x40d   :  { %v8848_v53 = vpop.f32.mrb[166].mxu1 }
 0x40e   :  { %v8849_v17 = vadd.f32 %v15242_v7, %v8848_v53  ;;  %v8850_v47 = vpop.f32.mrb[167].mxu1  ;;  %v8888_v63 = vmax.f32 %v8846_v36, 0.0 }
 0x410   :  { %v8889_v56 = vmax.f32 %v8849_v17, 0.0 }
 0x412   :  { %v8906_v19 = vpack.c.bf16 %v8889_v56, %v8888_v63 }
 0x413   :  { %v8853_v15 = vpop.f32.mrb[168].mxu1 }
 0x414   :  { %v8854_v26 = vadd.f32 %v15242_v7, %v8853_v15  ;;  %v8855_v11 = vpop.f32.mrb[169].mxu1  ;;  %9856 = vmatprep.mubr.msk.bf16.mxu1 %vm8970_vm4, %v8906_v19 }
 0x415   :  { %v8856_v29 = vpop.f32.mrb[170].mxu1 }
 0x416   :  { %v8857_v38 = vadd.f32 %v15242_v7, %v8856_v29  ;;  %v8858_v8 = vpop.f32.mrb[171].mxu1  ;;  %v8890_v20 = vmax.f32 %v8854_v26, 0.0 }
 0x418   :  { %v8891_v60 = vmax.f32 %v8857_v38, 0.0 }
 0x41a   :  { %v8907_v27 = vpack.c.bf16 %v8891_v60, %v8890_v20 }
 0x41c   :  { %9857 = vmatmul.mubr.msk.bf16.gmra.mrb[200].mxu1 %vm8970_vm4, %v8907_v27 }
 0x41d   :  { %9812 = vmatprep.mubr.msk.f32.mxu1 %vm9227_vm5, %v15304_v1 }
 0x47f   :  { %v9830_v32 = vpop.f32.mrb[172].mxu1 }
 0x480   :  { %v9066_v3 = vadd.f32 %v9830_v32, %v15295_v22  ;;  %v9057_v13 = vpop.f32.mrb[173].mxu1 }
 0x481   :  { %v9058_v55 = vadd.f32 %v15295_v22, %v9057_v13  ;;  %v9831_v28 = vpop.f32.mrb[174].mxu1 }
 0x482   :  { %v9069_v7 = vadd.f32 %v9831_v28, %v15295_v22  ;;  %v9060_v16 = vpop.f32.mrb[175].mxu1  ;;  %v9186_v9 = vmax.f32 %v9066_v3, 0.0 }
 0x483   :  { %v9061_v25 = vadd.f32 %v15295_v22, %v9060_v16  ;;  %v9184_v49 = vmax.f32 %v9058_v55, 0.0 }
 0x484   :  { %v9187_v34 = vmax.f32 %v9069_v7, 0.0 }
 0x485   :  { %v9185_v43 = vmax.f32 %v9061_v25, 0.0 }
 0x486   :  { %v15308_v18 = vpack.c.bf16 %v9187_v34, %v9186_v9 }
 0x487   :  { %v15310_v2 = vpack.c.bf16 %v9185_v43, %v9184_v49 }
 0x48f   :  { %v9834_v21 = vpop.f32.mrb[176].mxu1 }
 0x490   :  { %v9082_v45 = vadd.f32 %v9834_v21, %v15295_v22  ;;  %v9073_v44 = vpop.f32.mrb[177].mxu1 }
 0x491   :  { %v9074_v51 = vadd.f32 %v15295_v22, %v9073_v44  ;;  %v9835_v50 = vpop.f32.mrb[178].mxu1 }
 0x492   :  { %v9085_v5 = vadd.f32 %v9835_v50, %v15295_v22  ;;  %v9076_v57 = vpop.f32.mrb[179].mxu1  ;;  %v9190_v39 = vmax.f32 %v9082_v45, 0.0 }
 0x493   :  { %v9077_v31 = vadd.f32 %v15295_v22, %v9076_v57  ;;  %v9188_v61 = vmax.f32 %v9074_v51, 0.0 }
 0x494   :  { %v9191_v62 = vmax.f32 %v9085_v5, 0.0 }
 0x495   :  { %v9189_v24 = vmax.f32 %v9077_v31, 0.0 }
 0x496   :  { %v15319_v35 = vpack.c.bf16 %v9191_v62, %v9190_v39 }
 0x497   :  { %v15321_v41 = vpack.c.bf16 %v9189_v24, %v9188_v61 }
 0x49f   :  { %v9838_v58 = vpop.f32.mrb[180].mxu1 }
 0x4a0   :  { %v9098_v33 = vadd.f32 %v9838_v58, %v15295_v22  ;;  %v9089_v46 = vpop.f32.mrb[181].mxu1 }
 0x4a1   :  { %v9090_v23 = vadd.f32 %v15295_v22, %v9089_v46  ;;  %v9839_v54 = vpop.f32.mrb[182].mxu1 }
 0x4a2   :  { %v9101_v10 = vadd.f32 %v9839_v54, %v15295_v22  ;;  %v9092_v59 = vpop.f32.mrb[183].mxu1  ;;  %v9194_v42 = vmax.f32 %v9098_v33, 0.0 }
 0x4a3   :  { %v9093_v6 = vadd.f32 %v15295_v22, %v9092_v59  ;;  %v9192_v52 = vmax.f32 %v9090_v23, 0.0 }
 0x4a4   :  { %v9195_v14 = vmax.f32 %v9101_v10, 0.0 }
 0x4a5   :  { %v9193_v0 = vmax.f32 %v9093_v6, 0.0 }
 0x4a6   :  { %v15327_v40 = vpack.c.bf16 %v9195_v14, %v9194_v42 }
 0x4a7   :  { %v15329_v37 = vpack.c.bf16 %v9193_v0, %v9192_v52 }
 0x4af   :  { %v9842_v30 = vpop.f32.mrb[184].mxu1 }
 0x4b0   :  { %v9114_v36 = vadd.f32 %v9842_v30, %v15295_v22  ;;  %v9105_v4 = vpop.f32.mrb[185].mxu1 }
 0x4b1   :  { %v9106_v53 = vadd.f32 %v15295_v22, %v9105_v4  ;;  %v9843_v17 = vpop.f32.mrb[186].mxu1 }
 0x4b2   :  { %v9117_v47 = vadd.f32 %v9843_v17, %v15295_v22  ;;  %v9108_v63 = vpop.f32.mrb[187].mxu1  ;;  %v9198_v19 = vmax.f32 %v9114_v36, 0.0 }
 0x4b3   :  { %v9109_v56 = vadd.f32 %v15295_v22, %v9108_v63  ;;  %v9196_v26 = vmax.f32 %v9106_v53, 0.0 }
 0x4b4   :  { %v9199_v15 = vmax.f32 %v9117_v47, 0.0 }
 0x4b5   :  { %v9197_v11 = vmax.f32 %v9109_v56, 0.0 }
 0x4b6   :  { %v15335_v29 = vpack.c.bf16 %v9199_v15, %v9198_v19 }
 0x4b7   :  { %v15337_v38 = vpack.c.bf16 %v9197_v11, %v9196_v26 }
 0x4bf   :  { %v9846_v8 = vpop.f32.mrb[188].mxu1 }
 0x4c0   :  { %v9130_v20 = vadd.f32 %v9846_v8, %v15295_v22  ;;  %v9121_v60 = vpop.f32.mrb[189].mxu1 }
 0x4c1   :  { %v9122_v27 = vadd.f32 %v15295_v22, %v9121_v60  ;;  %v9847_v32 = vpop.f32.mrb[190].mxu1 }
 0x4c2   :  { %v9133_v3 = vadd.f32 %v9847_v32, %v15295_v22  ;;  %v9124_v13 = vpop.f32.mrb[191].mxu1  ;;  %v9202_v28 = vmax.f32 %v9130_v20, 0.0 }
 0x4c3   :  { %v9125_v55 = vadd.f32 %v15295_v22, %v9124_v13  ;;  %v9200_v16 = vmax.f32 %v9122_v27, 0.0 }
 0x4c4   :  { %v9203_v7 = vmax.f32 %v9133_v3, 0.0 }
 0x4c5   :  { %v9201_v25 = vmax.f32 %v9125_v55, 0.0 }
 0x4c6   :  { %v9866_v9 = vpack.c.bf16 %v9203_v7, %v9202_v28 }
 0x4c7   :  { %v9860_v49 = vpack.c.bf16 %v9201_v25, %v9200_v16  ;;  %v11379_v25 = vmov 1966171168  }
 0x4c9   :  { %9862 = vmatprep.subr.msk.bf16.mxu1 %vm15345_vm6, %v9860_v49 }
 0x4ca   :  { %9865 = vmatpush3.bf16.xpose.msk.msra.mxu1 %vm15345_vm6, %v15310_v2 }
 0x4cb   :  { %9868 = vmatprep.subr.msk.bf16.mxu1 %vm15345_vm6, %v9866_v9  ;;  %v9418_v9 = vunpack.c.l.s4 %v11379_v25 }
 0x4cd   :  { %v9419_v34 = vunpack.c.0.s8 %v9418_v9 }
 0x4cf   :  { %v9850_v43 = vpop.f32.mrb[192].mxu1 }
 0x4d0   :  { %v9146_v12 = vadd.f32 %v9850_v43, %v15295_v22  ;;  %v9137_v21 = vpop.f32.mrb[193].mxu1 }
 0x4d1   :  { %v9138_v45 = vadd.f32 %v15295_v22, %v9137_v21  ;;  %v9851_v44 = vpop.f32.mrb[194].mxu1 }
 0x4d2   :  { %v9149_v51 = vadd.f32 %v9851_v44, %v15295_v22  ;;  %v9140_v50 = vpop.f32.mrb[195].mxu1  ;;  %9871 = vmatpush3.bf16.xpose.msk.msra.mxu1 %vm15345_vm6, %v15308_v18  ;;  %v9206_v2 = vmax.f32 %v9146_v12, 0.0  ;;  %v15496_v44 = vlaneseq }
 0x4d3   :  { %v9141_v5 = vadd.f32 %v15295_v22, %v9140_v50  ;;  %v9204_v48 = vmax.f32 %v9138_v45, 0.0 }
 0x4d4   :  { %v9207_v57 = vmax.f32 %v9149_v51, 0.0  ;;  %vm9434_vm7 = vcmp.lt.s32.totalorder %v15496_v44, 256 }
 0x4d5   :  { %v9205_v31 = vmax.f32 %v9141_v5, 0.0 }
 0x4d6   :  { %v9878_v39 = vpack.c.bf16 %v9207_v57, %v9206_v2 }
 0x4d7   :  { %v9872_v62 = vpack.c.bf16 %v9205_v31, %v9204_v48 }
 0x4d9   :  { %9874 = vmatprep.subr.msk.bf16.mxu1 %vm15345_vm6, %v9872_v62 }
 0x4da   :  { %9877 = vmatpush3.bf16.xpose.msk.msra.mxu1 %vm15345_vm6, %v15321_v41 }
 0x4db   :  { %9880 = vmatprep.subr.msk.bf16.mxu1 %vm15345_vm6, %v9878_v39 }
 0x4df   :  { %v9854_v61 = vpop.f32.mrb[196].mxu1 }
 0x4e0   :  { %v9162_v18 = vadd.f32 %v9854_v61, %v15295_v22  ;;  %v9153_v24 = vpop.f32.mrb[197].mxu1 }
 0x4e1   :  { %v9154_v58 = vadd.f32 %v15295_v22, %v9153_v24  ;;  %v9855_v33 = vpop.f32.mrb[198].mxu1 }
 0x4e2   :  { %v9165_v46 = vadd.f32 %v9855_v33, %v15295_v22  ;;  %v9156_v23 = vpop.f32.mrb[199].mxu1  ;;  %9883 = vmatpush3.bf16.xpose.msk.msra.mxu1 %vm15345_vm6, %v15319_v35  ;;  %v9210_v41 = vmax.f32 %v9162_v18, 0.0 }
 0x4e3   :  { %v9157_v54 = vadd.f32 %v15295_v22, %v9156_v23  ;;  %v9208_v59 = vmax.f32 %v9154_v58, 0.0 }
 0x4e4   :  { %v9211_v10 = vmax.f32 %v9165_v46, 0.0 }
 0x4e5   :  { %v9209_v6 = vmax.f32 %v9157_v54, 0.0 }
 0x4e6   :  { %v9890_v42 = vpack.c.bf16 %v9211_v10, %v9210_v41 }
 0x4e7   :  { %v9884_v14 = vpack.c.bf16 %v9209_v6, %v9208_v59 }
 0x4e9   :  { %9886 = vmatprep.subr.msk.bf16.mxu1 %vm15345_vm6, %v9884_v14 }
 0x4ea   :  { %9889 = vmatpush3.bf16.xpose.msk.msra.mxu1 %vm15345_vm6, %v15329_v37 }
 0x4eb   :  { %9892 = vmatprep.subr.msk.bf16.mxu1 %vm15345_vm6, %v9890_v42 }
 0x4ef   :  { %v9858_v52 = vpop.f32.mrb[200].mxu1 }
 0x4f0   :  { %v9178_v35 = vadd.f32 %v9858_v52, %v15295_v22  ;;  %v9169_v0 = vpop.f32.mrb[201].mxu1 }
 0x4f1   :  { %v9170_v30 = vadd.f32 %v15295_v22, %v9169_v0  ;;  %v9859_v36 = vpop.f32.mrb[202].mxu1 }
 0x4f2   :  { %v9181_v4 = vadd.f32 %v9859_v36, %v15295_v22  ;;  %v9172_v53 = vpop.f32.mrb[203].mxu1  ;;  %9895 = vmatpush3.bf16.xpose.msk.msra.mxu1 %vm15345_vm6, %v15327_v40  ;;  %v9214_v37 = vmax.f32 %v9178_v35, 0.0  ;;  %v15494_v40 = vld [vmem:[#allocation3_spill] sm:$0xff] }
 0x4f3   :  { %v9173_v17 = vadd.f32 %v15295_v22, %v9172_v53  ;;  %v9212_v63 = vmax.f32 %v9170_v30, 0.0  ;;  %v9221_v22 = vpop.permute.xlu0 %9220  ;;  %v15495_v26 = vsub.s32 0, %v15494_v40  ;;  %v9422_v43 = vsub.s32 %v9419_v34, %v15494_v40 }
 0x4f4   :  { %v9215_v47 = vmax.f32 %v9181_v4, 0.0 }
 0x4f5   :  { %v9213_v56 = vmax.f32 %v9173_v17, 0.0  ;;  %v9226_v11 = vrot.slane %v9221_v22, %v15495_v26 }
 0x4f6   :  { %v9902_v19 = vpack.c.bf16 %v9215_v47, %v9214_v37 }
 0x4f7   :  { %v9896_v15 = vpack.c.bf16 %v9213_v56, %v9212_v63 }
 0x4f9   :  { %9898 = vmatprep.subr.msk.bf16.mxu1 %vm15345_vm6, %v9896_v15 }
 0x4fa   :  { %9901 = vmatpush3.bf16.xpose.msk.msra.mxu1 %vm15345_vm6, %v15337_v38 }
 0x4fb   :  { %9904 = vmatprep.subr.msk.bf16.mxu1 %vm15345_vm6, %v9902_v19 }
 0x502   :  { %9907 = vmatpush3.bf16.xpose.msk.msra.mxu1 %vm15345_vm6, %v15335_v29 }
 0x509   :  { %9813 = vmatmul.mubr.msk.f32.vlgmr.msra.gmra.mrb[204].mxu1 %vm9227_vm5, %v15304_v1 }
 0x5dc   :  { %v9393_v8 = vpop.f32.mrb[204].mxu1 }
 0x5dd   :  { %v9394_v20 = vadd.f32 %v9393_v8, %v9226_v11  ;;  %v9395_v60 = vpop.f32.mrb[205].mxu1 }
 0x5de   :  { %v9396_v27 = vadd.f32 %v9395_v60, %v9226_v11 }
 0x5df   :  { %v9755_v32 = vclamps-f32 %v9394_v20, 30.0 }
 0x5e0   :  { %v9756_v38 = vclamps-f32 %v9396_v27, 30.0 }
 0x5e1   :  { %v9402_v3 = vsub.f32 0.0, %v9755_v32 }
 0x5e2   :  { %v9403_v13 = vsub.f32 0.0, %v9756_v38 }
 0x5e3   :  { %v9404_v55 = vmul.f32 1.442695, %v9402_v3 }
 0x5e4   :  { %v9406_v28 = vmul.f32 1.442695, %v9403_v13 }
 0x5e5   :  { %11369 = vpow2.f32 %v9404_v55 }
 0x5e6   :  { %11371 = vpow2.f32 %v9406_v28 }
 0x5ef   :  { %v11370_v29 = vpop.eup %11369 }
 0x5f0   :  { %v11372_v7 = vpop.eup %11371  ;;  %v9408_v16 = vadd.f32 1.0, %v11370_v29 }
 0x5f1   :  { %v9409_v1 = vadd.f32 1.0, %v11372_v7 }
 0x5f2   :  { %11373 = vrcp.f32 %v9408_v16 }
 0x5f3   :  { %11375 = vrcp.f32 %v9409_v1 }
 0x5fc   :  { %v11374_v49 = vpop.eup %11373 }
 0x5fd   :  { %v11376_v12 = vpop.eup %11375 }
 0x5fe   :  { %v9416_v21 = vcombine.low %v11374_v49, %v11376_v12 }
 0x600   :  { %v9423_v45 = vrot.slane %v9416_v21, %v9422_v43 }
 0x602   :  { %v9430_v51 = vrot.slane %v9423_v45, %v9422_v43 }
 0x604   :  { %9436 = vst.msk [vmem:[%s15419_s9] sm:$0x3] %vm9434_vm7, %v9430_v51 }

</bundles_post_ra>
